<compile_context>
chip_gen: v7x
topology: tpu7x:2x2x1
jax: 0.10.0
libtpu: 0.0.40
codegen_flags: <defaults>
</compile_context>

<pallas_src>
import jax
import jax.numpy as jnp
import numpy as np
from jax.experimental import pallas as pl
from jax.experimental.pallas import tpu as pltpu


def _round_up(x, m=128):
    return ((x + m - 1) // m) * m


# ------------------------------- fused forward kernel -------------------------------
def _make_fused_kernel(layer_dims, K, Wp, H, Bt, Lseg, M, P0, Npay):
    """Activations live in a flat-padded layout: value of pixel (h, w) of batch j is at
    lane P0 + j*Lseg + h*Wp + w of the (C_max, Ltot) VMEM scratch; all other lanes are 0,
    which provides the 'same' zero padding for the convs as plain lane shifts."""
    n_layers = len(layer_dims)
    pad = K // 2

    def kernel(*refs):
        mel_ref, pinv_ref = refs[0], refs[1]
        mask_ref = refs[2 + 2 * n_layers]
        out_ref = refs[3 + 2 * n_layers]
        x_scr = refs[4 + 2 * n_layers]

        # zero the activation scratch (margins + payload) for this grid step
        x_scr[...] = jnp.zeros_like(x_scr)

        # PInvBlock: stft_hat = pinv(melfb) @ melspec -- one small MXU dot for Bt batches.
        # mel columns [W, Wp) per batch were zero-padded host-side, so the padded rows
        # come out of the dot with exact zero halos.
        r = jnp.dot(pinv_ref[...], mel_ref[...], preferred_element_type=jnp.float32)

        # place each batch's (H, Wp) rows into channel 0 of the flat-padded scratch
        for j in range(Bt):
            base = P0 + j * Lseg
            for h in range(H):
                x_scr[0:1, base + h * Wp: base + h * Wp + Wp] = r[h:h + 1, j * Wp:(j + 1) * Wp]

        mask = mask_ref[...]                                   # (1, Npay) valid-lane mask

        y = None
        for li, (c_in, c_out) in enumerate(layer_dims):
            w_ref, b_ref = refs[2 + 2 * li], refs[3 + 2 * li]
            w_all = w_ref[...]                                 # (c_out, K*K*c_in)
            y = None
            for kh in range(K):
                for kw in range(K):
                    t = kh * K + kw
                    start = P0 + (kh - pad) * Wp + (kw - pad)  # static shift, halos read 0
                    xt = x_scr[0:c_in, start:start + Npay]     # (c_in, Npay)
                    wt = w_all[:, t * c_in:(t + 1) * c_in]     # (c_out, c_in)
                    if c_in == 1:
                        contrib = wt * xt                      # outer product on the VPU
                    else:
                        contrib = jnp.dot(wt, xt, preferred_element_type=jnp.float32)
                    y = contrib if y is None else y + contrib
            # (conv-bias + folded BN) bias, ReLU, zero halo / invalid / cross-batch lanes
            y = jnp.maximum(y + b_ref[...], 0.0) * mask
            if li + 1 < n_layers:
                # store only the 128-aligned payload; margins stay zero across layers
                x_scr[0:c_out, P0:P0 + Npay] = y

        # per-batch max normalization: multiply by the reciprocal of each segment's max
        for j in range(Bt):
            seg = y[:, j * Lseg:(j + 1) * Lseg]
            m = jnp.max(jnp.max(seg, axis=1, keepdims=True), axis=0, keepdims=True)
            out_ref[:, j * Lseg:(j + 1) * Lseg] = seg * pl.reciprocal(m, approx=False)

    return kernel


# -------------------------- one-time host-side parameter prep --------------------------
def prepare_params(params):
    """Fold conv bias + eval BatchNorm into (w2d, bias) once; pack tap-major weights."""
    K = params["K"]
    layers = []
    for layer in params["layers"]:
        w, s, bias = layer["weight"], layer["scale"], layer["bias"]
        c_out, c_in = int(w.shape[0]), int(w.shape[1])
        # column block t = kh*K + kw holds the (c_out, c_in) tap, matching the kernel loop
        w2d = (jnp.transpose(w, (0, 2, 3, 1)).reshape(c_out, K * K * c_in)
               * s[:, None]).astype(jnp.float32)
        bcol = bias.reshape(c_out, 1).astype(jnp.float32)
        layers.append(dict(w2d=w2d, bias=bcol, c_in=c_in, c_out=c_out))
    return dict(pinv_fb=params["pinv_fb"].astype(jnp.float32), K=K, layers=layers)


# --------------------------------------- forward ---------------------------------------
def pinv_conv_forward(prepared, melspec, batch_block=None):
    B, _, n_mels, T = melspec.shape
    pinv_fb = prepared["pinv_fb"]
    H = pinv_fb.shape[0]                              # n_stft
    K = prepared["K"]
    pad = K // 2
    W = T
    Wp = W + 2 * pad                                  # flat row stride (includes halo cols)

    Bt = B if batch_block is None else int(batch_block)
    assert B % Bt == 0, "batch must be divisible by batch_block"
    nb = B // Bt

    M = (H - 1) * Wp + W                              # last valid flat output index + 1
    off = pad * Wp + pad                              # max |tap shift|
    Lseg = _round_up(M + off)                         # per-batch lane segment (128-aligned)
    P0 = _round_up(off)                               # leading zero margin
    Ppost = _round_up(off)                            # trailing zero margin
    Npay = Bt * Lseg                                  # payload lanes per grid step
    Ltot = P0 + Npay + Ppost
    C_max = max(max(l["c_in"], l["c_out"]) for l in prepared["layers"])

    # mel -> (nb, n_mels, Bt*Wp): each batch's (n_mels, T) zero-padded to Wp lanes
    mel = melspec.reshape(B, n_mels, T).astype(jnp.float32)
    mel = jnp.pad(mel, ((0, 0), (0, 0), (0, Wp - W)))
    mel = mel.reshape(nb, Bt, n_mels, Wp).transpose(0, 2, 1, 3).reshape(nb, n_mels, Bt * Wp)

    # validity mask over payload lanes (numpy -> baked constant, no per-call XLA work)
    q = np.arange(Lseg)
    seg_valid = ((q < M) & (q % Wp < W)).astype(np.float32)
    mask = jnp.asarray(np.tile(seg_valid, Bt).reshape(1, Npay))

    layer_dims = []
    inputs = [mel, pinv_fb]
    in_specs = [
        pl.BlockSpec((None, n_mels, Bt * Wp), lambda i: (i, 0, 0)),
        pl.BlockSpec((H, n_mels), lambda i: (0, 0)),
    ]
    for l in prepared["layers"]:
        inputs += [l["w2d"], l["bias"]]
        in_specs += [pl.BlockSpec(l["w2d"].shape, lambda i: (0, 0)),
                     pl.BlockSpec(l["bias"].shape, lambda i: (0, 0))]
        layer_dims.append((l["c_in"], l["c_out"]))
    inputs.append(mask)
    in_specs.append(pl.BlockSpec((1, Npay), lambda i: (0, 0)))

    c_last = layer_dims[-1][1]                        # == 1 by construction
    kernel = _make_fused_kernel(tuple(layer_dims), K, Wp, H, Bt, Lseg, M, P0, Npay)

    flops = nb * (2 * H * n_mels * Bt * Wp
                  + sum(2 * co * ci * K * K * Npay for ci, co in layer_dims))
    bytes_acc = 4 * (melspec.size + pinv_fb.size + mask.size + nb * c_last * Npay
                     + sum(l["w2d"].size + l["bias"].size for l in prepared["layers"]))

    out_flat = pl.pallas_call(
        kernel,
        out_shape=jax.ShapeDtypeStruct((nb, c_last, Npay), jnp.float32),
        grid=(nb,),
        in_specs=in_specs,
        out_specs=pl.BlockSpec((None, c_last, Npay), lambda i: (i, 0, 0)),
        scratch_shapes=[pltpu.VMEM((C_max, Ltot), jnp.float32)],
        compiler_params=pltpu.CompilerParams(dimension_semantics=("parallel",)),
        cost_estimate=pl.CostEstimate(flops=flops, transcendentals=0,
                                      bytes_accessed=bytes_acc),
    )(*inputs)

    # un-flatten: (nb, 1, Bt*Lseg) -> (B, Lseg) -> (B, H, Wp) -> drop halo cols
    out = out_flat.reshape(B, Lseg)[:, :H * Wp].reshape(B, H, Wp)[:, :, :W]
    return out[:, None, :, :]


# --------------------------------------- params ---------------------------------------
def init_params(key, hparams):
    conv_channels = list(hparams["conv_channels"])
    out_channels = conv_channels + conv_channels[::-1] + [1]
    in_channels = out_channels[::-1]
    in_channels = (in_channels[: len(out_channels) // 2 + 1]
                   + out_channels[len(out_channels) // 2:-1])
    K = hparams["conv_kernel_size"]
    n_mels, n_stft = hparams["n_mels"], hparams["n_stft"]

    # deterministic synthetic triangular mel filterbank (n_mels, n_stft) and its pinv
    freqs = np.arange(n_stft, dtype=np.float32)
    centers = np.linspace(0.0, n_stft - 1, n_mels, dtype=np.float32)
    width = (n_stft - 1) / (n_mels - 1)
    melfb = np.maximum(0.0, 1.0 - np.abs(freqs[None, :] - centers[:, None]) / width)
    pinv_fb = jnp.asarray(np.linalg.pinv(melfb), dtype=jnp.float32)     # (n_stft, n_mels)

    eps = 1e-5
    layers = []
    for cin, cout in zip(in_channels, out_channels):
        key, kw, kb, kg, kbeta = jax.random.split(key, 5)
        bound = 1.0 / np.sqrt(cin * K * K)
        w = jax.random.uniform(kw, (cout, cin, K, K), jnp.float32, -bound, bound)
        conv_b = jax.random.uniform(kb, (cout,), jnp.float32, -bound, bound)
        gamma = jax.random.uniform(kg, (cout,), jnp.float32, 0.5, 1.5)
        beta = 0.1 * jax.random.normal(kbeta, (cout,), jnp.float32)
        running_mean = jnp.zeros((cout,), jnp.float32)
        running_var = jnp.ones((cout,), jnp.float32)
        scale = gamma / jnp.sqrt(running_var + eps)
        bias = beta + scale * (conv_b - running_mean)   # fold conv bias + BN (eval)
        layers.append(dict(weight=w, scale=scale, bias=bias))
    return dict(pinv_fb=pinv_fb, K=K, layers=layers)


# ------------------------------ pure-JAX reference model ------------------------------
def reference_forward(params, melspec):
    B = melspec.shape[0]
    x = jnp.einsum("sm,bcmt->bcst", params["pinv_fb"], melspec)
    for layer in params["layers"]:
        y = jax.lax.conv_general_dilated(
            x, layer["weight"], window_strides=(1, 1), padding="SAME",
            dimension_numbers=("NCHW", "OIHW", "NCHW"))
        y = y * layer["scale"][None, :, None, None] + layer["bias"][None, :, None, None]
        x = jnp.maximum(y, 0.0)
    x_max = jnp.max(x.reshape(B, -1), axis=1)
    return x / x_max[:, None, None, None]


if __name__ == "__main__":
    hparams = dict(conv_channels=[4, 8], conv_kernel_size=3, n_mels=8, n_stft=16)
    B, T = 2, 16

    key = jax.random.PRNGKey(0)
    pkey, xkey = jax.random.split(key)
    params = init_params(pkey, hparams)
    prepared = prepare_params(params)                 # one-time weight folding / packing
    # mel spectrogram in dB, normalized to [0, 1]
    melspec = jax.random.uniform(xkey, (B, 1, hparams["n_mels"], T), jnp.float32)

    out = pinv_conv_forward(prepared, melspec)
    out = jax.block_until_ready(out)

    ref = reference_forward(params, melspec)
    np.testing.assert_allclose(np.asarray(out), np.asarray(ref), rtol=1e-3, atol=1e-4)
    print("KERNEL_OK")
</pallas_src>

<mosaic_0001>
module attributes {stable_mosaic.version = 11 : i64} {
  func.func @kernel(%arg0: i32, %arg1: memref<1x8x36xf32, #tpu.memory_space<vmem>>, %arg2: memref<16x8xf32, #tpu.memory_space<vmem>>, %arg3: memref<4x9xf32, #tpu.memory_space<vmem>>, %arg4: memref<4x1xf32, #tpu.memory_space<vmem>>, %arg5: memref<8x36xf32, #tpu.memory_space<vmem>>, %arg6: memref<8x1xf32, #tpu.memory_space<vmem>>, %arg7: memref<8x72xf32, #tpu.memory_space<vmem>>, %arg8: memref<8x1xf32, #tpu.memory_space<vmem>>, %arg9: memref<4x72xf32, #tpu.memory_space<vmem>>, %arg10: memref<4x1xf32, #tpu.memory_space<vmem>>, %arg11: memref<1x36xf32, #tpu.memory_space<vmem>>, %arg12: memref<1x1xf32, #tpu.memory_space<vmem>>, %arg13: memref<1x768xf32, #tpu.memory_space<vmem>>, %arg14: memref<1x1x768xf32, #tpu.memory_space<vmem>>, %arg15: memref<8x1024xf32, #tpu.memory_space<vmem>>) attributes {dimension_semantics = [#tpu.dimension_semantics<parallel>], iteration_bounds = array<i64: 1>, scalar_prefetch = 0 : i64, scratch_operands = 1 : i64, tpu.core_type = #tpu.core_type<tc>, window_params = [{transform_indices = @transform_0, window_bounds = array<i64: 1, 8, 36>}, {pipeline_mode = #tpu.pipeline_mode<synchronous>, transform_indices = @transform_1, window_bounds = array<i64: 16, 8>}, {pipeline_mode = #tpu.pipeline_mode<synchronous>, transform_indices = @transform_2, window_bounds = array<i64: 4, 9>}, {pipeline_mode = #tpu.pipeline_mode<synchronous>, transform_indices = @transform_3, window_bounds = array<i64: 4, 1>}, {pipeline_mode = #tpu.pipeline_mode<synchronous>, transform_indices = @transform_4, window_bounds = array<i64: 8, 36>}, {pipeline_mode = #tpu.pipeline_mode<synchronous>, transform_indices = @transform_5, window_bounds = array<i64: 8, 1>}, {pipeline_mode = #tpu.pipeline_mode<synchronous>, transform_indices = @transform_6, window_bounds = array<i64: 8, 72>}, {pipeline_mode = #tpu.pipeline_mode<synchronous>, transform_indices = @transform_7, window_bounds = array<i64: 8, 1>}, {pipeline_mode = #tpu.pipeline_mode<synchronous>, transform_indices = @transform_8, window_bounds = array<i64: 4, 72>}, {pipeline_mode = #tpu.pipeline_mode<synchronous>, transform_indices = @transform_9, window_bounds = array<i64: 4, 1>}, {pipeline_mode = #tpu.pipeline_mode<synchronous>, transform_indices = @transform_10, window_bounds = array<i64: 1, 36>}, {pipeline_mode = #tpu.pipeline_mode<synchronous>, transform_indices = @transform_11, window_bounds = array<i64: 1, 1>}, {pipeline_mode = #tpu.pipeline_mode<synchronous>, transform_indices = @transform_12, window_bounds = array<i64: 1, 768>}, {transform_indices = @transform_13, window_bounds = array<i64: 1, 1, 768>}]} {
    %cst = arith.constant 0.000000e+00 : f32
    %0 = vector.broadcast %cst : f32 to vector<8x1024xf32>
    %c0 = arith.constant 0 : index
    %c0_0 = arith.constant 0 : index
    %1 = vector.load %arg15[%c0, %c0_0] : memref<8x1024xf32, #tpu.memory_space<vmem>>, vector<8x1024xf32>
    tpu.vector_store %arg15[%c0, %c0_0], %0 {strides = array<i32>} : memref<8x1024xf32, #tpu.memory_space<vmem>>, vector<8x1024xf32>,
    %c0_1 = arith.constant 0 : index
    %c0_2 = arith.constant 0 : index
    %2 = vector.load %arg2[%c0_1, %c0_2] : memref<16x8xf32, #tpu.memory_space<vmem>>, vector<16x8xf32>
    %c0_3 = arith.constant 0 : index
    %c0_4 = arith.constant 0 : index
    %c0_5 = arith.constant 0 : index
    %3 = vector.load %arg1[%c0_3, %c0_4, %c0_5] : memref<1x8x36xf32, #tpu.memory_space<vmem>>, vector<1x8x36xf32>
    %4 = vector.shape_cast %3 : vector<1x8x36xf32> to vector<8x36xf32>
    %cst_6 = arith.constant dense<0.000000e+00> : vector<16x36xf32>
    %5 = tpu.matmul %2, %4, %cst_6 {dimension_numbers = #tpu.dot_dimension_numbers<[1], [0], [0], [1], [0, 0, 1, 1], [], []>} : vector<16x8xf32>, vector<8x36xf32>, vector<16x36xf32> -> vector<16x36xf32>
    %6 = vector.extract_strided_slice %5 {offsets = [0, 0], sizes = [1, 18], strides = [1, 1]} : vector<16x36xf32> to vector<1x18xf32>
    %c0_7 = arith.constant 0 : index
    %c128 = arith.constant 128 : index
    %7 = vector.load %arg15[%c0_7, %c128] : memref<8x1024xf32, #tpu.memory_space<vmem>>, vector<1x18xf32>
    tpu.vector_store %arg15[%c0_7, %c128], %6 {strides = array<i32>} : memref<8x1024xf32, #tpu.memory_space<vmem>>, vector<1x18xf32>,
    %8 = vector.extract_strided_slice %5 {offsets = [1, 0], sizes = [1, 18], strides = [1, 1]} : vector<16x36xf32> to vector<1x18xf32>
    %c0_8 = arith.constant 0 : index
    %c146 = arith.constant 146 : index
    %9 = vector.load %arg15[%c0_8, %c146] : memref<8x1024xf32, #tpu.memory_space<vmem>>, vector<1x18xf32>
    tpu.vector_store %arg15[%c0_8, %c146], %8 {strides = array<i32>} : memref<8x1024xf32, #tpu.memory_space<vmem>>, vector<1x18xf32>,
    %10 = vector.extract_strided_slice %5 {offsets = [2, 0], sizes = [1, 18], strides = [1, 1]} : vector<16x36xf32> to vector<1x18xf32>
    %c0_9 = arith.constant 0 : index
    %c164 = arith.constant 164 : index
    %11 = vector.load %arg15[%c0_9, %c164] : memref<8x1024xf32, #tpu.memory_space<vmem>>, vector<1x18xf32>
    tpu.vector_store %arg15[%c0_9, %c164], %10 {strides = array<i32>} : memref<8x1024xf32, #tpu.memory_space<vmem>>, vector<1x18xf32>,
    %12 = vector.extract_strided_slice %5 {offsets = [3, 0], sizes = [1, 18], strides = [1, 1]} : vector<16x36xf32> to vector<1x18xf32>
    %c0_10 = arith.constant 0 : index
    %c182 = arith.constant 182 : index
    %13 = vector.load %arg15[%c0_10, %c182] : memref<8x1024xf32, #tpu.memory_space<vmem>>, vector<1x18xf32>
    tpu.vector_store %arg15[%c0_10, %c182], %12 {strides = array<i32>} : memref<8x1024xf32, #tpu.memory_space<vmem>>, vector<1x18xf32>,
    %14 = vector.extract_strided_slice %5 {offsets = [4, 0], sizes = [1, 18], strides = [1, 1]} : vector<16x36xf32> to vector<1x18xf32>
    %c0_11 = arith.constant 0 : index
    %c200 = arith.constant 200 : index
    %15 = vector.load %arg15[%c0_11, %c200] : memref<8x1024xf32, #tpu.memory_space<vmem>>, vector<1x18xf32>
    tpu.vector_store %arg15[%c0_11, %c200], %14 {strides = array<i32>} : memref<8x1024xf32, #tpu.memory_space<vmem>>, vector<1x18xf32>,
    %16 = vector.extract_strided_slice %5 {offsets = [5, 0], sizes = [1, 18], strides = [1, 1]} : vector<16x36xf32> to vector<1x18xf32>
    %c0_12 = arith.constant 0 : index
    %c218 = arith.constant 218 : index
    %17 = vector.load %arg15[%c0_12, %c218] : memref<8x1024xf32, #tpu.memory_space<vmem>>, vector<1x18xf32>
    tpu.vector_store %arg15[%c0_12, %c218], %16 {strides = array<i32>} : memref<8x1024xf32, #tpu.memory_space<vmem>>, vector<1x18xf32>,
    %18 = vector.extract_strided_slice %5 {offsets = [6, 0], sizes = [1, 18], strides = [1, 1]} : vector<16x36xf32> to vector<1x18xf32>
    %c0_13 = arith.constant 0 : index
    %c236 = arith.constant 236 : index
    %19 = vector.load %arg15[%c0_13, %c236] : memref<8x1024xf32, #tpu.memory_space<vmem>>, vector<1x18xf32>
    tpu.vector_store %arg15[%c0_13, %c236], %18 {strides = array<i32>} : memref<8x1024xf32, #tpu.memory_space<vmem>>, vector<1x18xf32>,
    %20 = vector.extract_strided_slice %5 {offsets = [7, 0], sizes = [1, 18], strides = [1, 1]} : vector<16x36xf32> to vector<1x18xf32>
    %c0_14 = arith.constant 0 : index
    %c254 = arith.constant 254 : index
    %21 = vector.load %arg15[%c0_14, %c254] : memref<8x1024xf32, #tpu.memory_space<vmem>>, vector<1x18xf32>
    tpu.vector_store %arg15[%c0_14, %c254], %20 {strides = array<i32>} : memref<8x1024xf32, #tpu.memory_space<vmem>>, vector<1x18xf32>,
    %22 = vector.extract_strided_slice %5 {offsets = [8, 0], sizes = [1, 18], strides = [1, 1]} : vector<16x36xf32> to vector<1x18xf32>
    %c0_15 = arith.constant 0 : index
    %c272 = arith.constant 272 : index
    %23 = vector.load %arg15[%c0_15, %c272] : memref<8x1024xf32, #tpu.memory_space<vmem>>, vector<1x18xf32>
    tpu.vector_store %arg15[%c0_15, %c272], %22 {strides = array<i32>} : memref<8x1024xf32, #tpu.memory_space<vmem>>, vector<1x18xf32>,
    %24 = vector.extract_strided_slice %5 {offsets = [9, 0], sizes = [1, 18], strides = [1, 1]} : vector<16x36xf32> to vector<1x18xf32>
    %c0_16 = arith.constant 0 : index
    %c290 = arith.constant 290 : index
    %25 = vector.load %arg15[%c0_16, %c290] : memref<8x1024xf32, #tpu.memory_space<vmem>>, vector<1x18xf32>
    tpu.vector_store %arg15[%c0_16, %c290], %24 {strides = array<i32>} : memref<8x1024xf32, #tpu.memory_space<vmem>>, vector<1x18xf32>,
    %26 = vector.extract_strided_slice %5 {offsets = [10, 0], sizes = [1, 18], strides = [1, 1]} : vector<16x36xf32> to vector<1x18xf32>
    %c0_17 = arith.constant 0 : index
    %c308 = arith.constant 308 : index
    %27 = vector.load %arg15[%c0_17, %c308] : memref<8x1024xf32, #tpu.memory_space<vmem>>, vector<1x18xf32>
    tpu.vector_store %arg15[%c0_17, %c308], %26 {strides = array<i32>} : memref<8x1024xf32, #tpu.memory_space<vmem>>, vector<1x18xf32>,
    %28 = vector.extract_strided_slice %5 {offsets = [11, 0], sizes = [1, 18], strides = [1, 1]} : vector<16x36xf32> to vector<1x18xf32>
    %c0_18 = arith.constant 0 : index
    %c326 = arith.constant 326 : index
    %29 = vector.load %arg15[%c0_18, %c326] : memref<8x1024xf32, #tpu.memory_space<vmem>>, vector<1x18xf32>
    tpu.vector_store %arg15[%c0_18, %c326], %28 {strides = array<i32>} : memref<8x1024xf32, #tpu.memory_space<vmem>>, vector<1x18xf32>,
    %30 = vector.extract_strided_slice %5 {offsets = [12, 0], sizes = [1, 18], strides = [1, 1]} : vector<16x36xf32> to vector<1x18xf32>
    %c0_19 = arith.constant 0 : index
    %c344 = arith.constant 344 : index
    %31 = vector.load %arg15[%c0_19, %c344] : memref<8x1024xf32, #tpu.memory_space<vmem>>, vector<1x18xf32>
    tpu.vector_store %arg15[%c0_19, %c344], %30 {strides = array<i32>} : memref<8x1024xf32, #tpu.memory_space<vmem>>, vector<1x18xf32>,
    %32 = vector.extract_strided_slice %5 {offsets = [13, 0], sizes = [1, 18], strides = [1, 1]} : vector<16x36xf32> to vector<1x18xf32>
    %c0_20 = arith.constant 0 : index
    %c362 = arith.constant 362 : index
    %33 = vector.load %arg15[%c0_20, %c362] : memref<8x1024xf32, #tpu.memory_space<vmem>>, vector<1x18xf32>
    tpu.vector_store %arg15[%c0_20, %c362], %32 {strides = array<i32>} : memref<8x1024xf32, #tpu.memory_space<vmem>>, vector<1x18xf32>,
    %34 = vector.extract_strided_slice %5 {offsets = [14, 0], sizes = [1, 18], strides = [1, 1]} : vector<16x36xf32> to vector<1x18xf32>
    %c0_21 = arith.constant 0 : index
    %c380 = arith.constant 380 : index
    %35 = vector.load %arg15[%c0_21, %c380] : memref<8x1024xf32, #tpu.memory_space<vmem>>, vector<1x18xf32>
    tpu.vector_store %arg15[%c0_21, %c380], %34 {strides = array<i32>} : memref<8x1024xf32, #tpu.memory_space<vmem>>, vector<1x18xf32>,
    %36 = vector.extract_strided_slice %5 {offsets = [15, 0], sizes = [1, 18], strides = [1, 1]} : vector<16x36xf32> to vector<1x18xf32>
    %c0_22 = arith.constant 0 : index
    %c398 = arith.constant 398 : index
    %37 = vector.load %arg15[%c0_22, %c398] : memref<8x1024xf32, #tpu.memory_space<vmem>>, vector<1x18xf32>
    tpu.vector_store %arg15[%c0_22, %c398], %36 {strides = array<i32>} : memref<8x1024xf32, #tpu.memory_space<vmem>>, vector<1x18xf32>,
    %38 = vector.extract_strided_slice %5 {offsets = [0, 18], sizes = [1, 18], strides = [1, 1]} : vector<16x36xf32> to vector<1x18xf32>
    %c0_23 = arith.constant 0 : index
    %c512 = arith.constant 512 : index
    %39 = vector.load %arg15[%c0_23, %c512] : memref<8x1024xf32, #tpu.memory_space<vmem>>, vector<1x18xf32>
    tpu.vector_store %arg15[%c0_23, %c512], %38 {strides = array<i32>} : memref<8x1024xf32, #tpu.memory_space<vmem>>, vector<1x18xf32>,
    %40 = vector.extract_strided_slice %5 {offsets = [1, 18], sizes = [1, 18], strides = [1, 1]} : vector<16x36xf32> to vector<1x18xf32>
    %c0_24 = arith.constant 0 : index
    %c530 = arith.constant 530 : index
    %41 = vector.load %arg15[%c0_24, %c530] : memref<8x1024xf32, #tpu.memory_space<vmem>>, vector<1x18xf32>
    tpu.vector_store %arg15[%c0_24, %c530], %40 {strides = array<i32>} : memref<8x1024xf32, #tpu.memory_space<vmem>>, vector<1x18xf32>,
    %42 = vector.extract_strided_slice %5 {offsets = [2, 18], sizes = [1, 18], strides = [1, 1]} : vector<16x36xf32> to vector<1x18xf32>
    %c0_25 = arith.constant 0 : index
    %c548 = arith.constant 548 : index
    %43 = vector.load %arg15[%c0_25, %c548] : memref<8x1024xf32, #tpu.memory_space<vmem>>, vector<1x18xf32>
    tpu.vector_store %arg15[%c0_25, %c548], %42 {strides = array<i32>} : memref<8x1024xf32, #tpu.memory_space<vmem>>, vector<1x18xf32>,
    %44 = vector.extract_strided_slice %5 {offsets = [3, 18], sizes = [1, 18], strides = [1, 1]} : vector<16x36xf32> to vector<1x18xf32>
    %c0_26 = arith.constant 0 : index
    %c566 = arith.constant 566 : index
    %45 = vector.load %arg15[%c0_26, %c566] : memref<8x1024xf32, #tpu.memory_space<vmem>>, vector<1x18xf32>
    tpu.vector_store %arg15[%c0_26, %c566], %44 {strides = array<i32>} : memref<8x1024xf32, #tpu.memory_space<vmem>>, vector<1x18xf32>,
    %46 = vector.extract_strided_slice %5 {offsets = [4, 18], sizes = [1, 18], strides = [1, 1]} : vector<16x36xf32> to vector<1x18xf32>
    %c0_27 = arith.constant 0 : index
    %c584 = arith.constant 584 : index
    %47 = vector.load %arg15[%c0_27, %c584] : memref<8x1024xf32, #tpu.memory_space<vmem>>, vector<1x18xf32>
    tpu.vector_store %arg15[%c0_27, %c584], %46 {strides = array<i32>} : memref<8x1024xf32, #tpu.memory_space<vmem>>, vector<1x18xf32>,
    %48 = vector.extract_strided_slice %5 {offsets = [5, 18], sizes = [1, 18], strides = [1, 1]} : vector<16x36xf32> to vector<1x18xf32>
    %c0_28 = arith.constant 0 : index
    %c602 = arith.constant 602 : index
    %49 = vector.load %arg15[%c0_28, %c602] : memref<8x1024xf32, #tpu.memory_space<vmem>>, vector<1x18xf32>
    tpu.vector_store %arg15[%c0_28, %c602], %48 {strides = array<i32>} : memref<8x1024xf32, #tpu.memory_space<vmem>>, vector<1x18xf32>,
    %50 = vector.extract_strided_slice %5 {offsets = [6, 18], sizes = [1, 18], strides = [1, 1]} : vector<16x36xf32> to vector<1x18xf32>
    %c0_29 = arith.constant 0 : index
    %c620 = arith.constant 620 : index
    %51 = vector.load %arg15[%c0_29, %c620] : memref<8x1024xf32, #tpu.memory_space<vmem>>, vector<1x18xf32>
    tpu.vector_store %arg15[%c0_29, %c620], %50 {strides = array<i32>} : memref<8x1024xf32, #tpu.memory_space<vmem>>, vector<1x18xf32>,
    %52 = vector.extract_strided_slice %5 {offsets = [7, 18], sizes = [1, 18], strides = [1, 1]} : vector<16x36xf32> to vector<1x18xf32>
    %c0_30 = arith.constant 0 : index
    %c638 = arith.constant 638 : index
    %53 = vector.load %arg15[%c0_30, %c638] : memref<8x1024xf32, #tpu.memory_space<vmem>>, vector<1x18xf32>
    tpu.vector_store %arg15[%c0_30, %c638], %52 {strides = array<i32>} : memref<8x1024xf32, #tpu.memory_space<vmem>>, vector<1x18xf32>,
    %54 = vector.extract_strided_slice %5 {offsets = [8, 18], sizes = [1, 18], strides = [1, 1]} : vector<16x36xf32> to vector<1x18xf32>
    %c0_31 = arith.constant 0 : index
    %c656 = arith.constant 656 : index
    %55 = vector.load %arg15[%c0_31, %c656] : memref<8x1024xf32, #tpu.memory_space<vmem>>, vector<1x18xf32>
    tpu.vector_store %arg15[%c0_31, %c656], %54 {strides = array<i32>} : memref<8x1024xf32, #tpu.memory_space<vmem>>, vector<1x18xf32>,
    %56 = vector.extract_strided_slice %5 {offsets = [9, 18], sizes = [1, 18], strides = [1, 1]} : vector<16x36xf32> to vector<1x18xf32>
    %c0_32 = arith.constant 0 : index
    %c674 = arith.constant 674 : index
    %57 = vector.load %arg15[%c0_32, %c674] : memref<8x1024xf32, #tpu.memory_space<vmem>>, vector<1x18xf32>
    tpu.vector_store %arg15[%c0_32, %c674], %56 {strides = array<i32>} : memref<8x1024xf32, #tpu.memory_space<vmem>>, vector<1x18xf32>,
    %58 = vector.extract_strided_slice %5 {offsets = [10, 18], sizes = [1, 18], strides = [1, 1]} : vector<16x36xf32> to vector<1x18xf32>
    %c0_33 = arith.constant 0 : index
    %c692 = arith.constant 692 : index
    %59 = vector.load %arg15[%c0_33, %c692] : memref<8x1024xf32, #tpu.memory_space<vmem>>, vector<1x18xf32>
    tpu.vector_store %arg15[%c0_33, %c692], %58 {strides = array<i32>} : memref<8x1024xf32, #tpu.memory_space<vmem>>, vector<1x18xf32>,
    %60 = vector.extract_strided_slice %5 {offsets = [11, 18], sizes = [1, 18], strides = [1, 1]} : vector<16x36xf32> to vector<1x18xf32>
    %c0_34 = arith.constant 0 : index
    %c710 = arith.constant 710 : index
    %61 = vector.load %arg15[%c0_34, %c710] : memref<8x1024xf32, #tpu.memory_space<vmem>>, vector<1x18xf32>
    tpu.vector_store %arg15[%c0_34, %c710], %60 {strides = array<i32>} : memref<8x1024xf32, #tpu.memory_space<vmem>>, vector<1x18xf32>,
    %62 = vector.extract_strided_slice %5 {offsets = [12, 18], sizes = [1, 18], strides = [1, 1]} : vector<16x36xf32> to vector<1x18xf32>
    %c0_35 = arith.constant 0 : index
    %c728 = arith.constant 728 : index
    %63 = vector.load %arg15[%c0_35, %c728] : memref<8x1024xf32, #tpu.memory_space<vmem>>, vector<1x18xf32>
    tpu.vector_store %arg15[%c0_35, %c728], %62 {strides = array<i32>} : memref<8x1024xf32, #tpu.memory_space<vmem>>, vector<1x18xf32>,
    %64 = vector.extract_strided_slice %5 {offsets = [13, 18], sizes = [1, 18], strides = [1, 1]} : vector<16x36xf32> to vector<1x18xf32>
    %c0_36 = arith.constant 0 : index
    %c746 = arith.constant 746 : index
    %65 = vector.load %arg15[%c0_36, %c746] : memref<8x1024xf32, #tpu.memory_space<vmem>>, vector<1x18xf32>
    tpu.vector_store %arg15[%c0_36, %c746], %64 {strides = array<i32>} : memref<8x1024xf32, #tpu.memory_space<vmem>>, vector<1x18xf32>,
    %66 = vector.extract_strided_slice %5 {offsets = [14, 18], sizes = [1, 18], strides = [1, 1]} : vector<16x36xf32> to vector<1x18xf32>
    %c0_37 = arith.constant 0 : index
    %c764 = arith.constant 764 : index
    %67 = vector.load %arg15[%c0_37, %c764] : memref<8x1024xf32, #tpu.memory_space<vmem>>, vector<1x18xf32>
    tpu.vector_store %arg15[%c0_37, %c764], %66 {strides = array<i32>} : memref<8x1024xf32, #tpu.memory_space<vmem>>, vector<1x18xf32>,
    %68 = vector.extract_strided_slice %5 {offsets = [15, 18], sizes = [1, 18], strides = [1, 1]} : vector<16x36xf32> to vector<1x18xf32>
    %c0_38 = arith.constant 0 : index
    %c782 = arith.constant 782 : index
    %69 = vector.load %arg15[%c0_38, %c782] : memref<8x1024xf32, #tpu.memory_space<vmem>>, vector<1x18xf32>
    tpu.vector_store %arg15[%c0_38, %c782], %68 {strides = array<i32>} : memref<8x1024xf32, #tpu.memory_space<vmem>>, vector<1x18xf32>,
    %c0_39 = arith.constant 0 : index
    %c0_40 = arith.constant 0 : index
    %70 = vector.load %arg13[%c0_39, %c0_40] : memref<1x768xf32, #tpu.memory_space<vmem>>, vector<1x768xf32>
    %c0_41 = arith.constant 0 : index
    %c0_42 = arith.constant 0 : index
    %71 = vector.load %arg3[%c0_41, %c0_42] : memref<4x9xf32, #tpu.memory_space<vmem>>, vector<4x9xf32>
    %c0_43 = arith.constant 0 : index
    %c109 = arith.constant 109 : index
    %72 = vector.load %arg15[%c0_43, %c109] : memref<8x1024xf32, #tpu.memory_space<vmem>>, vector<1x768xf32>
    %73 = vector.extract_strided_slice %71 {offsets = [0, 0], sizes = [4, 1], strides = [1, 1]} : vector<4x9xf32> to vector<4x1xf32>
    %74 = vector.broadcast %73 : vector<4x1xf32> to vector<4x768xf32>
    %75 = vector.broadcast %72 : vector<1x768xf32> to vector<4x768xf32>
    %76 = arith.mulf %74, %75 : vector<4x768xf32>
    %c0_44 = arith.constant 0 : index
    %c110 = arith.constant 110 : index
    %77 = vector.load %arg15[%c0_44, %c110] : memref<8x1024xf32, #tpu.memory_space<vmem>>, vector<1x768xf32>
    %78 = vector.extract_strided_slice %71 {offsets = [0, 1], sizes = [4, 1], strides = [1, 1]} : vector<4x9xf32> to vector<4x1xf32>
    %79 = vector.broadcast %78 : vector<4x1xf32> to vector<4x768xf32>
    %80 = vector.broadcast %77 : vector<1x768xf32> to vector<4x768xf32>
    %81 = arith.mulf %79, %80 : vector<4x768xf32>
    %82 = arith.addf %76, %81 : vector<4x768xf32>
    %c0_45 = arith.constant 0 : index
    %c111 = arith.constant 111 : index
    %83 = vector.load %arg15[%c0_45, %c111] : memref<8x1024xf32, #tpu.memory_space<vmem>>, vector<1x768xf32>
    %84 = vector.extract_strided_slice %71 {offsets = [0, 2], sizes = [4, 1], strides = [1, 1]} : vector<4x9xf32> to vector<4x1xf32>
    %85 = vector.broadcast %84 : vector<4x1xf32> to vector<4x768xf32>
    %86 = vector.broadcast %83 : vector<1x768xf32> to vector<4x768xf32>
    %87 = arith.mulf %85, %86 : vector<4x768xf32>
    %88 = arith.addf %82, %87 : vector<4x768xf32>
    %c0_46 = arith.constant 0 : index
    %c127 = arith.constant 127 : index
    %89 = vector.load %arg15[%c0_46, %c127] : memref<8x1024xf32, #tpu.memory_space<vmem>>, vector<1x768xf32>
    %90 = vector.extract_strided_slice %71 {offsets = [0, 3], sizes = [4, 1], strides = [1, 1]} : vector<4x9xf32> to vector<4x1xf32>
    %91 = vector.broadcast %90 : vector<4x1xf32> to vector<4x768xf32>
    %92 = vector.broadcast %89 : vector<1x768xf32> to vector<4x768xf32>
    %93 = arith.mulf %91, %92 : vector<4x768xf32>
    %94 = arith.addf %88, %93 : vector<4x768xf32>
    %c0_47 = arith.constant 0 : index
    %c128_48 = arith.constant 128 : index
    %95 = vector.load %arg15[%c0_47, %c128_48] : memref<8x1024xf32, #tpu.memory_space<vmem>>, vector<1x768xf32>
    %96 = vector.extract_strided_slice %71 {offsets = [0, 4], sizes = [4, 1], strides = [1, 1]} : vector<4x9xf32> to vector<4x1xf32>
    %97 = vector.broadcast %96 : vector<4x1xf32> to vector<4x768xf32>
    %98 = vector.broadcast %95 : vector<1x768xf32> to vector<4x768xf32>
    %99 = arith.mulf %97, %98 : vector<4x768xf32>
    %100 = arith.addf %94, %99 : vector<4x768xf32>
    %c0_49 = arith.constant 0 : index
    %c129 = arith.constant 129 : index
    %101 = vector.load %arg15[%c0_49, %c129] : memref<8x1024xf32, #tpu.memory_space<vmem>>, vector<1x768xf32>
    %102 = vector.extract_strided_slice %71 {offsets = [0, 5], sizes = [4, 1], strides = [1, 1]} : vector<4x9xf32> to vector<4x1xf32>
    %103 = vector.broadcast %102 : vector<4x1xf32> to vector<4x768xf32>
    %104 = vector.broadcast %101 : vector<1x768xf32> to vector<4x768xf32>
    %105 = arith.mulf %103, %104 : vector<4x768xf32>
    %106 = arith.addf %100, %105 : vector<4x768xf32>
    %c0_50 = arith.constant 0 : index
    %c145 = arith.constant 145 : index
    %107 = vector.load %arg15[%c0_50, %c145] : memref<8x1024xf32, #tpu.memory_space<vmem>>, vector<1x768xf32>
    %108 = vector.extract_strided_slice %71 {offsets = [0, 6], sizes = [4, 1], strides = [1, 1]} : vector<4x9xf32> to vector<4x1xf32>
    %109 = vector.broadcast %108 : vector<4x1xf32> to vector<4x768xf32>
    %110 = vector.broadcast %107 : vector<1x768xf32> to vector<4x768xf32>
    %111 = arith.mulf %109, %110 : vector<4x768xf32>
    %112 = arith.addf %106, %111 : vector<4x768xf32>
    %c0_51 = arith.constant 0 : index
    %c146_52 = arith.constant 146 : index
    %113 = vector.load %arg15[%c0_51, %c146_52] : memref<8x1024xf32, #tpu.memory_space<vmem>>, vector<1x768xf32>
    %114 = vector.extract_strided_slice %71 {offsets = [0, 7], sizes = [4, 1], strides = [1, 1]} : vector<4x9xf32> to vector<4x1xf32>
    %115 = vector.broadcast %114 : vector<4x1xf32> to vector<4x768xf32>
    %116 = vector.broadcast %113 : vector<1x768xf32> to vector<4x768xf32>
    %117 = arith.mulf %115, %116 : vector<4x768xf32>
    %118 = arith.addf %112, %117 : vector<4x768xf32>
    %c0_53 = arith.constant 0 : index
    %c147 = arith.constant 147 : index
    %119 = vector.load %arg15[%c0_53, %c147] : memref<8x1024xf32, #tpu.memory_space<vmem>>, vector<1x768xf32>
    %120 = vector.extract_strided_slice %71 {offsets = [0, 8], sizes = [4, 1], strides = [1, 1]} : vector<4x9xf32> to vector<4x1xf32>
    %121 = vector.broadcast %120 : vector<4x1xf32> to vector<4x768xf32>
    %122 = vector.broadcast %119 : vector<1x768xf32> to vector<4x768xf32>
    %123 = arith.mulf %121, %122 : vector<4x768xf32>
    %124 = arith.addf %118, %123 : vector<4x768xf32>
    %c0_54 = arith.constant 0 : index
    %c0_55 = arith.constant 0 : index
    %125 = vector.load %arg4[%c0_54, %c0_55] : memref<4x1xf32, #tpu.memory_space<vmem>>, vector<4x1xf32>
    %126 = vector.broadcast %125 : vector<4x1xf32> to vector<4x768xf32>
    %127 = arith.addf %124, %126 : vector<4x768xf32>
    %cst_56 = arith.constant 0.000000e+00 : f32
    %128 = vector.broadcast %cst_56 : f32 to vector<4x768xf32>
    %129 = arith.maximumf %127, %128 : vector<4x768xf32>
    %130 = vector.broadcast %70 : vector<1x768xf32> to vector<4x768xf32>
    %131 = arith.mulf %129, %130 : vector<4x768xf32>
    %c0_57 = arith.constant 0 : index
    %c128_58 = arith.constant 128 : index
    %132 = vector.load %arg15[%c0_57, %c128_58] : memref<8x1024xf32, #tpu.memory_space<vmem>>, vector<4x768xf32>
    tpu.vector_store %arg15[%c0_57, %c128_58], %131 {strides = array<i32>} : memref<8x1024xf32, #tpu.memory_space<vmem>>, vector<4x768xf32>,
    %c0_59 = arith.constant 0 : index
    %c0_60 = arith.constant 0 : index
    %133 = vector.load %arg5[%c0_59, %c0_60] : memref<8x36xf32, #tpu.memory_space<vmem>>, vector<8x36xf32>
    %c0_61 = arith.constant 0 : index
    %c109_62 = arith.constant 109 : index
    %134 = vector.load %arg15[%c0_61, %c109_62] : memref<8x1024xf32, #tpu.memory_space<vmem>>, vector<4x768xf32>
    %135 = vector.extract_strided_slice %133 {offsets = [0, 0], sizes = [8, 4], strides = [1, 1]} : vector<8x36xf32> to vector<8x4xf32>
    %cst_63 = arith.constant dense<0.000000e+00> : vector<8x768xf32>
    %136 = tpu.matmul %135, %134, %cst_63 {dimension_numbers = #tpu.dot_dimension_numbers<[1], [0], [0], [1], [0, 0, 1, 1], [], []>} : vector<8x4xf32>, vector<4x768xf32>, vector<8x768xf32> -> vector<8x768xf32>
    %c0_64 = arith.constant 0 : index
    %c110_65 = arith.constant 110 : index
    %137 = vector.load %arg15[%c0_64, %c110_65] : memref<8x1024xf32, #tpu.memory_space<vmem>>, vector<4x768xf32>
    %138 = vector.extract_strided_slice %133 {offsets = [0, 4], sizes = [8, 4], strides = [1, 1]} : vector<8x36xf32> to vector<8x4xf32>
    %cst_66 = arith.constant dense<0.000000e+00> : vector<8x768xf32>
    %139 = tpu.matmul %138, %137, %cst_66 {dimension_numbers = #tpu.dot_dimension_numbers<[1], [0], [0], [1], [0, 0, 1, 1], [], []>} : vector<8x4xf32>, vector<4x768xf32>, vector<8x768xf32> -> vector<8x768xf32>
    %140 = arith.addf %136, %139 : vector<8x768xf32>
    %c0_67 = arith.constant 0 : index
    %c111_68 = arith.constant 111 : index
    %141 = vector.load %arg15[%c0_67, %c111_68] : memref<8x1024xf32, #tpu.memory_space<vmem>>, vector<4x768xf32>
    %142 = vector.extract_strided_slice %133 {offsets = [0, 8], sizes = [8, 4], strides = [1, 1]} : vector<8x36xf32> to vector<8x4xf32>
    %cst_69 = arith.constant dense<0.000000e+00> : vector<8x768xf32>
    %143 = tpu.matmul %142, %141, %cst_69 {dimension_numbers = #tpu.dot_dimension_numbers<[1], [0], [0], [1], [0, 0, 1, 1], [], []>} : vector<8x4xf32>, vector<4x768xf32>, vector<8x768xf32> -> vector<8x768xf32>
    %144 = arith.addf %140, %143 : vector<8x768xf32>
    %c0_70 = arith.constant 0 : index
    %c127_71 = arith.constant 127 : index
    %145 = vector.load %arg15[%c0_70, %c127_71] : memref<8x1024xf32, #tpu.memory_space<vmem>>, vector<4x768xf32>
    %146 = vector.extract_strided_slice %133 {offsets = [0, 12], sizes = [8, 4], strides = [1, 1]} : vector<8x36xf32> to vector<8x4xf32>
    %cst_72 = arith.constant dense<0.000000e+00> : vector<8x768xf32>
    %147 = tpu.matmul %146, %145, %cst_72 {dimension_numbers = #tpu.dot_dimension_numbers<[1], [0], [0], [1], [0, 0, 1, 1], [], []>} : vector<8x4xf32>, vector<4x768xf32>, vector<8x768xf32> -> vector<8x768xf32>
    %148 = arith.addf %144, %147 : vector<8x768xf32>
    %c0_73 = arith.constant 0 : index
    %c128_74 = arith.constant 128 : index
    %149 = vector.load %arg15[%c0_73, %c128_74] : memref<8x1024xf32, #tpu.memory_space<vmem>>, vector<4x768xf32>
    %150 = vector.extract_strided_slice %133 {offsets = [0, 16], sizes = [8, 4], strides = [1, 1]} : vector<8x36xf32> to vector<8x4xf32>
    %cst_75 = arith.constant dense<0.000000e+00> : vector<8x768xf32>
    %151 = tpu.matmul %150, %149, %cst_75 {dimension_numbers = #tpu.dot_dimension_numbers<[1], [0], [0], [1], [0, 0, 1, 1], [], []>} : vector<8x4xf32>, vector<4x768xf32>, vector<8x768xf32> -> vector<8x768xf32>
    %152 = arith.addf %148, %151 : vector<8x768xf32>
    %c0_76 = arith.constant 0 : index
    %c129_77 = arith.constant 129 : index
    %153 = vector.load %arg15[%c0_76, %c129_77] : memref<8x1024xf32, #tpu.memory_space<vmem>>, vector<4x768xf32>
    %154 = vector.extract_strided_slice %133 {offsets = [0, 20], sizes = [8, 4], strides = [1, 1]} : vector<8x36xf32> to vector<8x4xf32>
    %cst_78 = arith.constant dense<0.000000e+00> : vector<8x768xf32>
    %155 = tpu.matmul %154, %153, %cst_78 {dimension_numbers = #tpu.dot_dimension_numbers<[1], [0], [0], [1], [0, 0, 1, 1], [], []>} : vector<8x4xf32>, vector<4x768xf32>, vector<8x768xf32> -> vector<8x768xf32>
    %156 = arith.addf %152, %155 : vector<8x768xf32>
    %c0_79 = arith.constant 0 : index
    %c145_80 = arith.constant 145 : index
    %157 = vector.load %arg15[%c0_79, %c145_80] : memref<8x1024xf32, #tpu.memory_space<vmem>>, vector<4x768xf32>
    %158 = vector.extract_strided_slice %133 {offsets = [0, 24], sizes = [8, 4], strides = [1, 1]} : vector<8x36xf32> to vector<8x4xf32>
    %cst_81 = arith.constant dense<0.000000e+00> : vector<8x768xf32>
    %159 = tpu.matmul %158, %157, %cst_81 {dimension_numbers = #tpu.dot_dimension_numbers<[1], [0], [0], [1], [0, 0, 1, 1], [], []>} : vector<8x4xf32>, vector<4x768xf32>, vector<8x768xf32> -> vector<8x768xf32>
    %160 = arith.addf %156, %159 : vector<8x768xf32>
    %c0_82 = arith.constant 0 : index
    %c146_83 = arith.constant 146 : index
    %161 = vector.load %arg15[%c0_82, %c146_83] : memref<8x1024xf32, #tpu.memory_space<vmem>>, vector<4x768xf32>
    %162 = vector.extract_strided_slice %133 {offsets = [0, 28], sizes = [8, 4], strides = [1, 1]} : vector<8x36xf32> to vector<8x4xf32>
    %cst_84 = arith.constant dense<0.000000e+00> : vector<8x768xf32>
    %163 = tpu.matmul %162, %161, %cst_84 {dimension_numbers = #tpu.dot_dimension_numbers<[1], [0], [0], [1], [0, 0, 1, 1], [], []>} : vector<8x4xf32>, vector<4x768xf32>, vector<8x768xf32> -> vector<8x768xf32>
    %164 = arith.addf %160, %163 : vector<8x768xf32>
    %c0_85 = arith.constant 0 : index
    %c147_86 = arith.constant 147 : index
    %165 = vector.load %arg15[%c0_85, %c147_86] : memref<8x1024xf32, #tpu.memory_space<vmem>>, vector<4x768xf32>
    %166 = vector.extract_strided_slice %133 {offsets = [0, 32], sizes = [8, 4], strides = [1, 1]} : vector<8x36xf32> to vector<8x4xf32>
    %cst_87 = arith.constant dense<0.000000e+00> : vector<8x768xf32>
    %167 = tpu.matmul %166, %165, %cst_87 {dimension_numbers = #tpu.dot_dimension_numbers<[1], [0], [0], [1], [0, 0, 1, 1], [], []>} : vector<8x4xf32>, vector<4x768xf32>, vector<8x768xf32> -> vector<8x768xf32>
    %168 = arith.addf %164, %167 : vector<8x768xf32>
    %c0_88 = arith.constant 0 : index
    %c0_89 = arith.constant 0 : index
    %169 = vector.load %arg6[%c0_88, %c0_89] : memref<8x1xf32, #tpu.memory_space<vmem>>, vector<8x1xf32>
    %170 = vector.broadcast %169 : vector<8x1xf32> to vector<8x768xf32>
    %171 = arith.addf %168, %170 : vector<8x768xf32>
    %cst_90 = arith.constant 0.000000e+00 : f32
    %172 = vector.broadcast %cst_90 : f32 to vector<8x768xf32>
    %173 = arith.maximumf %171, %172 : vector<8x768xf32>
    %174 = vector.broadcast %70 : vector<1x768xf32> to vector<8x768xf32>
    %175 = arith.mulf %173, %174 : vector<8x768xf32>
    %c0_91 = arith.constant 0 : index
    %c128_92 = arith.constant 128 : index
    %176 = vector.load %arg15[%c0_91, %c128_92] : memref<8x1024xf32, #tpu.memory_space<vmem>>, vector<8x768xf32>
    tpu.vector_store %arg15[%c0_91, %c128_92], %175 {strides = array<i32>} : memref<8x1024xf32, #tpu.memory_space<vmem>>, vector<8x768xf32>,
    %c0_93 = arith.constant 0 : index
    %c0_94 = arith.constant 0 : index
    %177 = vector.load %arg7[%c0_93, %c0_94] : memref<8x72xf32, #tpu.memory_space<vmem>>, vector<8x72xf32>
    %c0_95 = arith.constant 0 : index
    %c109_96 = arith.constant 109 : index
    %178 = vector.load %arg15[%c0_95, %c109_96] : memref<8x1024xf32, #tpu.memory_space<vmem>>, vector<8x768xf32>
    %179 = vector.extract_strided_slice %177 {offsets = [0, 0], sizes = [8, 8], strides = [1, 1]} : vector<8x72xf32> to vector<8x8xf32>
    %cst_97 = arith.constant dense<0.000000e+00> : vector<8x768xf32>
    %180 = tpu.matmul %179, %178, %cst_97 {dimension_numbers = #tpu.dot_dimension_numbers<[1], [0], [0], [1], [0, 0, 1, 1], [], []>} : vector<8x8xf32>, vector<8x768xf32>, vector<8x768xf32> -> vector<8x768xf32>
    %c0_98 = arith.constant 0 : index
    %c110_99 = arith.constant 110 : index
    %181 = vector.load %arg15[%c0_98, %c110_99] : memref<8x1024xf32, #tpu.memory_space<vmem>>, vector<8x768xf32>
    %182 = vector.extract_strided_slice %177 {offsets = [0, 8], sizes = [8, 8], strides = [1, 1]} : vector<8x72xf32> to vector<8x8xf32>
    %cst_100 = arith.constant dense<0.000000e+00> : vector<8x768xf32>
    %183 = tpu.matmul %182, %181, %cst_100 {dimension_numbers = #tpu.dot_dimension_numbers<[1], [0], [0], [1], [0, 0, 1, 1], [], []>} : vector<8x8xf32>, vector<8x768xf32>, vector<8x768xf32> -> vector<8x768xf32>
    %184 = arith.addf %180, %183 : vector<8x768xf32>
    %c0_101 = arith.constant 0 : index
    %c111_102 = arith.constant 111 : index
    %185 = vector.load %arg15[%c0_101, %c111_102] : memref<8x1024xf32, #tpu.memory_space<vmem>>, vector<8x768xf32>
    %186 = vector.extract_strided_slice %177 {offsets = [0, 16], sizes = [8, 8], strides = [1, 1]} : vector<8x72xf32> to vector<8x8xf32>
    %cst_103 = arith.constant dense<0.000000e+00> : vector<8x768xf32>
    %187 = tpu.matmul %186, %185, %cst_103 {dimension_numbers = #tpu.dot_dimension_numbers<[1], [0], [0], [1], [0, 0, 1, 1], [], []>} : vector<8x8xf32>, vector<8x768xf32>, vector<8x768xf32> -> vector<8x768xf32>
    %188 = arith.addf %184, %187 : vector<8x768xf32>
    %c0_104 = arith.constant 0 : index
    %c127_105 = arith.constant 127 : index
    %189 = vector.load %arg15[%c0_104, %c127_105] : memref<8x1024xf32, #tpu.memory_space<vmem>>, vector<8x768xf32>
    %190 = vector.extract_strided_slice %177 {offsets = [0, 24], sizes = [8, 8], strides = [1, 1]} : vector<8x72xf32> to vector<8x8xf32>
    %cst_106 = arith.constant dense<0.000000e+00> : vector<8x768xf32>
    %191 = tpu.matmul %190, %189, %cst_106 {dimension_numbers = #tpu.dot_dimension_numbers<[1], [0], [0], [1], [0, 0, 1, 1], [], []>} : vector<8x8xf32>, vector<8x768xf32>, vector<8x768xf32> -> vector<8x768xf32>
    %192 = arith.addf %188, %191 : vector<8x768xf32>
    %c0_107 = arith.constant 0 : index
    %c128_108 = arith.constant 128 : index
    %193 = vector.load %arg15[%c0_107, %c128_108] : memref<8x1024xf32, #tpu.memory_space<vmem>>, vector<8x768xf32>
    %194 = vector.extract_strided_slice %177 {offsets = [0, 32], sizes = [8, 8], strides = [1, 1]} : vector<8x72xf32> to vector<8x8xf32>
    %cst_109 = arith.constant dense<0.000000e+00> : vector<8x768xf32>
    %195 = tpu.matmul %194, %193, %cst_109 {dimension_numbers = #tpu.dot_dimension_numbers<[1], [0], [0], [1], [0, 0, 1, 1], [], []>} : vector<8x8xf32>, vector<8x768xf32>, vector<8x768xf32> -> vector<8x768xf32>
    %196 = arith.addf %192, %195 : vector<8x768xf32>
    %c0_110 = arith.constant 0 : index
    %c129_111 = arith.constant 129 : index
    %197 = vector.load %arg15[%c0_110, %c129_111] : memref<8x1024xf32, #tpu.memory_space<vmem>>, vector<8x768xf32>
    %198 = vector.extract_strided_slice %177 {offsets = [0, 40], sizes = [8, 8], strides = [1, 1]} : vector<8x72xf32> to vector<8x8xf32>
    %cst_112 = arith.constant dense<0.000000e+00> : vector<8x768xf32>
    %199 = tpu.matmul %198, %197, %cst_112 {dimension_numbers = #tpu.dot_dimension_numbers<[1], [0], [0], [1], [0, 0, 1, 1], [], []>} : vector<8x8xf32>, vector<8x768xf32>, vector<8x768xf32> -> vector<8x768xf32>
    %200 = arith.addf %196, %199 : vector<8x768xf32>
    %c0_113 = arith.constant 0 : index
    %c145_114 = arith.constant 145 : index
    %201 = vector.load %arg15[%c0_113, %c145_114] : memref<8x1024xf32, #tpu.memory_space<vmem>>, vector<8x768xf32>
    %202 = vector.extract_strided_slice %177 {offsets = [0, 48], sizes = [8, 8], strides = [1, 1]} : vector<8x72xf32> to vector<8x8xf32>
    %cst_115 = arith.constant dense<0.000000e+00> : vector<8x768xf32>
    %203 = tpu.matmul %202, %201, %cst_115 {dimension_numbers = #tpu.dot_dimension_numbers<[1], [0], [0], [1], [0, 0, 1, 1], [], []>} : vector<8x8xf32>, vector<8x768xf32>, vector<8x768xf32> -> vector<8x768xf32>
    %204 = arith.addf %200, %203 : vector<8x768xf32>
    %c0_116 = arith.constant 0 : index
    %c146_117 = arith.constant 146 : index
    %205 = vector.load %arg15[%c0_116, %c146_117] : memref<8x1024xf32, #tpu.memory_space<vmem>>, vector<8x768xf32>
    %206 = vector.extract_strided_slice %177 {offsets = [0, 56], sizes = [8, 8], strides = [1, 1]} : vector<8x72xf32> to vector<8x8xf32>
    %cst_118 = arith.constant dense<0.000000e+00> : vector<8x768xf32>
    %207 = tpu.matmul %206, %205, %cst_118 {dimension_numbers = #tpu.dot_dimension_numbers<[1], [0], [0], [1], [0, 0, 1, 1], [], []>} : vector<8x8xf32>, vector<8x768xf32>, vector<8x768xf32> -> vector<8x768xf32>
    %208 = arith.addf %204, %207 : vector<8x768xf32>
    %c0_119 = arith.constant 0 : index
    %c147_120 = arith.constant 147 : index
    %209 = vector.load %arg15[%c0_119, %c147_120] : memref<8x1024xf32, #tpu.memory_space<vmem>>, vector<8x768xf32>
    %210 = vector.extract_strided_slice %177 {offsets = [0, 64], sizes = [8, 8], strides = [1, 1]} : vector<8x72xf32> to vector<8x8xf32>
    %cst_121 = arith.constant dense<0.000000e+00> : vector<8x768xf32>
    %211 = tpu.matmul %210, %209, %cst_121 {dimension_numbers = #tpu.dot_dimension_numbers<[1], [0], [0], [1], [0, 0, 1, 1], [], []>} : vector<8x8xf32>, vector<8x768xf32>, vector<8x768xf32> -> vector<8x768xf32>
    %212 = arith.addf %208, %211 : vector<8x768xf32>
    %c0_122 = arith.constant 0 : index
    %c0_123 = arith.constant 0 : index
    %213 = vector.load %arg8[%c0_122, %c0_123] : memref<8x1xf32, #tpu.memory_space<vmem>>, vector<8x1xf32>
    %214 = vector.broadcast %213 : vector<8x1xf32> to vector<8x768xf32>
    %215 = arith.addf %212, %214 : vector<8x768xf32>
    %cst_124 = arith.constant 0.000000e+00 : f32
    %216 = vector.broadcast %cst_124 : f32 to vector<8x768xf32>
    %217 = arith.maximumf %215, %216 : vector<8x768xf32>
    %218 = vector.broadcast %70 : vector<1x768xf32> to vector<8x768xf32>
    %219 = arith.mulf %217, %218 : vector<8x768xf32>
    %c0_125 = arith.constant 0 : index
    %c128_126 = arith.constant 128 : index
    %220 = vector.load %arg15[%c0_125, %c128_126] : memref<8x1024xf32, #tpu.memory_space<vmem>>, vector<8x768xf32>
    tpu.vector_store %arg15[%c0_125, %c128_126], %219 {strides = array<i32>} : memref<8x1024xf32, #tpu.memory_space<vmem>>, vector<8x768xf32>,
    %c0_127 = arith.constant 0 : index
    %c0_128 = arith.constant 0 : index
    %221 = vector.load %arg9[%c0_127, %c0_128] : memref<4x72xf32, #tpu.memory_space<vmem>>, vector<4x72xf32>
    %c0_129 = arith.constant 0 : index
    %c109_130 = arith.constant 109 : index
    %222 = vector.load %arg15[%c0_129, %c109_130] : memref<8x1024xf32, #tpu.memory_space<vmem>>, vector<8x768xf32>
    %223 = vector.extract_strided_slice %221 {offsets = [0, 0], sizes = [4, 8], strides = [1, 1]} : vector<4x72xf32> to vector<4x8xf32>
    %cst_131 = arith.constant dense<0.000000e+00> : vector<4x768xf32>
    %224 = tpu.matmul %223, %222, %cst_131 {dimension_numbers = #tpu.dot_dimension_numbers<[1], [0], [0], [1], [0, 0, 1, 1], [], []>} : vector<4x8xf32>, vector<8x768xf32>, vector<4x768xf32> -> vector<4x768xf32>
    %c0_132 = arith.constant 0 : index
    %c110_133 = arith.constant 110 : index
    %225 = vector.load %arg15[%c0_132, %c110_133] : memref<8x1024xf32, #tpu.memory_space<vmem>>, vector<8x768xf32>
    %226 = vector.extract_strided_slice %221 {offsets = [0, 8], sizes = [4, 8], strides = [1, 1]} : vector<4x72xf32> to vector<4x8xf32>
    %cst_134 = arith.constant dense<0.000000e+00> : vector<4x768xf32>
    %227 = tpu.matmul %226, %225, %cst_134 {dimension_numbers = #tpu.dot_dimension_numbers<[1], [0], [0], [1], [0, 0, 1, 1], [], []>} : vector<4x8xf32>, vector<8x768xf32>, vector<4x768xf32> -> vector<4x768xf32>
    %228 = arith.addf %224, %227 : vector<4x768xf32>
    %c0_135 = arith.constant 0 : index
    %c111_136 = arith.constant 111 : index
    %229 = vector.load %arg15[%c0_135, %c111_136] : memref<8x1024xf32, #tpu.memory_space<vmem>>, vector<8x768xf32>
    %230 = vector.extract_strided_slice %221 {offsets = [0, 16], sizes = [4, 8], strides = [1, 1]} : vector<4x72xf32> to vector<4x8xf32>
    %cst_137 = arith.constant dense<0.000000e+00> : vector<4x768xf32>
    %231 = tpu.matmul %230, %229, %cst_137 {dimension_numbers = #tpu.dot_dimension_numbers<[1], [0], [0], [1], [0, 0, 1, 1], [], []>} : vector<4x8xf32>, vector<8x768xf32>, vector<4x768xf32> -> vector<4x768xf32>
    %232 = arith.addf %228, %231 : vector<4x768xf32>
    %c0_138 = arith.constant 0 : index
    %c127_139 = arith.constant 127 : index
    %233 = vector.load %arg15[%c0_138, %c127_139] : memref<8x1024xf32, #tpu.memory_space<vmem>>, vector<8x768xf32>
    %234 = vector.extract_strided_slice %221 {offsets = [0, 24], sizes = [4, 8], strides = [1, 1]} : vector<4x72xf32> to vector<4x8xf32>
    %cst_140 = arith.constant dense<0.000000e+00> : vector<4x768xf32>
    %235 = tpu.matmul %234, %233, %cst_140 {dimension_numbers = #tpu.dot_dimension_numbers<[1], [0], [0], [1], [0, 0, 1, 1], [], []>} : vector<4x8xf32>, vector<8x768xf32>, vector<4x768xf32> -> vector<4x768xf32>
    %236 = arith.addf %232, %235 : vector<4x768xf32>
    %c0_141 = arith.constant 0 : index
    %c128_142 = arith.constant 128 : index
    %237 = vector.load %arg15[%c0_141, %c128_142] : memref<8x1024xf32, #tpu.memory_space<vmem>>, vector<8x768xf32>
    %238 = vector.extract_strided_slice %221 {offsets = [0, 32], sizes = [4, 8], strides = [1, 1]} : vector<4x72xf32> to vector<4x8xf32>
    %cst_143 = arith.constant dense<0.000000e+00> : vector<4x768xf32>
    %239 = tpu.matmul %238, %237, %cst_143 {dimension_numbers = #tpu.dot_dimension_numbers<[1], [0], [0], [1], [0, 0, 1, 1], [], []>} : vector<4x8xf32>, vector<8x768xf32>, vector<4x768xf32> -> vector<4x768xf32>
    %240 = arith.addf %236, %239 : vector<4x768xf32>
    %c0_144 = arith.constant 0 : index
    %c129_145 = arith.constant 129 : index
    %241 = vector.load %arg15[%c0_144, %c129_145] : memref<8x1024xf32, #tpu.memory_space<vmem>>, vector<8x768xf32>
    %242 = vector.extract_strided_slice %221 {offsets = [0, 40], sizes = [4, 8], strides = [1, 1]} : vector<4x72xf32> to vector<4x8xf32>
    %cst_146 = arith.constant dense<0.000000e+00> : vector<4x768xf32>
    %243 = tpu.matmul %242, %241, %cst_146 {dimension_numbers = #tpu.dot_dimension_numbers<[1], [0], [0], [1], [0, 0, 1, 1], [], []>} : vector<4x8xf32>, vector<8x768xf32>, vector<4x768xf32> -> vector<4x768xf32>
    %244 = arith.addf %240, %243 : vector<4x768xf32>
    %c0_147 = arith.constant 0 : index
    %c145_148 = arith.constant 145 : index
    %245 = vector.load %arg15[%c0_147, %c145_148] : memref<8x1024xf32, #tpu.memory_space<vmem>>, vector<8x768xf32>
    %246 = vector.extract_strided_slice %221 {offsets = [0, 48], sizes = [4, 8], strides = [1, 1]} : vector<4x72xf32> to vector<4x8xf32>
    %cst_149 = arith.constant dense<0.000000e+00> : vector<4x768xf32>
    %247 = tpu.matmul %246, %245, %cst_149 {dimension_numbers = #tpu.dot_dimension_numbers<[1], [0], [0], [1], [0, 0, 1, 1], [], []>} : vector<4x8xf32>, vector<8x768xf32>, vector<4x768xf32> -> vector<4x768xf32>
    %248 = arith.addf %244, %247 : vector<4x768xf32>
    %c0_150 = arith.constant 0 : index
    %c146_151 = arith.constant 146 : index
    %249 = vector.load %arg15[%c0_150, %c146_151] : memref<8x1024xf32, #tpu.memory_space<vmem>>, vector<8x768xf32>
    %250 = vector.extract_strided_slice %221 {offsets = [0, 56], sizes = [4, 8], strides = [1, 1]} : vector<4x72xf32> to vector<4x8xf32>
    %cst_152 = arith.constant dense<0.000000e+00> : vector<4x768xf32>
    %251 = tpu.matmul %250, %249, %cst_152 {dimension_numbers = #tpu.dot_dimension_numbers<[1], [0], [0], [1], [0, 0, 1, 1], [], []>} : vector<4x8xf32>, vector<8x768xf32>, vector<4x768xf32> -> vector<4x768xf32>
    %252 = arith.addf %248, %251 : vector<4x768xf32>
    %c0_153 = arith.constant 0 : index
    %c147_154 = arith.constant 147 : index
    %253 = vector.load %arg15[%c0_153, %c147_154] : memref<8x1024xf32, #tpu.memory_space<vmem>>, vector<8x768xf32>
    %254 = vector.extract_strided_slice %221 {offsets = [0, 64], sizes = [4, 8], strides = [1, 1]} : vector<4x72xf32> to vector<4x8xf32>
    %cst_155 = arith.constant dense<0.000000e+00> : vector<4x768xf32>
    %255 = tpu.matmul %254, %253, %cst_155 {dimension_numbers = #tpu.dot_dimension_numbers<[1], [0], [0], [1], [0, 0, 1, 1], [], []>} : vector<4x8xf32>, vector<8x768xf32>, vector<4x768xf32> -> vector<4x768xf32>
    %256 = arith.addf %252, %255 : vector<4x768xf32>
    %c0_156 = arith.constant 0 : index
    %c0_157 = arith.constant 0 : index
    %257 = vector.load %arg10[%c0_156, %c0_157] : memref<4x1xf32, #tpu.memory_space<vmem>>, vector<4x1xf32>
    %258 = vector.broadcast %257 : vector<4x1xf32> to vector<4x768xf32>
    %259 = arith.addf %256, %258 : vector<4x768xf32>
    %cst_158 = arith.constant 0.000000e+00 : f32
    %260 = vector.broadcast %cst_158 : f32 to vector<4x768xf32>
    %261 = arith.maximumf %259, %260 : vector<4x768xf32>
    %262 = vector.broadcast %70 : vector<1x768xf32> to vector<4x768xf32>
    %263 = arith.mulf %261, %262 : vector<4x768xf32>
    %c0_159 = arith.constant 0 : index
    %c128_160 = arith.constant 128 : index
    %264 = vector.load %arg15[%c0_159, %c128_160] : memref<8x1024xf32, #tpu.memory_space<vmem>>, vector<4x768xf32>
    tpu.vector_store %arg15[%c0_159, %c128_160], %263 {strides = array<i32>} : memref<8x1024xf32, #tpu.memory_space<vmem>>, vector<4x768xf32>,
    %c0_161 = arith.constant 0 : index
    %c0_162 = arith.constant 0 : index
    %265 = vector.load %arg11[%c0_161, %c0_162] : memref<1x36xf32, #tpu.memory_space<vmem>>, vector<1x36xf32>
    %c0_163 = arith.constant 0 : index
    %c109_164 = arith.constant 109 : index
    %266 = vector.load %arg15[%c0_163, %c109_164] : memref<8x1024xf32, #tpu.memory_space<vmem>>, vector<4x768xf32>
    %267 = vector.extract_strided_slice %265 {offsets = [0, 0], sizes = [1, 4], strides = [1, 1]} : vector<1x36xf32> to vector<1x4xf32>
    %cst_165 = arith.constant dense<0.000000e+00> : vector<1x768xf32>
    %268 = tpu.matmul %267, %266, %cst_165 {dimension_numbers = #tpu.dot_dimension_numbers<[1], [0], [0], [1], [0, 0, 1, 1], [], []>} : vector<1x4xf32>, vector<4x768xf32>, vector<1x768xf32> -> vector<1x768xf32>
    %c0_166 = arith.constant 0 : index
    %c110_167 = arith.constant 110 : index
    %269 = vector.load %arg15[%c0_166, %c110_167] : memref<8x1024xf32, #tpu.memory_space<vmem>>, vector<4x768xf32>
    %270 = vector.extract_strided_slice %265 {offsets = [0, 4], sizes = [1, 4], strides = [1, 1]} : vector<1x36xf32> to vector<1x4xf32>
    %cst_168 = arith.constant dense<0.000000e+00> : vector<1x768xf32>
    %271 = tpu.matmul %270, %269, %cst_168 {dimension_numbers = #tpu.dot_dimension_numbers<[1], [0], [0], [1], [0, 0, 1, 1], [], []>} : vector<1x4xf32>, vector<4x768xf32>, vector<1x768xf32> -> vector<1x768xf32>
    %272 = arith.addf %268, %271 : vector<1x768xf32>
    %c0_169 = arith.constant 0 : index
    %c111_170 = arith.constant 111 : index
    %273 = vector.load %arg15[%c0_169, %c111_170] : memref<8x1024xf32, #tpu.memory_space<vmem>>, vector<4x768xf32>
    %274 = vector.extract_strided_slice %265 {offsets = [0, 8], sizes = [1, 4], strides = [1, 1]} : vector<1x36xf32> to vector<1x4xf32>
    %cst_171 = arith.constant dense<0.000000e+00> : vector<1x768xf32>
    %275 = tpu.matmul %274, %273, %cst_171 {dimension_numbers = #tpu.dot_dimension_numbers<[1], [0], [0], [1], [0, 0, 1, 1], [], []>} : vector<1x4xf32>, vector<4x768xf32>, vector<1x768xf32> -> vector<1x768xf32>
    %276 = arith.addf %272, %275 : vector<1x768xf32>
    %c0_172 = arith.constant 0 : index
    %c127_173 = arith.constant 127 : index
    %277 = vector.load %arg15[%c0_172, %c127_173] : memref<8x1024xf32, #tpu.memory_space<vmem>>, vector<4x768xf32>
    %278 = vector.extract_strided_slice %265 {offsets = [0, 12], sizes = [1, 4], strides = [1, 1]} : vector<1x36xf32> to vector<1x4xf32>
    %cst_174 = arith.constant dense<0.000000e+00> : vector<1x768xf32>
    %279 = tpu.matmul %278, %277, %cst_174 {dimension_numbers = #tpu.dot_dimension_numbers<[1], [0], [0], [1], [0, 0, 1, 1], [], []>} : vector<1x4xf32>, vector<4x768xf32>, vector<1x768xf32> -> vector<1x768xf32>
    %280 = arith.addf %276, %279 : vector<1x768xf32>
    %c0_175 = arith.constant 0 : index
    %c128_176 = arith.constant 128 : index
    %281 = vector.load %arg15[%c0_175, %c128_176] : memref<8x1024xf32, #tpu.memory_space<vmem>>, vector<4x768xf32>
    %282 = vector.extract_strided_slice %265 {offsets = [0, 16], sizes = [1, 4], strides = [1, 1]} : vector<1x36xf32> to vector<1x4xf32>
    %cst_177 = arith.constant dense<0.000000e+00> : vector<1x768xf32>
    %283 = tpu.matmul %282, %281, %cst_177 {dimension_numbers = #tpu.dot_dimension_numbers<[1], [0], [0], [1], [0, 0, 1, 1], [], []>} : vector<1x4xf32>, vector<4x768xf32>, vector<1x768xf32> -> vector<1x768xf32>
    %284 = arith.addf %280, %283 : vector<1x768xf32>
    %c0_178 = arith.constant 0 : index
    %c129_179 = arith.constant 129 : index
    %285 = vector.load %arg15[%c0_178, %c129_179] : memref<8x1024xf32, #tpu.memory_space<vmem>>, vector<4x768xf32>
    %286 = vector.extract_strided_slice %265 {offsets = [0, 20], sizes = [1, 4], strides = [1, 1]} : vector<1x36xf32> to vector<1x4xf32>
    %cst_180 = arith.constant dense<0.000000e+00> : vector<1x768xf32>
    %287 = tpu.matmul %286, %285, %cst_180 {dimension_numbers = #tpu.dot_dimension_numbers<[1], [0], [0], [1], [0, 0, 1, 1], [], []>} : vector<1x4xf32>, vector<4x768xf32>, vector<1x768xf32> -> vector<1x768xf32>
    %288 = arith.addf %284, %287 : vector<1x768xf32>
    %c0_181 = arith.constant 0 : index
    %c145_182 = arith.constant 145 : index
    %289 = vector.load %arg15[%c0_181, %c145_182] : memref<8x1024xf32, #tpu.memory_space<vmem>>, vector<4x768xf32>
    %290 = vector.extract_strided_slice %265 {offsets = [0, 24], sizes = [1, 4], strides = [1, 1]} : vector<1x36xf32> to vector<1x4xf32>
    %cst_183 = arith.constant dense<0.000000e+00> : vector<1x768xf32>
    %291 = tpu.matmul %290, %289, %cst_183 {dimension_numbers = #tpu.dot_dimension_numbers<[1], [0], [0], [1], [0, 0, 1, 1], [], []>} : vector<1x4xf32>, vector<4x768xf32>, vector<1x768xf32> -> vector<1x768xf32>
    %292 = arith.addf %288, %291 : vector<1x768xf32>
    %c0_184 = arith.constant 0 : index
    %c146_185 = arith.constant 146 : index
    %293 = vector.load %arg15[%c0_184, %c146_185] : memref<8x1024xf32, #tpu.memory_space<vmem>>, vector<4x768xf32>
    %294 = vector.extract_strided_slice %265 {offsets = [0, 28], sizes = [1, 4], strides = [1, 1]} : vector<1x36xf32> to vector<1x4xf32>
    %cst_186 = arith.constant dense<0.000000e+00> : vector<1x768xf32>
    %295 = tpu.matmul %294, %293, %cst_186 {dimension_numbers = #tpu.dot_dimension_numbers<[1], [0], [0], [1], [0, 0, 1, 1], [], []>} : vector<1x4xf32>, vector<4x768xf32>, vector<1x768xf32> -> vector<1x768xf32>
    %296 = arith.addf %292, %295 : vector<1x768xf32>
    %c0_187 = arith.constant 0 : index
    %c147_188 = arith.constant 147 : index
    %297 = vector.load %arg15[%c0_187, %c147_188] : memref<8x1024xf32, #tpu.memory_space<vmem>>, vector<4x768xf32>
    %298 = vector.extract_strided_slice %265 {offsets = [0, 32], sizes = [1, 4], strides = [1, 1]} : vector<1x36xf32> to vector<1x4xf32>
    %cst_189 = arith.constant dense<0.000000e+00> : vector<1x768xf32>
    %299 = tpu.matmul %298, %297, %cst_189 {dimension_numbers = #tpu.dot_dimension_numbers<[1], [0], [0], [1], [0, 0, 1, 1], [], []>} : vector<1x4xf32>, vector<4x768xf32>, vector<1x768xf32> -> vector<1x768xf32>
    %300 = arith.addf %296, %299 : vector<1x768xf32>
    %c0_190 = arith.constant 0 : index
    %c0_191 = arith.constant 0 : index
    %301 = vector.load %arg12[%c0_190, %c0_191] : memref<1x1xf32, #tpu.memory_space<vmem>>, vector<1x1xf32>
    %302 = vector.broadcast %301 : vector<1x1xf32> to vector<1x768xf32>
    %303 = arith.addf %300, %302 : vector<1x768xf32>
    %cst_192 = arith.constant 0.000000e+00 : f32
    %304 = vector.broadcast %cst_192 : f32 to vector<1x768xf32>
    %305 = arith.maximumf %303, %304 : vector<1x768xf32>
    %306 = arith.mulf %305, %70 : vector<1x768xf32>
    %307 = vector.extract_strided_slice %306 {offsets = [0, 0], sizes = [1, 384], strides = [1, 1]} : vector<1x768xf32> to vector<1x384xf32>
    %cst_193 = arith.constant dense<0xFF800000> : vector<1xf32>
    %308 = vector.multi_reduction <maximumf>, %307, %cst_193 [1] : vector<1x384xf32> to vector<1xf32>
    %309 = vector.shape_cast %308 : vector<1xf32> to vector<1x1xf32>
    %cst_194 = arith.constant dense<0xFF800000> : vector<1xf32>
    %310 = vector.multi_reduction <maximumf>, %309, %cst_194 [0] : vector<1x1xf32> to vector<1xf32>
    %311 = vector.shape_cast %310 : vector<1xf32> to vector<1x1xf32>
    %312 = tpu.reciprocal %311 : vector<1x1xf32> -> vector<1x1xf32>
    %313 = vector.broadcast %312 : vector<1x1xf32> to vector<1x384xf32>
    %314 = arith.mulf %307, %313 : vector<1x384xf32>
    %c0_195 = arith.constant 0 : index
    %c0_196 = arith.constant 0 : index
    %c0_197 = arith.constant 0 : index
    %315 = vector.load %arg14[%c0_195, %c0_196, %c0_197] : memref<1x1x768xf32, #tpu.memory_space<vmem>>, vector<1x1x384xf32>
    %316 = vector.shape_cast %315 : vector<1x1x384xf32> to vector<1x384xf32>
    %317 = vector.shape_cast %314 : vector<1x384xf32> to vector<1x1x384xf32>
    tpu.vector_store %arg14[%c0_195, %c0_196, %c0_197], %317 {strides = array<i32>} : memref<1x1x768xf32, #tpu.memory_space<vmem>>, vector<1x1x384xf32>,
    %318 = vector.extract_strided_slice %306 {offsets = [0, 384], sizes = [1, 384], strides = [1, 1]} : vector<1x768xf32> to vector<1x384xf32>
    %cst_198 = arith.constant dense<0xFF800000> : vector<1xf32>
    %319 = vector.multi_reduction <maximumf>, %318, %cst_198 [1] : vector<1x384xf32> to vector<1xf32>
    %320 = vector.shape_cast %319 : vector<1xf32> to vector<1x1xf32>
    %cst_199 = arith.constant dense<0xFF800000> : vector<1xf32>
    %321 = vector.multi_reduction <maximumf>, %320, %cst_199 [0] : vector<1x1xf32> to vector<1xf32>
    %322 = vector.shape_cast %321 : vector<1xf32> to vector<1x1xf32>
    %323 = tpu.reciprocal %322 : vector<1x1xf32> -> vector<1x1xf32>
    %324 = vector.broadcast %323 : vector<1x1xf32> to vector<1x384xf32>
    %325 = arith.mulf %318, %324 : vector<1x384xf32>
    %c0_200 = arith.constant 0 : index
    %c0_201 = arith.constant 0 : index
    %c384 = arith.constant 384 : index
    %326 = vector.load %arg14[%c0_200, %c0_201, %c384] : memref<1x1x768xf32, #tpu.memory_space<vmem>>, vector<1x1x384xf32>
    %327 = vector.shape_cast %326 : vector<1x1x384xf32> to vector<1x384xf32>
    %328 = vector.shape_cast %325 : vector<1x384xf32> to vector<1x1x384xf32>
    tpu.vector_store %arg14[%c0_200, %c0_201, %c384], %328 {strides = array<i32>} : memref<1x1x768xf32, #tpu.memory_space<vmem>>, vector<1x1x384xf32>,
    return
  }
  func.func @transform_0(%arg0: i32) -> (i32, i32, i32) {
    %c0_i32 = arith.constant 0 : i32
    %c0_i32_0 = arith.constant 0 : i32
    %c0_i32_1 = arith.constant 0 : i32
    return %arg0, %c0_i32, %c0_i32_0 : i32, i32, i32
  }
  func.func @transform_1(%arg0: i32) -> (i32, i32) {
    %c0_i32 = arith.constant 0 : i32
    %c0_i32_0 = arith.constant 0 : i32
    %c0_i32_1 = arith.constant 0 : i32
    return %c0_i32, %c0_i32_0 : i32, i32
  }
  func.func @transform_2(%arg0: i32) -> (i32, i32) {
    %c0_i32 = arith.constant 0 : i32
    %c0_i32_0 = arith.constant 0 : i32
    %c0_i32_1 = arith.constant 0 : i32
    return %c0_i32, %c0_i32_0 : i32, i32
  }
  func.func @transform_3(%arg0: i32) -> (i32, i32) {
    %c0_i32 = arith.constant 0 : i32
    %c0_i32_0 = arith.constant 0 : i32
    %c0_i32_1 = arith.constant 0 : i32
    return %c0_i32, %c0_i32_0 : i32, i32
  }
  func.func @transform_4(%arg0: i32) -> (i32, i32) {
    %c0_i32 = arith.constant 0 : i32
    %c0_i32_0 = arith.constant 0 : i32
    %c0_i32_1 = arith.constant 0 : i32
    return %c0_i32, %c0_i32_0 : i32, i32
  }
  func.func @transform_5(%arg0: i32) -> (i32, i32) {
    %c0_i32 = arith.constant 0 : i32
    %c0_i32_0 = arith.constant 0 : i32
    %c0_i32_1 = arith.constant 0 : i32
    return %c0_i32, %c0_i32_0 : i32, i32
  }
  func.func @transform_6(%arg0: i32) -> (i32, i32) {
    %c0_i32 = arith.constant 0 : i32
    %c0_i32_0 = arith.constant 0 : i32
    %c0_i32_1 = arith.constant 0 : i32
    return %c0_i32, %c0_i32_0 : i32, i32
  }
  func.func @transform_7(%arg0: i32) -> (i32, i32) {
    %c0_i32 = arith.constant 0 : i32
    %c0_i32_0 = arith.constant 0 : i32
    %c0_i32_1 = arith.constant 0 : i32
    return %c0_i32, %c0_i32_0 : i32, i32
  }
  func.func @transform_8(%arg0: i32) -> (i32, i32) {
    %c0_i32 = arith.constant 0 : i32
    %c0_i32_0 = arith.constant 0 : i32
    %c0_i32_1 = arith.constant 0 : i32
    return %c0_i32, %c0_i32_0 : i32, i32
  }
  func.func @transform_9(%arg0: i32) -> (i32, i32) {
    %c0_i32 = arith.constant 0 : i32
    %c0_i32_0 = arith.constant 0 : i32
    %c0_i32_1 = arith.constant 0 : i32
    return %c0_i32, %c0_i32_0 : i32, i32
  }
  func.func @transform_10(%arg0: i32) -> (i32, i32) {
    %c0_i32 = arith.constant 0 : i32
    %c0_i32_0 = arith.constant 0 : i32
    %c0_i32_1 = arith.constant 0 : i32
    return %c0_i32, %c0_i32_0 : i32, i32
  }
  func.func @transform_11(%arg0: i32) -> (i32, i32) {
    %c0_i32 = arith.constant 0 : i32
    %c0_i32_0 = arith.constant 0 : i32
    %c0_i32_1 = arith.constant 0 : i32
    return %c0_i32, %c0_i32_0 : i32, i32
  }
  func.func @transform_12(%arg0: i32) -> (i32, i32) {
    %c0_i32 = arith.constant 0 : i32
    %c0_i32_0 = arith.constant 0 : i32
    %c0_i32_1 = arith.constant 0 : i32
    return %c0_i32, %c0_i32_0 : i32, i32
  }
  func.func @transform_13(%arg0: i32) -> (i32, i32, i32) {
    %c0_i32 = arith.constant 0 : i32
    %c0_i32_0 = arith.constant 0 : i32
    %c0_i32_1 = arith.constant 0 : i32
    return %arg0, %c0_i32, %c0_i32_0 : i32, i32, i32
  }
}

</mosaic_0001>

<bundles_post_ra>
// kernel: tpu_custom_call.1
= control target key start
LH: loop header
LB: loop body
LE: loop exit
PB: predicated region body
PF: predicated region fallthrough
CT: control target
= control target key end

     0   :  { %s12575_s0 = inlined_call_operand.vmem [shape: f32[1,8,36], index: 0, kind: input, shape index: {}]   ;;  %s12576_s1 = inlined_call_operand.vmem [shape: f32[16,8], index: 1, kind: input, shape index: {}]   ;;  %s12577_s2 = inlined_call_operand.vmem [shape: f32[4,9], index: 2, kind: input, shape index: {}]   ;;  %s12578_s3 = inlined_call_operand.vmem [shape: f32[4,1], index: 3, kind: input, shape index: {}]   ;;  %s12579_s4 = inlined_call_operand.vmem [shape: f32[8,36], index: 4, kind: input, shape index: {}]   ;;  %s12580_s5 = inlined_call_operand.vmem [shape: f32[8,1], index: 5, kind: input, shape index: {}]   ;;  %s12581_s6 = inlined_call_operand.vmem [shape: f32[8,72], index: 6, kind: input, shape index: {}]   ;;  %s12582_s7 = inlined_call_operand.vmem [shape: f32[8,1], index: 7, kind: input, shape index: {}]   ;;  %s12583_s8 = inlined_call_operand.vmem [shape: f32[4,72], index: 8, kind: input, shape index: {}]   ;;  %s12584_s9 = inlined_call_operand.vmem [shape: f32[4,1], index: 9, kind: input, shape index: {}]   ;;  %s12585_s10 = inlined_call_operand.vmem [shape: f32[1,36], index: 10, kind: input, shape index: {}]   ;;  %s12586_s11 = inlined_call_operand.<no memory space> [shape: f32[1,1], index: 11, kind: input, shape index: {}]   ;;  %s12587_s12 = inlined_call_operand.vmem [shape: f32[1,768], index: 12, kind: input, shape index: {}]   ;;  %s12588_s13 = inlined_call_operand.hbm [shape: f32[1,1,768], index: 13, kind: output, shape index: {}]  }
   0x1   :  { %v18_v0 = vstv %s12586_s11 }
   0x2   :  { %19 = vst [vmem:[#allocation3] sm:$0x1] %v18_v0 }
   0x3   :  { %v57_v1 = vld [vmem:[%s12575_s0] sm:$0xff]  ;;  %vm58_vm0 = vcmask 64512   ;;  %v56_v3 = vld [vmem:[%s12576_s1 + $0x8] sm:$0xff]  ;;  %v10742_v5 = vmov 2   ;;  %v12589_v6 = vlaneseq }
   0x4   :  { %v55_v2 = vld [vmem:[%s12576_s1] sm:$0xff]  ;;  %10460 = vmatprep.subr.mxu1 %v57_v1  ;;  %10702 = vset.pattern.permute.xlu1 %v10742_v5 }
   0x5   :  { %10462 = vmatprep.mubr.msk.f32.mxu1 %vm58_vm0, %v55_v2  ;;  %v302_v4 = vld [vmem:[%s12577_s2] sm:$0xf]  ;;  %10461 = vmatpush3.msra.mxu1 %v57_v1 }
   0x6   :  { %10463 = vmatmul.mubr.msk.f32.vlgmr.msra.gmra.mrb[0].mxu1 %vm58_vm0, %v56_v3  ;;  %408 = vperm.xlu1 %10702, %v302_v4  }
   0x7   :  { %20 = vsyncpa [#allocation5], 0  ;;  %v10743_v7 = vmov 1   ;;  %v10744_v8 = vmov 3   ;;  %v10874_v9 = vshrl.u32 %v12589_v6, 7  ;;  %v10745_v10 = vmov 4  }
   0x8   :  { %10701 = vset.pattern.permute.xlu0 %v10743_v7  ;;  %v10746_v12 = vmov 5   ;;  %v10882_v13 = vld [vmem:[%s12587_s12] sm:$0x3f]  ;;  %v10747_v14 = vmov 7   ;;  %v10748_v17 = vmov 6   ;;  %s10749_s2 = smov 109  }
   0x9   :  { %355 = vperm.xlu0 %10701, %v302_v4   ;;  %12591 = vst [vmem:[#allocation7_spill] sm:$0xff] %v10874_v9  ;;  %v10877_v11 = vsub.s32 0, %v10874_v9  ;;  %v10889_v16 = vsub.s32 2, %v10874_v9  ;;  %v10750_v19 = vmov 0   ;;  %v10751_v20 = vmov 8   ;;  %s10754_s18 = smov 16  }
   0xa   :  { %10703 = vset.pattern.permute.xlu1 %v10744_v8  ;;  %v10900_v21 = vsub.s32 1, %v10874_v9  ;;  %v848_v22 = vld [vmem:[%s12578_s3] sm:$0xf]  ;;  %v10752_v24 = vmov 0.0   ;;  %vm140_vm1 = vcmask 139264   ;;  %s10753_s3 = smov 126  }
   0xb   :  { %461 = vperm.xlu1 %10703, %v302_v4   ;;  %v10886_v15 = vrot.slane %v10882_v13, %v10877_v11  ;;  %v10895_v18 = vrot.slane %v10882_v13, %v10889_v16  ;;  %51 = vst [vmem:[#allocation2 + $0x20] sm:$0xff] %v10752_v24  ;;  %47 = vst [vmem:[#allocation2] sm:$0xff] %v10752_v24  ;;  %1089 = vmatprep.mubr.f32.mxu1 %v10752_v24  ;;  %s10755_s19 = smov 34   ;;  %s10756_s20 = smov 110   ;;  %vm147_vm2 = vcmask 286864   ;;  %vm229_vm3 = vcmask 106496  }
   0xc   :  { %v10907_v23 = vrot.slane %v10882_v13, %v10900_v21  ;;  %48 = vst [vmem:[#allocation2 + $0x8] sm:$0xff] %v10752_v24  ;;  %49 = vst [vmem:[#allocation2 + $0x10] sm:$0xff] %v10752_v24  ;;  %3183 = vmatprep.mubr.f32.mxu0 %v10752_v24  ;;  %s10757_s21 = smov 124   ;;  %s10758_s22 = smov 52   ;;  %vm235_vm4 = vcmask 254064   ;;  %vm185_vm5 = vcmask 122880  }
   0xd   :  { %10704 = vset.pattern.permute.xlu0 %v10745_v10  ;;  %50 = vst [vmem:[#allocation2 + $0x18] sm:$0xff] %v10752_v24  ;;  %52 = vst [vmem:[#allocation2 + $0x28] sm:$0xff] %v10752_v24  ;;  %s10759_s23 = smov 88   ;;  %s10760_s24 = smov 14   ;;  %vm191_vm6 = vcmask 270464   ;;  %vm197_vm7 = vcmask 418064  }
   0xe   :  { %518 = vperm.xlu0 %10704, %v302_v4   ;;  %53 = vst [vmem:[#allocation2 + $0x30] sm:$0xff] %v10752_v24  ;;  %54 = vst [vmem:[#allocation2 + $0x38] sm:$0xff] %v10752_v24  ;;  %s10761_s25 = smov 70   ;;  %s10762_s26 = smov 36   ;;  %vm203_vm8 = vcmask 565664   ;;  %vm209_vm9 = vcmask 713264  }
   0xf   :  { %10705 = vset.pattern.permute.xlu1 %v10746_v12  ;;  %s10763_s27 = smov 18   ;;  %s10764_s28 = smov 54   ;;  %vm215_vm10 = vcmask 860864   ;;  %vm153_vm11 = vcmask 434464   ;;  %vm221_vm12 = vcmask 1008464   ;;  %vm159_vm13 = vcmask 582064  }
  0x10   :  { %601 = vperm.xlu1 %10705, %v302_v4   ;;  %s10765_s29 = smov 106   ;;  %s10766_s30 = smov 72   ;;  %vm227_vm14 = vcmask 1041376   ;;  %vm165_vm15 = vcmask 729664  }
  0x11   :  { %s10767_s14 = smov 108   ;;  %s10768_s15 = smov 90  }
  0x12   :  { %10707 = vset.pattern.permute.xlu0 %v10747_v14  ;;  %s10769_s16 = smov 127   ;;  %s10770_s17 = smov 92  }
  0x13   :  { %743 = vperm.xlu0 %10707, %v302_v4   ;;  %s10771_s0 = smov 91   ;;  %s10772_s1 = smov 19  }
  0x14   :  { %10706 = vset.pattern.permute.xlu1 %v10748_v17 }
  0x15   :  { %690 = vperm.xlu1 %10706, %v302_v4  }
  0x17   :  { %899 = vrot.lane.b32.xlu0 %v10886_v15, %s10749_s2 }
  0x18   :  { %10710 = vset.pattern.permute.xlu0 %v10750_v19 }
  0x19   :  { %10708 = vset.pattern.permute.xlu1 %v10751_v20 }
  0x1a   :  { %796 = vperm.xlu1 %10708, %v302_v4  }
  0x1b   :  { %903 = vrot.lane.b32.xlu0 %v10895_v18, %s10749_s2 }
  0x1e   :  { %10709 = vset.pattern.permute.xlu1 %v10750_v19 }
  0x1f   :  { %308 = vperm.xlu1 %10709, %v302_v4  }
  0x23   :  { %851 = vperm.xlu1 %10709, %v848_v22  }
  0x27   :  { %901 = vrot.lane.b32.xlu1 %v10907_v23, %s10749_s2 }
  0x85   :  { %v10938_v41 = vpop.permute.xlu1 %408 }
  0x88   :  { %v10944_v44 = vpop.permute.xlu0 %355 }
  0x8a   :  { %v10940_v42 = vpop.permute.xlu1 %461 }
  0x8d   :  { %v10948_v46 = vpop.permute.xlu0 %518 }
  0x8f   :  { %v10942_v43 = vpop.permute.xlu1 %601 }
  0x92   :  { %v10952_v48 = vpop.permute.xlu0 %743 }
  0x94   :  { %v10946_v45 = vpop.permute.xlu1 %690 }
  0x96   :  { %v10956_v50 = vpop.permute.xlu0 %899 }
  0x99   :  { %v10950_v47 = vpop.permute.xlu1 %796 }
  0x9a   :  { %v10960_v52 = vpop.permute.xlu0 %903 }
  0x9e   :  { %v10954_v49 = vpop.permute.xlu1 %308 }
  0xa2   :  { %v10958_v51 = vpop.permute.xlu1 %851 }
  0xa6   :  { %v10962_v53 = vpop.permute.xlu1 %901 }
  0xd9   :  { %v10464_v25 = vpop.f32.mrb[0].mxu1 }
  0xda   :  { %268 = vrot.lane.b32.xlu1 %v10464_v25, %s10753_s3  ;;  %188 = vrot.lane.b32.xlu0 %v10464_v25, %s10754_s18  ;;  %v10912_v26 = vpop.f32.mrb[1].mxu1  ;;  %v193_v27 = vrot.slane %v10464_v25, 1  ;;  %v223_v28 = vrot.slane %v10464_v25, 6  ;;  %v199_v29 = vrot.slane %v10464_v25, 2  ;;  %v217_v30 = vrot.slane %v10464_v25, 5 }
  0xdb   :  { %141 = vst.msk [vmem:[#allocation2 + $0x8] sm:$0x1] %vm140_vm1, %v10912_v26  ;;  %v231_v31 = vrot.slane %v10464_v25, 7  ;;  %v205_v32 = vrot.slane %v10464_v25, 3  ;;  %v179_v33 = vrot.slane %v10912_v26, 7  ;;  %v149_v34 = vrot.slane %v10912_v26, 2 }
  0xdc   :  { %v211_v35 = vrot.slane %v10464_v25, 4  ;;  %v155_v36 = vrot.slane %v10912_v26, 3  ;;  %v161_v37 = vrot.slane %v10912_v26, 4  ;;  %v167_v38 = vrot.slane %v10912_v26, 5 }
  0xdd   :  { %v143_v39 = vrot.slane %v10912_v26, 1  ;;  %v173_v40 = vrot.slane %v10912_v26, 6 }
  0xde   :  { %194 = vrot.lane.b32.xlu1 %v193_v27, %s10755_s19  ;;  %237 = vrot.lane.b32.xlu0 %v10912_v26, %s10756_s20 }
  0xe2   :  { %272 = vrot.lane.b32.xlu1 %v193_v27, %s10754_s18  ;;  %224 = vrot.lane.b32.xlu0 %v223_v28, %s10757_s21  ;;  %s10774_s18 = smov 120  }
  0xe6   :  { %200 = vrot.lane.b32.xlu1 %v199_v29, %s10758_s22  ;;  %288 = vrot.lane.b32.xlu0 %v217_v30, %s10759_s23 }
  0xea   :  { %276 = vrot.lane.b32.xlu1 %v199_v29, %s10755_s19  ;;  %232 = vrot.lane.b32.xlu0 %v231_v31, %s10760_s24  ;;  %s10775_s19 = smov 1   ;;  %s10778_s24 = smov 104  }
  0xee   :  { %206 = vrot.lane.b32.xlu1 %v205_v32, %s10761_s25  ;;  %180 = vrot.lane.b32.xlu0 %v179_v33, %s10753_s3 }
  0xf2   :  { %280 = vrot.lane.b32.xlu1 %v205_v32, %s10758_s22  ;;  %150 = vrot.lane.b32.xlu0 %v149_v34, %s10762_s26  ;;  %v10996_v32 = vsub.s32 3, %v10874_v9  ;;  %s10776_s22 = smov 116  }
  0xf6   :  { %212 = vrot.lane.b32.xlu1 %v211_v35, %s10759_s23  ;;  %243 = vrot.lane.b32.xlu0 %v149_v34, %s10763_s27 }
  0xfa   :  { %284 = vrot.lane.b32.xlu1 %v211_v35, %s10761_s25  ;;  %156 = vrot.lane.b32.xlu0 %v155_v36, %s10764_s28  ;;  %s10779_s25 = smov 111  }
  0xfe   :  { %218 = vrot.lane.b32.xlu1 %v217_v30, %s10765_s29  ;;  %247 = vrot.lane.b32.xlu0 %v155_v36, %s10762_s26  ;;  %s10780_s26 = smov 100  }
 0x102   :  { %292 = vrot.lane.b32.xlu1 %v223_v28, %s10765_s29  ;;  %162 = vrot.lane.b32.xlu0 %v161_v37, %s10766_s30 }
 0x106   :  { %297 = vrot.lane.b32.xlu1 %v231_v31, %s10757_s21  ;;  %251 = vrot.lane.b32.xlu0 %v161_v37, %s10764_s28  ;;  %s10781_s28 = smov 96  }
 0x10a   :  { %263 = vrot.lane.b32.xlu1 %v179_v33, %s10767_s14  ;;  %168 = vrot.lane.b32.xlu0 %v167_v38, %s10768_s15 }
 0x10e   :  { %255 = vrot.lane.b32.xlu0 %v167_v38, %s10766_s30  ;;  %144 = vrot.lane.b32.xlu1 %v143_v39, %s10763_s27 }
 0x112   :  { %174 = vrot.lane.b32.xlu0 %v173_v40, %s10767_s14  ;;  %259 = vrot.lane.b32.xlu1 %v173_v40, %s10768_s15 }
 0x14c   :  { %v269_v54 = vpop.permute.xlu1 %268  ;;  %v189_v55 = vpop.permute.xlu0 %188 }
 0x150   :  { %v195_v56 = vpop.permute.xlu1 %194  ;;  %v238_v57 = vpop.permute.xlu0 %237 }
 0x151   :  { %240 = vst.msk [vmem:[#allocation2 + $0x20] sm:$0x1] %vm140_vm1, %v238_v57  ;;  %vm171_vm1 = vcmask 877264   ;;  %v11030_v57 = vsub.s32 4, %v10874_v9 }
 0x152   :  { %242 = vst.msk [vmem:[#allocation2 + $0x20] sm:$0x1] %vm147_vm2, %v143_v39 }
 0x154   :  { %v273_v58 = vpop.permute.xlu1 %272  ;;  %v225_v59 = vpop.permute.xlu0 %224 }
 0x155   :  { %230 = vst.msk [vmem:[#allocation2 + $0x18] sm:$0x1] %vm229_vm3, %v225_v59 }
 0x158   :  { %v201_v60 = vpop.permute.xlu1 %200  ;;  %v289_v61 = vpop.permute.xlu0 %288 }
 0x15c   :  { %v277_v62 = vpop.permute.xlu1 %276  ;;  %v233_v63 = vpop.permute.xlu0 %232 }
 0x15d   :  { %236 = vst.msk [vmem:[#allocation2 + $0x18] sm:$0x1] %vm235_vm4, %v233_v63 }
 0x160   :  { %v207_v0 = vpop.permute.xlu1 %206  ;;  %v181_v1 = vpop.permute.xlu0 %180 }
 0x161   :  { %186 = vst.msk [vmem:[#allocation2 + $0x10] sm:$0x1] %vm185_vm5, %v181_v1 }
 0x162   :  { %192 = vst.msk [vmem:[#allocation2 + $0x10] sm:$0x1] %vm191_vm6, %v189_v55 }
 0x163   :  { %198 = vst.msk [vmem:[#allocation2 + $0x10] sm:$0x1] %vm197_vm7, %v195_v56  ;;  %v11027_v56 = vsub.s32 5, %v10874_v9 }
 0x164   :  { %v281_v2 = vpop.permute.xlu1 %280  ;;  %v151_v3 = vpop.permute.xlu0 %150  ;;  %204 = vst.msk [vmem:[#allocation2 + $0x10] sm:$0x1] %vm203_vm8, %v201_v60 }
 0x165   :  { %210 = vst.msk [vmem:[#allocation2 + $0x10] sm:$0x1] %vm209_vm9, %v207_v0 }
 0x168   :  { %v213_v4 = vpop.permute.xlu1 %212  ;;  %v244_v5 = vpop.permute.xlu0 %243 }
 0x169   :  { %216 = vst.msk [vmem:[#allocation2 + $0x10] sm:$0x1] %vm215_vm10, %v213_v4 }
 0x16a   :  { %246 = vst.msk [vmem:[#allocation2 + $0x20] sm:$0x1] %vm153_vm11, %v244_v5 }
 0x16c   :  { %v285_v7 = vpop.permute.xlu1 %284  ;;  %v157_v8 = vpop.permute.xlu0 %156 }
 0x170   :  { %v219_v10 = vpop.permute.xlu1 %218  ;;  %v248_v12 = vpop.permute.xlu0 %247 }
 0x171   :  { %222 = vst.msk [vmem:[#allocation2 + $0x10] sm:$0x1] %vm221_vm12, %v219_v10 }
 0x172   :  { %250 = vst.msk [vmem:[#allocation2 + $0x20] sm:$0x1] %vm159_vm13, %v248_v12 }
 0x173   :  { %228 = vst.msk [vmem:[#allocation2 + $0x10] sm:$0x1] %vm227_vm14, %v225_v59 }
 0x174   :  { %v293_v14 = vpop.permute.xlu1 %292  ;;  %v163_v17 = vpop.permute.xlu0 %162 }
 0x175   :  { %296 = vst.msk [vmem:[#allocation2 + $0x30] sm:$0x1] %vm229_vm3, %v293_v14  ;;  %vm177_vm3 = vcmask 1024864  }
 0x178   :  { %v298_v19 = vpop.permute.xlu1 %297  ;;  %v252_v20 = vpop.permute.xlu0 %251 }
 0x179   :  { %300 = vst.msk [vmem:[#allocation2 + $0x30] sm:$0x1] %vm235_vm4, %v298_v19  ;;  %vm183_vm4 = vcmask 1041392  }
 0x17a   :  { %254 = vst.msk [vmem:[#allocation2 + $0x20] sm:$0x1] %vm165_vm15, %v252_v20 }
 0x17c   :  { %v264_v22 = vpop.permute.xlu1 %263  ;;  %v169_v24 = vpop.permute.xlu0 %168 }
 0x17d   :  { %267 = vst.msk [vmem:[#allocation2 + $0x28] sm:$0x1] %vm185_vm5, %v264_v22  ;;  %vm439_vm5 = vcmask 1031168  }
 0x17e   :  { %271 = vst.msk [vmem:[#allocation2 + $0x28] sm:$0x1] %vm191_vm6, %v269_v54  ;;  %vm492_vm6 = vcmask 900096  }
 0x17f   :  { %275 = vst.msk [vmem:[#allocation2 + $0x28] sm:$0x1] %vm197_vm7, %v273_v58  ;;  %vm576_vm7 = vcmask 891904  }
 0x180   :  { %279 = vst.msk [vmem:[#allocation2 + $0x28] sm:$0x1] %vm203_vm8, %v277_v62  ;;  %v256_v25 = vpop.permute.xlu0 %255  ;;  %v145_v26 = vpop.permute.xlu1 %144  ;;  %vm668_vm8 = vcmask 883712  }
 0x181   :  { %283 = vst.msk [vmem:[#allocation2 + $0x28] sm:$0x1] %vm209_vm9, %v281_v2  ;;  %vm721_vm9 = vcmask 752640  }
 0x182   :  { %258 = vst.msk [vmem:[#allocation2 + $0x20] sm:$0x1] %vm171_vm1, %v256_v25 }
 0x183   :  { %148 = vst.msk [vmem:[#allocation2 + $0x8] sm:$0x1] %vm147_vm2, %v145_v26  ;;  %vm386_vm2 = vcmask 1039360  }
 0x184   :  { %287 = vst.msk [vmem:[#allocation2 + $0x28] sm:$0x1] %vm215_vm10, %v285_v7  ;;  %v175_v27 = vpop.permute.xlu0 %174  ;;  %v260_v28 = vpop.permute.xlu1 %259  ;;  %vm774_vm10 = vcmask 744448  }
 0x185   :  { %154 = vst.msk [vmem:[#allocation2 + $0x8] sm:$0x1] %vm153_vm11, %v151_v3  ;;  %vm827_vm11 = vcmask 736256  }
 0x186   :  { %291 = vst.msk [vmem:[#allocation2 + $0x28] sm:$0x1] %vm221_vm12, %v289_v61  ;;  %vm951_vm12 = vcmask 154624  }
 0x187   :  { %160 = vst.msk [vmem:[#allocation2 + $0x8] sm:$0x1] %vm159_vm13, %v157_v8  ;;  %v338_v8 = vsub.s32 6, %v10874_v9  ;;  %vm1002_vm13 = vcmask 146432  }
 0x188   :  { %295 = vst.msk [vmem:[#allocation2 + $0x28] sm:$0x1] %vm227_vm14, %v293_v14  ;;  %vm1012_vm14 = vcmask 1043456  }
 0x189   :  { %166 = vst.msk [vmem:[#allocation2 + $0x8] sm:$0x1] %vm165_vm15, %v163_v17  ;;  %vm1009_vm15 = vcmask 31744  }
 0x18a   :  { %172 = vst.msk [vmem:[#allocation2 + $0x8] sm:$0x1] %vm171_vm1, %v169_v24  ;;  %vm1501_vm1 = vcmask 138240  }
 0x18b   :  { %262 = vst.msk [vmem:[#allocation2 + $0x20] sm:$0x1] %vm177_vm3, %v260_v28  ;;  %178 = vst.msk [vmem:[#allocation2 + $0x8] sm:$0x1] %vm177_vm3, %v175_v27  ;;  %vm1757_vm3 = vcmask 7168  }
 0x18c   :  { %266 = vst.msk [vmem:[#allocation2 + $0x20] sm:$0x1] %vm183_vm4, %v264_v22  ;;  %184 = vst.msk [vmem:[#allocation2 + $0x8] sm:$0x1] %vm183_vm4, %v181_v1  ;;  %vm2517_vm4 = vcmask 908288  }
 0x18f   :  { %v515_v3 = vld [vmem:[#allocation2 + $0x8] ss:$8 sm:$0x30] }
 0x190   :  { %v598_v26 = vld [vmem:[#allocation2 + $0x8] ss:$8 sm:$0x70] }
 0x193   :  { %v304_v29 = vld [vmem:[#allocation2] ss:$8 sm:$0x70] }
 0x194   :  { %v303_v30 = vld [vmem:[#allocation2] ss:$8 sm:$0xf] }
 0x195   :  { %v305_v31 = vor.u32 %v304_v29, %v303_v30  ;;  %v514_v2 = vld [vmem:[#allocation2 + $0x8] ss:$8 sm:$0xf] }
 0x196   :  { %v11062_v7 = vor.u32 %v515_v3, %v514_v2  ;;  %v597_v25 = vld [vmem:[#allocation2 + $0x8] ss:$8 sm:$0xf] }
 0x197   :  { %v10999_v33 = vrot.slane %v305_v31, %v10900_v21  ;;  %v11002_v34 = vrot.slane %v305_v31, %v10877_v11  ;;  %v11009_v37 = vrot.slane %v305_v31, %v10996_v32  ;;  %v11012_v38 = vrot.slane %v305_v31, %v10889_v16 }
 0x198   :  { %v11039_v60 = vrot.slane %v305_v31, %v11027_v56  ;;  %v11042_v61 = vrot.slane %v305_v31, %v11030_v57  ;;  %v529_v14 = vrot.slane %v11062_v7, %v10900_v21  ;;  %v525_v17 = vrot.slane %v11062_v7, %v10877_v11 }
 0x199   :  { %v359_v35 = vmul.f32 %v10944_v44, %v10999_v33  ;;  %v358_v36 = vmul.f32 %v10944_v44, %v11002_v34  ;;  %v361_v39 = vmul.f32 %v10944_v44, %v11009_v37  ;;  %v360_v40 = vmul.f32 %v10944_v44, %v11012_v38 }
 0x19a   :  { %v412_v54 = vmul.f32 %v10938_v41, %v10999_v33  ;;  %v411_v55 = vmul.f32 %v10938_v41, %v11002_v34  ;;  %v414_v58 = vmul.f32 %v10938_v41, %v11009_v37  ;;  %v413_v59 = vmul.f32 %v10938_v41, %v11012_v38 }
 0x19b   :  { %374 = vrot.lane.b32.xlu1 %v359_v35, %s10769_s16  ;;  %372 = vrot.lane.b32.xlu0 %v358_v36, %s10769_s16  ;;  %v363_v62 = vmul.f32 %v10944_v44, %v11039_v60  ;;  %v362_v63 = vmul.f32 %v10944_v44, %v11042_v61  ;;  %v465_v0 = vmul.f32 %v10940_v42, %v10999_v33 }
 0x19c   :  { %v464_v1 = vmul.f32 %v10940_v42, %v11002_v34  ;;  %v467_v4 = vmul.f32 %v10940_v42, %v11009_v37  ;;  %v466_v5 = vmul.f32 %v10940_v42, %v11012_v38  ;;  %v416_v10 = vmul.f32 %v10938_v41, %v11039_v60 }
 0x19d   :  { %v415_v12 = vmul.f32 %v10938_v41, %v11042_v61  ;;  %v553_v19 = vmul.f32 %v529_v14, %v10948_v46  ;;  %v552_v20 = vmul.f32 %v525_v17, %v10948_v46  ;;  %v11081_v22 = vrot.slane %v305_v31, %v338_v8 }
 0x19e   :  { %v533_v24 = vrot.slane %v11062_v7, %v10889_v16  ;;  %v599_v29 = vor.u32 %v598_v26, %v597_v25  ;;  %v469_v30 = vmul.f32 %v10940_v42, %v11039_v60  ;;  %v468_v31 = vmul.f32 %v10940_v42, %v11042_v61 }
 0x19f   :  { %378 = vrot.lane.b32.xlu1 %v361_v39, %s10769_s16  ;;  %376 = vrot.lane.b32.xlu0 %v360_v40, %s10769_s16  ;;  %v364_v27 = vmul.f32 %v10944_v44, %v11081_v22  ;;  %v470_v3 = vmul.f32 %v10940_v42, %v11081_v22  ;;  %v545_v42 = vrot.slane %v11062_v7, %v11027_v56 }
 0x1a0   :  { %v554_v28 = vmul.f32 %v533_v24, %v10948_v46  ;;  %v612_v35 = vrot.slane %v599_v29, %v10900_v21  ;;  %v608_v36 = vrot.slane %v599_v29, %v10877_v11  ;;  %v616_v40 = vrot.slane %v599_v29, %v10889_v16 }
 0x1a1   :  { %v632_v25 = vrot.slane %v599_v29, %v338_v8 }
 0x1a2   :  { %v641_v44 = vmul.f32 %v612_v35, %v10942_v43  ;;  %v640_v39 = vmul.f32 %v608_v36, %v10942_v43  ;;  %v642_v21 = vmul.f32 %v616_v40, %v10942_v43  ;;  %v746_v2 = vmul.f32 %v10952_v48, %v608_v36 }
 0x1a3   :  { %427 = vrot.lane.b32.xlu1 %v412_v54, %s10753_s3  ;;  %425 = vrot.lane.b32.xlu0 %v411_v55, %s10753_s3  ;;  %v417_v54 = vmul.f32 %v10938_v41, %v11081_v22  ;;  %v541_v55 = vrot.slane %v11062_v7, %v11030_v57  ;;  %v694_v41 = vmul.f32 %v10946_v45, %v612_v35 }
 0x1a4   :  { %v747_v14 = vmul.f32 %v10952_v48, %v612_v35  ;;  %v799_v17 = vmul.f32 %v10950_v47, %v608_v36  ;;  %v800_v26 = vmul.f32 %v10950_v47, %v612_v35  ;;  %v699_v8 = vmul.f32 %v10946_v45, %v632_v25 }
 0x1a5   :  { %v556_v16 = vmul.f32 %v541_v55, %v10948_v46 }
 0x1a7   :  { %431 = vrot.lane.b32.xlu1 %v414_v58, %s10753_s3  ;;  %429 = vrot.lane.b32.xlu0 %v413_v59, %s10753_s3  ;;  %v537_v58 = vrot.slane %v11062_v7, %v10996_v32  ;;  %v646_v7 = vmul.f32 %v632_v25, %v10942_v43 }
 0x1a9   :  { %v555_v59 = vmul.f32 %v537_v58, %v10948_v46 }
 0x1ab   :  { %382 = vrot.lane.b32.xlu1 %v363_v62, %s10769_s16  ;;  %380 = vrot.lane.b32.xlu0 %v362_v63, %s10769_s16  ;;  %v693_v62 = vmul.f32 %v10946_v45, %v608_v36  ;;  %v620_v63 = vrot.slane %v599_v29, %v10996_v32 }
 0x1ad   :  { %v802_v35 = vmul.f32 %v10950_v47, %v620_v63 }
 0x1af   :  { %480 = vrot.lane.b32.xlu1 %v465_v0, %s10756_s20  ;;  %478 = vrot.lane.b32.xlu0 %v464_v1, %s10756_s20  ;;  %v643_v0 = vmul.f32 %v620_v63, %v10942_v43  ;;  %v695_v1 = vmul.f32 %v10946_v45, %v616_v40 }
 0x1b3   :  { %484 = vrot.lane.b32.xlu1 %v467_v4, %s10756_s20  ;;  %482 = vrot.lane.b32.xlu0 %v466_v5, %s10756_s20  ;;  %v624_v4 = vrot.slane %v599_v29, %v11030_v57  ;;  %v748_v5 = vmul.f32 %v10952_v48, %v616_v40 }
 0x1b5   :  { %v697_v24 = vmul.f32 %v10946_v45, %v624_v4 }
 0x1b7   :  { %435 = vrot.lane.b32.xlu1 %v416_v10, %s10753_s3  ;;  %433 = vrot.lane.b32.xlu0 %v415_v12, %s10753_s3  ;;  %v644_v10 = vmul.f32 %v624_v4, %v10942_v43  ;;  %v696_v12 = vmul.f32 %v10946_v45, %v620_v63 }
 0x1bb   :  { %566 = vrot.lane.b32.xlu1 %v553_v19, %s10749_s2  ;;  %564 = vrot.lane.b32.xlu0 %v552_v20, %s10749_s2  ;;  %v557_v19 = vmul.f32 %v545_v42, %v10948_v46  ;;  %v801_v20 = vmul.f32 %v10950_v47, %v616_v40  ;;  %v628_v46 = vrot.slane %v599_v29, %v11027_v56 }
 0x1bc   :  { %v803_v29 = vmul.f32 %v10950_v47, %v624_v4  ;;  %v11188_v40 = vrot.slane %v10882_v13, %v11027_v56 }
 0x1bd   :  { %v804_v36 = vmul.f32 %v10950_v47, %v628_v46 }
 0x1bf   :  { %384 = vrot.lane.b32.xlu1 %v364_v27, %s10769_s16  ;;  %568 = vrot.lane.b32.xlu0 %v554_v28, %s10749_s2  ;;  %v750_v27 = vmul.f32 %v10952_v48, %v624_v4  ;;  %v645_v28 = vmul.f32 %v628_v46, %v10942_v43  ;;  %v752_v43 = vmul.f32 %v10952_v48, %v632_v25 }
 0x1c3   :  { %488 = vrot.lane.b32.xlu1 %v469_v30, %s10756_s20  ;;  %486 = vrot.lane.b32.xlu0 %v468_v31, %s10756_s20  ;;  %v749_v30 = vmul.f32 %v10952_v48, %v620_v63  ;;  %v698_v31 = vmul.f32 %v10946_v45, %v628_v46  ;;  %v11180_v45 = vrot.slane %v10882_v13, %v10996_v32 }
 0x1c7   :  { %656 = vrot.lane.b32.xlu1 %v641_v44, %s10767_s14  ;;  %654 = vrot.lane.b32.xlu0 %v640_v39, %s10767_s14  ;;  %v751_v44 = vmul.f32 %v10952_v48, %v628_v46  ;;  %v805_v39 = vmul.f32 %v10950_v47, %v632_v25  ;;  %v11192_v48 = vrot.slane %v10882_v13, %v11030_v57 }
 0x1cb   :  { %437 = vrot.lane.b32.xlu1 %v417_v54, %s10753_s3  ;;  %658 = vrot.lane.b32.xlu0 %v642_v21, %s10767_s14  ;;  %s10773_s3 = smov 17  }
 0x1cf   :  { %572 = vrot.lane.b32.xlu1 %v556_v16, %s10749_s2  ;;  %570 = vrot.lane.b32.xlu0 %v555_v59, %s10749_s2 }
 0x1d3   :  { %709 = vrot.lane.b32.xlu1 %v694_v41, %s10770_s17  ;;  %707 = vrot.lane.b32.xlu0 %v693_v62, %s10770_s17 }
 0x1d7   :  { %660 = vrot.lane.b32.xlu1 %v643_v0, %s10767_s14  ;;  %711 = vrot.lane.b32.xlu0 %v695_v1, %s10770_s17 }
 0x1db   :  { %760 = vrot.lane.b32.xlu1 %v746_v2, %s10771_s0  ;;  %490 = vrot.lane.b32.xlu0 %v470_v3, %s10756_s20 }
 0x1df   :  { %764 = vrot.lane.b32.xlu1 %v748_v5, %s10771_s0  ;;  %662 = vrot.lane.b32.xlu0 %v644_v10, %s10767_s14 }
 0x1e3   :  { %713 = vrot.lane.b32.xlu1 %v696_v12, %s10770_s17  ;;  %762 = vrot.lane.b32.xlu0 %v747_v14, %s10771_s0 }
 0x1e7   :  { %813 = vrot.lane.b32.xlu1 %v799_v17, %s10768_s15  ;;  %574 = vrot.lane.b32.xlu0 %v557_v19, %s10749_s2 }
 0x1eb   :  { %817 = vrot.lane.b32.xlu1 %v801_v20, %s10768_s15  ;;  %715 = vrot.lane.b32.xlu0 %v697_v24, %s10770_s17 }
 0x1ef   :  { %666 = vrot.lane.b32.xlu1 %v646_v7, %s10767_s14  ;;  %815 = vrot.lane.b32.xlu0 %v800_v26, %s10768_s15 }
 0x1f3   :  { %768 = vrot.lane.b32.xlu1 %v750_v27, %s10771_s0  ;;  %664 = vrot.lane.b32.xlu0 %v645_v28, %s10767_s14  ;;  %v347_v28 = vmul.f32 %v11002_v34, %v10954_v49 }
 0x1f7   :  { %719 = vrot.lane.b32.xlu1 %v699_v8, %s10770_s17  ;;  %766 = vrot.lane.b32.xlu0 %v749_v30, %s10771_s0 }
 0x1fb   :  { %821 = vrot.lane.b32.xlu1 %v803_v29, %s10768_s15  ;;  %717 = vrot.lane.b32.xlu0 %v698_v31, %s10770_s17 }
 0x1ff   :  { %772 = vrot.lane.b32.xlu1 %v752_v43, %s10771_s0  ;;  %819 = vrot.lane.b32.xlu0 %v802_v35, %s10768_s15 }
 0x203   :  { %823 = vrot.lane.b32.xlu1 %v804_v36, %s10768_s15  ;;  %770 = vrot.lane.b32.xlu0 %v751_v44, %s10771_s0  ;;  %s10783_s0 = smov 64  }
 0x207   :  { %905 = vrot.lane.b32.xlu1 %v11180_v45, %s10749_s2  ;;  %825 = vrot.lane.b32.xlu0 %v805_v39, %s10768_s15 }
 0x20b   :  { %909 = vrot.lane.b32.xlu1 %v11188_v40, %s10749_s2  ;;  %907 = vrot.lane.b32.xlu0 %v11192_v48, %s10749_s2 }
 0x20d   :  { %v375_v47 = vpop.permute.xlu1 %374  ;;  %v373_v32 = vpop.permute.xlu0 %372 }
 0x20e   :  { %v387_v26 = vsel %vm386_vm2, %v373_v32, %v375_v47 }
 0x20f   :  { %v400_v30 = vadd.f32 %v387_v26, %v347_v28 }
 0x211   :  { %v11198_v54 = vpop.permute.xlu1 %378  ;;  %v377_v21 = vpop.permute.xlu0 %376 }
 0x212   :  { %v388_v32 = vsel %vm386_vm2, %v375_v47, %v377_v21  ;;  %v389_v34 = vsel %vm386_vm2, %v377_v21, %v11198_v54 }
 0x215   :  { %v428_v55 = vpop.permute.xlu1 %427  ;;  %v426_v58 = vpop.permute.xlu0 %425 }
 0x216   :  { %v440_v8 = vsel %vm439_vm5, %v426_v58, %v428_v55  ;;  %v348_v58 = vmul.f32 %v10999_v33, %v10954_v49 }
 0x217   :  { %v453_v35 = vadd.f32 %v440_v8, %v400_v30 }
 0x218   :  { %v401_v30 = vadd.f32 %v388_v32, %v348_v58 }
 0x219   :  { %v11200_v16 = vpop.permute.xlu1 %431  ;;  %v430_v56 = vpop.permute.xlu0 %429 }
 0x21a   :  { %v441_v26 = vsel %vm439_vm5, %v428_v55, %v430_v56  ;;  %v442_v28 = vsel %vm439_vm5, %v430_v56, %v11200_v16 }
 0x21b   :  { %v454_v9 = vadd.f32 %v441_v26, %v401_v30 }
 0x21d   :  { %v11202_v59 = vpop.permute.xlu1 %382  ;;  %v11204_v13 = vpop.permute.xlu0 %380 }
 0x221   :  { %v481_v57 = vpop.permute.xlu1 %480  ;;  %v479_v41 = vpop.permute.xlu0 %478 }
 0x222   :  { %v493_v29 = vsel %vm492_vm6, %v479_v41, %v481_v57  ;;  %v349_v41 = vmul.f32 %v11012_v38, %v10954_v49 }
 0x223   :  { %v506_v36 = vadd.f32 %v493_v29, %v453_v35 }
 0x224   :  { %v402_v29 = vadd.f32 %v389_v34, %v349_v41 }
 0x225   :  { %v11206_v62 = vpop.permute.xlu1 %484  ;;  %v483_v63 = vpop.permute.xlu0 %482 }
 0x226   :  { %v494_v21 = vsel %vm492_vm6, %v481_v57, %v483_v63  ;;  %v455_v38 = vadd.f32 %v442_v28, %v402_v29 }
 0x227   :  { %v507_v32 = vadd.f32 %v494_v21, %v454_v9 }
 0x229   :  { %v11208_v0 = vpop.permute.xlu1 %435  ;;  %v11210_v1 = vpop.permute.xlu0 %433 }
 0x22d   :  { %v567_v2 = vpop.permute.xlu1 %566  ;;  %v565_v3 = vpop.permute.xlu0 %564 }
 0x22e   :  { %v589_v6 = vadd.f32 %v565_v3, %v506_v36  ;;  %v495_v36 = vsel %vm492_vm6, %v483_v63, %v11206_v62  ;;  %v577_v55 = vsel %vm576_vm7, %v565_v3, %v567_v2 }
 0x22f   :  { %v508_v34 = vadd.f32 %v495_v36, %v455_v38  ;;  %v590_v28 = vadd.f32 %v577_v55, %v507_v32 }
 0x231   :  { %v11212_v4 = vpop.permute.xlu1 %384  ;;  %v11214_v5 = vpop.permute.xlu0 %568 }
 0x235   :  { %v11216_v10 = vpop.permute.xlu1 %488  ;;  %v11218_v12 = vpop.permute.xlu0 %486 }
 0x239   :  { %v657_v14 = vpop.permute.xlu1 %656  ;;  %v655_v42 = vpop.permute.xlu0 %654 }
 0x23a   :  { %v682_v8 = vadd.f32 %v655_v42, %v589_v6  ;;  %v578_v6 = vsel %vm576_vm7, %v567_v2, %v11214_v5  ;;  %v669_v57 = vsel %vm668_vm8, %v655_v42, %v657_v14 }
 0x23b   :  { %v683_v30 = vadd.f32 %v669_v57, %v590_v28  ;;  %v350_v57 = vmul.f32 %v11009_v37, %v10954_v49  ;;  %v391_v28 = vsel %vm386_vm2, %v11204_v13, %v11202_v59 }
 0x23d   :  { %v11220_v17 = vpop.permute.xlu1 %437  ;;  %v11222_v19 = vpop.permute.xlu0 %658 }
 0x23e   :  { %v670_v63 = vsel %vm668_vm8, %v657_v14, %v11222_v19 }
 0x241   :  { %v11224_v20 = vpop.permute.xlu1 %572  ;;  %v11226_v24 = vpop.permute.xlu0 %570 }
 0x245   :  { %v710_v25 = vpop.permute.xlu1 %709  ;;  %v708_v7 = vpop.permute.xlu0 %707 }
 0x246   :  { %v735_v33 = vadd.f32 %v708_v7, %v682_v8  ;;  %v591_v8 = vadd.f32 %v578_v6, %v508_v34  ;;  %v722_v3 = vsel %vm721_vm9, %v708_v7, %v710_v25  ;;  %v390_v34 = vsel %vm386_vm2, %v11198_v54, %v11204_v13 }
 0x247   :  { %v736_v38 = vadd.f32 %v722_v3, %v683_v30  ;;  %v443_v54 = vsel %vm439_vm5, %v11200_v16, %v11210_v1  ;;  %v911_v30 = vsel %vm576_vm7, %v10956_v50, %v10962_v53  ;;  %v912_v13 = vsel %vm576_vm7, %v10962_v53, %v10960_v52 }
 0x248   :  { %v684_v29 = vadd.f32 %v670_v63, %v591_v8  ;;  %v403_v8 = vadd.f32 %v390_v34, %v350_v57  ;;  %v496_v16 = vsel %vm492_vm6, %v11206_v62, %v11218_v12  ;;  %v497_v53 = vsel %vm492_vm6, %v11218_v12, %v11216_v10 }
 0x249   :  { %v11229_v46 = vpop.permute.xlu1 %660  ;;  %v11231_v27 = vpop.permute.xlu0 %711  ;;  %v580_v12 = vsel %vm576_vm7, %v11226_v24, %v11224_v20 }
 0x24a   :  { %v723_v2 = vsel %vm721_vm9, %v710_v25, %v11231_v27 }
 0x24b   :  { %v737_v55 = vadd.f32 %v723_v2, %v684_v29 }
 0x24d   :  { %v761_v31 = vpop.permute.xlu1 %760  ;;  %v11237_v43 = vpop.permute.xlu0 %490 }
 0x24e   :  { %v788_v56 = vadd.f32 %v761_v31, %v735_v33 }
 0x251   :  { %v11239_v44 = vpop.permute.xlu1 %764  ;;  %v11241_v39 = vpop.permute.xlu0 %662 }
 0x255   :  { %v11253_v35 = vpop.permute.xlu1 %713  ;;  %v763_v47 = vpop.permute.xlu0 %762 }
 0x256   :  { %v775_v42 = vsel %vm774_vm10, %v761_v31, %v763_v47  ;;  %v776_v14 = vsel %vm774_vm10, %v763_v47, %v11239_v44 }
 0x257   :  { %v789_v25 = vadd.f32 %v775_v42, %v736_v38  ;;  %v790_v6 = vadd.f32 %v776_v14, %v737_v55  ;;  %v456_v42 = vadd.f32 %v443_v54, %v403_v8  ;;  %v352_v38 = vmul.f32 %v11039_v60, %v10954_v49 }
 0x258   :  { %v353_v60 = vmul.f32 %v11081_v22, %v10954_v49  ;;  %v672_v22 = vsel %vm668_vm8, %v11229_v46, %v11241_v39 }
 0x259   :  { %v814_v58 = vpop.permute.xlu1 %813  ;;  %v11261_v41 = vpop.permute.xlu0 %574  ;;  %v509_v55 = vadd.f32 %v496_v16, %v456_v42 }
 0x25a   :  { %v841_v26 = vadd.f32 %v814_v58, %v788_v56  ;;  %v581_v54 = vsel %vm576_vm7, %v11224_v20, %v11261_v41 }
 0x25c   :  { %v854_v9 = vadd.f32 %v10958_v51, %v841_v26 }
 0x25d   :  { %v11270_v21 = vpop.permute.xlu1 %817  ;;  %v11272_v36 = vpop.permute.xlu0 %715 }
 0x25e   :  { %v861_v33 = vmax.f32 %v854_v9, 0.0 }
 0x260   :  { %v923_v7 = vmul.f32 %v10956_v50, %v861_v33  ;;  %v392_v50 = vsel %vm386_vm2, %v11202_v59, %v11212_v4  ;;  %v445_v59 = vsel %vm439_vm5, %v11208_v0, %v11220_v17 }
 0x261   :  { %v11278_v56 = vpop.permute.xlu1 %666  ;;  %v816_v32 = vpop.permute.xlu0 %815  ;;  %v405_v34 = vadd.f32 %v392_v50, %v352_v38 }
 0x262   :  { %v828_v31 = vsel %vm827_vm11, %v814_v58, %v816_v32  ;;  %v829_v47 = vsel %vm827_vm11, %v816_v32, %v11270_v21  ;;  %937 = vrot.lane.b32.xlu0 %v923_v7, %s10772_s1  ;;  %v351_v58 = vmul.f32 %v11042_v61, %v10954_v49  ;;  %v444_v61 = vsel %vm439_vm5, %v11210_v1, %v11208_v0 }
 0x263   :  { %v842_v63 = vadd.f32 %v828_v31, %v789_v25  ;;  %v843_v26 = vadd.f32 %v829_v47, %v790_v6  ;;  %v579_v1 = vsel %vm576_vm7, %v11214_v5, %v11226_v24  ;;  %v671_v5 = vsel %vm668_vm8, %v11222_v19, %v11229_v46 }
 0x264   :  { %v404_v29 = vadd.f32 %v391_v28, %v351_v58  ;;  %v592_v47 = vadd.f32 %v579_v1, %v509_v55  ;;  %v498_v49 = vsel %vm492_vm6, %v11216_v10, %v11237_v43  ;;  %v724_v0 = vsel %vm721_vm9, %v11231_v27, %v11253_v35 }
 0x265   :  { %v855_v3 = vadd.f32 %v10958_v51, %v842_v63  ;;  %v856_v2 = vadd.f32 %v10958_v51, %v843_v26  ;;  %v11299_v9 = vpop.permute.xlu1 %768  ;;  %v665_v37 = vpop.permute.xlu0 %664  ;;  %v406_v19 = vadd.f32 %v11212_v4, %v353_v60  ;;  %v458_v24 = vadd.f32 %v445_v59, %v405_v34 }
 0x266   :  { %v457_v62 = vadd.f32 %v444_v61, %v404_v29  ;;  %v685_v63 = vadd.f32 %v671_v5, %v592_v47  ;;  %v725_v10 = vsel %vm721_vm9, %v11253_v35, %v11272_v36 }
 0x267   :  { %v862_v14 = vmax.f32 %v855_v3, 0.0  ;;  %v863_v33 = vmax.f32 %v856_v2, 0.0  ;;  %v459_v27 = vadd.f32 %v11220_v17, %v406_v19  ;;  %v511_v58 = vadd.f32 %v498_v49, %v458_v24 }
 0x268   :  { %v510_v31 = vadd.f32 %v497_v53, %v457_v62  ;;  %v738_v8 = vadd.f32 %v724_v0, %v685_v63  ;;  %v673_v3 = vsel %vm668_vm8, %v11241_v39, %v665_v37 }
 0x269   :  { %v720_v7 = vpop.permute.xlu1 %719  ;;  %v767_v25 = vpop.permute.xlu0 %766  ;;  %v924_v6 = vmul.f32 %v911_v30, %v862_v14  ;;  %v925_v32 = vmul.f32 %v912_v13, %v863_v33  ;;  %v512_v20 = vadd.f32 %v11237_v43, %v459_v27  ;;  %v594_v30 = vadd.f32 %v581_v54, %v511_v58  ;;  %v971_v54 = vld [vmem:[#allocation2] sm:$0xf] }
 0x26a   :  { %v593_v57 = vadd.f32 %v580_v12, %v510_v31  ;;  %v777_v46 = vsel %vm774_vm10, %v11239_v44, %v767_v25  ;;  %v778_v2 = vsel %vm774_vm10, %v767_v25, %v11299_v9  ;;  %v674_v44 = vsel %vm668_vm8, %v665_v37, %v11278_v56 }
 0x26b   :  { %939 = vrot.lane.b32.xlu1 %v924_v6, %s10772_s1  ;;  %941 = vrot.lane.b32.xlu0 %v925_v32, %s10772_s1  ;;  %v791_v61 = vadd.f32 %v777_v46, %v738_v8  ;;  %v595_v42 = vadd.f32 %v11261_v41, %v512_v20  ;;  %v687_v14 = vadd.f32 %v673_v3, %v594_v30 }
 0x26c   :  { %v686_v4 = vadd.f32 %v672_v22, %v593_v57 }
 0x26d   :  { %v822_v26 = vpop.permute.xlu1 %821  ;;  %v718_v28 = vpop.permute.xlu0 %717  ;;  %v688_v50 = vadd.f32 %v674_v44, %v595_v42 }
 0x26e   :  { %v739_v13 = vadd.f32 %v725_v10, %v686_v4  ;;  %v726_v17 = vsel %vm721_vm9, %v11272_v36, %v718_v28  ;;  %v727_v38 = vsel %vm721_vm9, %v718_v28, %v720_v7 }
 0x26f   :  { %v740_v53 = vadd.f32 %v726_v17, %v687_v14  ;;  %v741_v55 = vadd.f32 %v727_v38, %v688_v50 }
 0x270   :  { %v792_v43 = vadd.f32 %v778_v2, %v739_v13 }
 0x271   :  { %v773_v35 = vpop.permute.xlu1 %772  ;;  %v820_v16 = vpop.permute.xlu0 %819 }
 0x272   :  { %v830_v29 = vsel %vm827_vm11, %v11270_v21, %v820_v16  ;;  %v831_v39 = vsel %vm827_vm11, %v820_v16, %v822_v26 }
 0x273   :  { %v844_v33 = vadd.f32 %v830_v29, %v791_v61  ;;  %v845_v1 = vadd.f32 %v831_v39, %v792_v43 }
 0x275   :  { %v857_v56 = vadd.f32 %v10958_v51, %v844_v33  ;;  %v824_v37 = vpop.permute.xlu1 %823  ;;  %v771_v62 = vpop.permute.xlu0 %770  ;;  %v858_v6 = vadd.f32 %v10958_v51, %v845_v1  ;;  %v2238_v33 = vld [vmem:[#allocation2 + $0x38] sm:$0xf] }
 0x276   :  { %v779_v36 = vsel %vm774_vm10, %v11299_v9, %v771_v62  ;;  %v780_v21 = vsel %vm774_vm10, %v771_v62, %v773_v35  ;;  %v832_v41 = vsel %vm827_vm11, %v822_v26, %v824_v37 }
 0x277   :  { %v793_v25 = vadd.f32 %v779_v36, %v740_v53  ;;  %v794_v32 = vadd.f32 %v780_v21, %v741_v55  ;;  %v864_v59 = vmax.f32 %v857_v56, 0.0  ;;  %v865_v0 = vmax.f32 %v858_v6, 0.0 }
 0x279   :  { %v846_v7 = vadd.f32 %v832_v41, %v793_v25  ;;  %v906_v60 = vpop.permute.xlu1 %905  ;;  %v826_v12 = vpop.permute.xlu0 %825 }
 0x27a   :  { %v913_v5 = vsel %vm576_vm7, %v10960_v52, %v906_v60  ;;  %v833_v34 = vsel %vm827_vm11, %v824_v37, %v826_v12 }
 0x27b   :  { %v926_v31 = vmul.f32 %v913_v5, %v864_v59  ;;  %v847_v9 = vadd.f32 %v833_v34, %v794_v32  ;;  %v859_v47 = vadd.f32 %v10958_v51, %v846_v7  ;;  %v11524_v5 = vld [vmem:[#allocation2] sm:$0xff] }
 0x27c   :  { %v3267_v34 = vld [vmem:[%s12580_s5] sm:$0xff] }
 0x27d   :  { %v860_v49 = vadd.f32 %v10958_v51, %v847_v9  ;;  %v910_v22 = vpop.permute.xlu1 %909  ;;  %943 = vrot.lane.b32.xlu1 %v926_v31, %s10772_s1  ;;  %v866_v19 = vmax.f32 %v859_v47, 0.0  ;;  %v908_v24 = vpop.permute.xlu0 %907  ;;  %v11391_v51 = vld [vmem:[%s12579_s4] sm:$0xff]  ;;  %s10777_s4 = smov 112  }
 0x27e   :  { %v914_v57 = vsel %vm576_vm7, %v906_v60, %v908_v24  ;;  %v915_v63 = vsel %vm576_vm7, %v908_v24, %v910_v22 }
 0x27f   :  { %v867_v26 = vmax.f32 %v860_v49, 0.0  ;;  %v927_v52 = vmul.f32 %v914_v57, %v865_v0  ;;  %v928_v28 = vmul.f32 %v915_v63, %v866_v19 }
 0x281   :  { %947 = vrot.lane.b32.xlu1 %v928_v28, %s10772_s1  ;;  %945 = vrot.lane.b32.xlu0 %v927_v52, %s10772_s1  ;;  %v929_v10 = vmul.f32 %v910_v22, %v867_v26 }
 0x285   :  { %949 = vrot.lane.b32.xlu0 %v929_v10, %s10772_s1  ;;  %988 = vrot.lane.b32.xlu1 %v971_v54, %s10763_s27 }
 0x289   :  { %979 = vrot.lane.b32.xlu0 %v11391_v51, %s10757_s21  ;;  %1238 = vrot.lane.b32.xlu1 %v971_v54, %s10772_s1 }
 0x28d   :  { %1487 = vrot.lane.b32.xlu0 %v971_v54, %s10773_s3  ;;  %1485 = vrot.lane.b32.xlu1 %v11391_v51, %s10774_s18 }
 0x291   :  { %1743 = vrot.lane.b32.xlu0 %v971_v54, %s10775_s19  ;;  %1741 = vrot.lane.b32.xlu1 %v11391_v51, %s10776_s22 }
 0x295   :  { %1997 = vrot.lane.b32.xlu0 %v11391_v51, %s10777_s4 }
 0x299   :  { %2239 = vrot.lane.b32.xlu0 %v11391_v51, %s10767_s14 }
 0x2d4   :  { %v938_v46 = vpop.permute.xlu0 %937 }
 0x2dd   :  { %v940_v27 = vpop.permute.xlu1 %939  ;;  %v942_v58 = vpop.permute.xlu0 %941 }
 0x2de   :  { %v952_v4 = vsel %vm951_vm12, %v938_v46, %v940_v27  ;;  %v953_v8 = vsel %vm951_vm12, %v940_v27, %v942_v58 }
 0x2df   :  { %964 = vst [vmem:[#allocation2 + $0x8] sm:$0xf] %v952_v4  ;;  %965 = vst [vmem:[#allocation2 + $0x10] sm:$0xf] %v953_v8 }
 0x2e6   :  { %v11408_v3 = vld [vmem:[#allocation2 + $0x8] sm:$0xf]  ;;  %v11410_v2 = vld [vmem:[#allocation2 + $0x10] sm:$0xf] }
 0x2e7   :  { %990 = vrot.lane.b32.xlu1 %v11408_v3, %s10763_s27  ;;  %992 = vrot.lane.b32.xlu0 %v11410_v2, %s10763_s27  ;;  %v2233_v43 = vld [vmem:[#allocation2 + $0x10] sm:$0xf]  ;;  %v2232_v38 = vld [vmem:[#allocation2 + $0x8] sm:$0xf] }
 0x2ef   :  { %v944_v20 = vpop.permute.xlu1 %943 }
 0x2f0   :  { %v954_v30 = vsel %vm951_vm12, %v942_v58, %v944_v20 }
 0x2f1   :  { %966 = vst [vmem:[#allocation2 + $0x18] sm:$0xf] %v954_v30 }
 0x2f3   :  { %v948_v13 = vpop.permute.xlu1 %947  ;;  %v946_v61 = vpop.permute.xlu0 %945 }
 0x2f4   :  { %v955_v35 = vsel %vm951_vm12, %v944_v20, %v946_v61  ;;  %v956_v16 = vsel %vm951_vm12, %v946_v61, %v948_v13 }
 0x2f5   :  { %967 = vst [vmem:[#allocation2 + $0x20] sm:$0xf] %v955_v35  ;;  %968 = vst [vmem:[#allocation2 + $0x28] sm:$0xf] %v956_v16 }
 0x2f7   :  { %v950_v44 = vpop.permute.xlu0 %949  ;;  %v989_v62 = vpop.permute.xlu1 %988 }
 0x2f8   :  { %v957_v17 = vsel %vm951_vm12, %v948_v13, %v950_v44  ;;  %v11420_v29 = vld [vmem:[#allocation2 + $0x18] sm:$0xf] }
 0x2f9   :  { %969 = vst [vmem:[#allocation2 + $0x30] sm:$0xf] %v957_v17  ;;  %994 = vrot.lane.b32.xlu1 %v11420_v29, %s10763_s27  ;;  %v2234_v1 = vld [vmem:[#allocation2 + $0x18] sm:$0xf] }
 0x2fb   :  { %v11484_v37 = vpop.permute.xlu0 %979  ;;  %v1239_v21 = vpop.permute.xlu1 %1238 }
 0x2fc   :  { %v11424_v39 = vld [vmem:[#allocation2 + $0x28] sm:$0xf]  ;;  %v11426_v42 = vld [vmem:[#allocation2 + $0x20] sm:$0xf] }
 0x2fd   :  { %998 = vrot.lane.b32.xlu1 %v11424_v39, %s10763_s27  ;;  %996 = vrot.lane.b32.xlu0 %v11426_v42, %s10763_s27  ;;  %v2235_v50 = vld [vmem:[#allocation2 + $0x20] sm:$0xf]  ;;  %v2236_v56 = vld [vmem:[#allocation2 + $0x28] sm:$0xf] }
 0x2ff   :  { %v11491_v36 = vpop.permute.xlu0 %1487  ;;  %v11501_v25 = vpop.permute.xlu1 %1485 }
 0x300   :  { %v11432_v14 = vld [vmem:[#allocation2 + $0x30] sm:$0xf] }
 0x301   :  { %1240 = vrot.lane.b32.xlu1 %v11408_v3, %s10772_s1  ;;  %1000 = vrot.lane.b32.xlu0 %v11432_v14, %s10763_s27  ;;  %v2237_v53 = vld [vmem:[#allocation2 + $0x30] sm:$0xf] }
 0x303   :  { %v11495_v55 = vpop.permute.xlu0 %1743  ;;  %v11507_v6 = vpop.permute.xlu1 %1741 }
 0x305   :  { %1246 = vrot.lane.b32.xlu1 %v11426_v42, %s10772_s1  ;;  %1242 = vrot.lane.b32.xlu0 %v11410_v2, %s10772_s1 }
 0x307   :  { %v11503_v41 = vpop.permute.xlu0 %1997 }
 0x309   :  { %1250 = vrot.lane.b32.xlu1 %v11432_v14, %s10772_s1  ;;  %1244 = vrot.lane.b32.xlu0 %v11420_v29, %s10772_s1 }
 0x30b   :  { %v11509_v32 = vpop.permute.xlu0 %2239 }
 0x30d   :  { %1491 = vrot.lane.b32.xlu1 %v11410_v2, %s10773_s3  ;;  %1248 = vrot.lane.b32.xlu0 %v11424_v39, %s10772_s1 }
 0x311   :  { %1495 = vrot.lane.b32.xlu1 %v11426_v42, %s10773_s3  ;;  %1489 = vrot.lane.b32.xlu0 %v11408_v3, %s10773_s3 }
 0x315   :  { %1499 = vrot.lane.b32.xlu1 %v11432_v14, %s10773_s3  ;;  %1493 = vrot.lane.b32.xlu0 %v11420_v29, %s10773_s3 }
 0x319   :  { %1747 = vrot.lane.b32.xlu1 %v11410_v2, %s10775_s19  ;;  %1497 = vrot.lane.b32.xlu0 %v11424_v39, %s10773_s3 }
 0x31d   :  { %1751 = vrot.lane.b32.xlu1 %v11426_v42, %s10775_s19  ;;  %1745 = vrot.lane.b32.xlu0 %v11408_v3, %s10775_s19 }
 0x321   :  { %1755 = vrot.lane.b32.xlu1 %v11432_v14, %s10775_s19  ;;  %1749 = vrot.lane.b32.xlu0 %v11420_v29, %s10775_s19 }
 0x325   :  { %2250 = vrot.lane.b32.xlu1 %v2233_v43, %s10769_s16  ;;  %1753 = vrot.lane.b32.xlu0 %v11424_v39, %s10775_s19 }
 0x329   :  { %2248 = vrot.lane.b32.xlu1 %v2232_v38, %s10769_s16  ;;  %2260 = vrot.lane.b32.xlu0 %v2238_v33, %s10769_s16 }
 0x32d   :  { %2254 = vrot.lane.b32.xlu1 %v2235_v50, %s10769_s16  ;;  %2501 = vrot.lane.b32.xlu0 %v11391_v51, %s10778_s24 }
 0x331   :  { %2258 = vrot.lane.b32.xlu1 %v2237_v53, %s10769_s16  ;;  %2515 = vrot.lane.b32.xlu0 %v2238_v33, %s10779_s25 }
 0x335   :  { %2505 = vrot.lane.b32.xlu1 %v2233_v43, %s10779_s25  ;;  %2252 = vrot.lane.b32.xlu0 %v2234_v1, %s10769_s16 }
 0x339   :  { %2503 = vrot.lane.b32.xlu1 %v2232_v38, %s10779_s25  ;;  %2256 = vrot.lane.b32.xlu0 %v2236_v56, %s10769_s16 }
 0x33d   :  { %2509 = vrot.lane.b32.xlu1 %v2235_v50, %s10779_s25  ;;  %2757 = vrot.lane.b32.xlu0 %v11391_v51, %s10780_s26 }
 0x341   :  { %2513 = vrot.lane.b32.xlu1 %v2237_v53, %s10779_s25  ;;  %2507 = vrot.lane.b32.xlu0 %v2234_v1, %s10779_s25 }
 0x345   :  { %2761 = vrot.lane.b32.xlu1 %v2233_v43, %s10756_s20  ;;  %2511 = vrot.lane.b32.xlu0 %v2236_v56, %s10779_s25 }
 0x349   :  { %2759 = vrot.lane.b32.xlu1 %v2232_v38, %s10756_s20  ;;  %2771 = vrot.lane.b32.xlu0 %v2238_v33, %s10756_s20 }
 0x34d   :  { %2765 = vrot.lane.b32.xlu1 %v2235_v50, %s10756_s20  ;;  %2763 = vrot.lane.b32.xlu0 %v2234_v1, %s10756_s20 }
 0x351   :  { %2769 = vrot.lane.b32.xlu1 %v2237_v53, %s10756_s20  ;;  %2767 = vrot.lane.b32.xlu0 %v2236_v56, %s10756_s20 }
 0x355   :  { %3016 = vrot.lane.b32.xlu1 %v2233_v43, %s10749_s2  ;;  %3018 = vrot.lane.b32.xlu0 %v2234_v1, %s10749_s2 }
 0x359   :  { %v991_v7 = vpop.permute.xlu1 %990  ;;  %3014 = vrot.lane.b32.xlu1 %v2232_v38, %s10749_s2  ;;  %3020 = vrot.lane.b32.xlu0 %v2235_v50, %s10749_s2  ;;  %v993_v60 = vpop.permute.xlu0 %992 }
 0x35a   :  { %v1003_v59 = vsel %vm1002_vm13, %v989_v62, %v991_v7  ;;  %v1004_v12 = vsel %vm1002_vm13, %v991_v7, %v993_v60 }
 0x35b   :  { %10241 = vmatprep.subr.msk.mxu1 %vm1012_vm14, %v1004_v12 }
 0x35c   :  { %10242 = vmatpush1.msk.msra.mxu1 %vm1012_vm14, %v1003_v59 }
 0x35d   :  { %3022 = vrot.lane.b32.xlu1 %v2236_v56, %s10749_s2  ;;  %3012 = vrot.lane.b32.xlu0 %v11391_v51, %s10781_s28 }
 0x35e   :  { %10243 = vmatmul.mubr.msk.f32.vlgmr.msra.gmra.mrb[2].mxu1 %vm1009_vm15, %v11484_v37 }
 0x35f   :  { %1160 = vmatprep.mubr.f32.mxu1 %v11524_v5 }
 0x361   :  { %3024 = vrot.lane.b32.xlu1 %v2237_v53, %s10749_s2  ;;  %3026 = vrot.lane.b32.xlu0 %v2238_v33, %s10749_s2 }
 0x365   :  { %3270 = vperm.xlu1 %10709, %v3267_v34   ;;  %3315 = vrot.lane.b32.xlu0 %v11524_v5, %s10763_s27 }
 0x369   :  { %3556 = vrot.lane.b32.xlu0 %v11524_v5, %s10772_s1 }
 0x36b   :  { %v995_v31 = vpop.permute.xlu1 %994 }
 0x36c   :  { %v1005_v22 = vsel %vm1002_vm13, %v993_v60, %v995_v31 }
 0x36f   :  { %v999_v9 = vpop.permute.xlu1 %998  ;;  %v997_v47 = vpop.permute.xlu0 %996 }
 0x370   :  { %v1006_v49 = vsel %vm1002_vm13, %v995_v31, %v997_v47  ;;  %v1007_v57 = vsel %vm1002_vm13, %v997_v47, %v999_v9 }
 0x371   :  { %10244 = vmatprep.subr.msk.mxu1 %vm1012_vm14, %v1006_v49 }
 0x372   :  { %10245 = vmatpush1.msk.msra.mxu1 %vm1012_vm14, %v1005_v22 }
 0x373   :  { %v1241_v0 = vpop.permute.xlu1 %1240  ;;  %10246 = vmatmul.mubr.msk.f32.vlgmr.msra.gmra.mrb[4].mxu1 %vm1009_vm15, %v11484_v37  ;;  %v1001_v19 = vpop.permute.xlu0 %1000 }
 0x374   :  { %v1008_v24 = vsel %vm1002_vm13, %v999_v9, %v1001_v19  ;;  %1231 = vmatprep.mubr.f32.mxu1 %v11524_v5  ;;  %v1252_v28 = vsel %vm951_vm12, %v1239_v21, %v1241_v0 }
 0x375   :  { %10247 = vmatprep.subr.msk.mxu1 %vm1012_vm14, %v1008_v24 }
 0x376   :  { %10248 = vmatpush1.msk.msra.mxu1 %vm1012_vm14, %v1007_v57 }
 0x377   :  { %v1247_v63 = vpop.permute.xlu1 %1246  ;;  %10249 = vmatmul.mubr.msk.f32.vlgmr.msra.gmra.mrb[6].mxu1 %vm1009_vm15, %v11484_v37  ;;  %v1243_v26 = vpop.permute.xlu0 %1242 }
 0x378   :  { %v1253_v52 = vsel %vm951_vm12, %v1241_v0, %v1243_v26  ;;  %1336 = vmatprep.mubr.f32.mxu1 %v11524_v5 }
 0x379   :  { %10250 = vmatprep.subr.msk.mxu1 %vm1012_vm14, %v1253_v52 }
 0x37a   :  { %10251 = vmatpush1.msk.msra.mxu1 %vm1012_vm14, %v1252_v28 }
 0x37b   :  { %v1251_v54 = vpop.permute.xlu1 %1250  ;;  %10252 = vmatmul.mubr.msk.f32.vlgmr.msra.gmra.mrb[2].mxu1 %vm1009_vm15, %v11391_v51  ;;  %v1245_v10 = vpop.permute.xlu0 %1244 }
 0x37c   :  { %v1254_v46 = vsel %vm951_vm12, %v1243_v26, %v1245_v10  ;;  %v1255_v27 = vsel %vm951_vm12, %v1245_v10, %v1247_v63  ;;  %1407 = vmatprep.mubr.f32.mxu1 %v11524_v5 }
 0x37d   :  { %10253 = vmatprep.subr.msk.mxu1 %vm1012_vm14, %v1255_v27 }
 0x37e   :  { %10254 = vmatpush1.msk.msra.mxu1 %vm1012_vm14, %v1254_v46 }
 0x37f   :  { %v1492_v58 = vpop.permute.xlu1 %1491  ;;  %10255 = vmatmul.mubr.msk.f32.vlgmr.msra.gmra.mrb[4].mxu1 %vm1009_vm15, %v11391_v51  ;;  %v1249_v4 = vpop.permute.xlu0 %1248 }
 0x380   :  { %v1256_v8 = vsel %vm951_vm12, %v1247_v63, %v1249_v4  ;;  %v1257_v20 = vsel %vm951_vm12, %v1249_v4, %v1251_v54  ;;  %1478 = vmatprep.mubr.f32.mxu1 %v11524_v5 }
 0x381   :  { %10256 = vmatprep.subr.msk.mxu1 %vm1012_vm14, %v1257_v20 }
 0x382   :  { %10257 = vmatpush1.msk.msra.mxu1 %vm1012_vm14, %v1256_v8 }
 0x383   :  { %v1496_v30 = vpop.permute.xlu1 %1495  ;;  %10258 = vmatmul.mubr.msk.f32.vlgmr.msra.gmra.mrb[6].mxu1 %vm1009_vm15, %v11391_v51  ;;  %v1490_v13 = vpop.permute.xlu0 %1489 }
 0x384   :  { %v1502_v61 = vsel %vm1501_vm1, %v11491_v36, %v1490_v13  ;;  %v1503_v35 = vsel %vm1501_vm1, %v1490_v13, %v1492_v58  ;;  %1586 = vmatprep.mubr.f32.mxu1 %v11524_v5 }
 0x385   :  { %10259 = vmatprep.subr.msk.mxu1 %vm1012_vm14, %v1503_v35 }
 0x386   :  { %10260 = vmatpush1.msk.msra.mxu1 %vm1012_vm14, %v1502_v61 }
 0x387   :  { %v1500_v16 = vpop.permute.xlu1 %1499  ;;  %10261 = vmatmul.mubr.msk.f32.vlgmr.msra.gmra.mrb[2].mxu1 %vm1009_vm15, %v11501_v25  ;;  %v1494_v44 = vpop.permute.xlu0 %1493 }
 0x388   :  { %v1504_v17 = vsel %vm1501_vm1, %v1492_v58, %v1494_v44  ;;  %v1505_v51 = vsel %vm1501_vm1, %v1494_v44, %v1496_v30  ;;  %1657 = vmatprep.mubr.f32.mxu1 %v11524_v5 }
 0x389   :  { %10262 = vmatprep.subr.msk.mxu1 %vm1012_vm14, %v1505_v51 }
 0x38a   :  { %10263 = vmatpush1.msk.msra.mxu1 %vm1012_vm14, %v1504_v17 }
 0x38b   :  { %v1748_v43 = vpop.permute.xlu1 %1747  ;;  %10264 = vmatmul.mubr.msk.f32.vlgmr.msra.gmra.mrb[4].mxu1 %vm1009_vm15, %v11501_v25  ;;  %v1498_v33 = vpop.permute.xlu0 %1497 }
 0x38c   :  { %v1506_v38 = vsel %vm1501_vm1, %v1496_v30, %v1498_v33  ;;  %v1507_v50 = vsel %vm1501_vm1, %v1498_v33, %v1500_v16  ;;  %1728 = vmatprep.mubr.f32.mxu1 %v11524_v5 }
 0x38d   :  { %10265 = vmatprep.subr.msk.mxu1 %vm1012_vm14, %v1507_v50 }
 0x38e   :  { %10266 = vmatpush1.msk.msra.mxu1 %vm1012_vm14, %v1506_v38 }
 0x38f   :  { %v1752_v53 = vpop.permute.xlu1 %1751  ;;  %10267 = vmatmul.mubr.msk.f32.vlgmr.msra.gmra.mrb[6].mxu1 %vm1009_vm15, %v11501_v25  ;;  %v1746_v1 = vpop.permute.xlu0 %1745 }
 0x390   :  { %v1758_v56 = vsel %vm1757_vm3, %v11495_v55, %v1746_v1  ;;  %v1759_v37 = vsel %vm1757_vm3, %v1746_v1, %v1748_v43  ;;  %1842 = vmatprep.mubr.f32.mxu1 %v11524_v5 }
 0x391   :  { %10268 = vmatprep.subr.msk.mxu1 %vm1012_vm14, %v1759_v37 }
 0x392   :  { %10269 = vmatpush1.msk.msra.mxu1 %vm1012_vm14, %v1758_v56 }
 0x393   :  { %v1756_v62 = vpop.permute.xlu1 %1755  ;;  %10270 = vmatmul.mubr.msk.f32.vlgmr.msra.gmra.mrb[2].mxu1 %vm1009_vm15, %v11507_v6  ;;  %v1750_v36 = vpop.permute.xlu0 %1749 }
 0x394   :  { %v1760_v21 = vsel %vm1757_vm3, %v1748_v43, %v1750_v36  ;;  %v1761_v25 = vsel %vm1757_vm3, %v1750_v36, %v1752_v53  ;;  %1913 = vmatprep.mubr.f32.mxu1 %v11524_v5 }
 0x395   :  { %10271 = vmatprep.subr.msk.mxu1 %vm1012_vm14, %v1761_v25 }
 0x396   :  { %10272 = vmatpush1.msk.msra.mxu1 %vm1012_vm14, %v1760_v21 }
 0x397   :  { %v2251_v55 = vpop.permute.xlu1 %2250  ;;  %10273 = vmatmul.mubr.msk.f32.vlgmr.msra.gmra.mrb[4].mxu1 %vm1009_vm15, %v11507_v6  ;;  %v1754_v7 = vpop.permute.xlu0 %1753 }
 0x398   :  { %v1762_v60 = vsel %vm1757_vm3, %v1752_v53, %v1754_v7  ;;  %v1763_v59 = vsel %vm1757_vm3, %v1754_v7, %v1756_v62  ;;  %1984 = vmatprep.mubr.f32.mxu1 %v11524_v5 }
 0x399   :  { %10274 = vmatprep.subr.msk.mxu1 %vm1012_vm14, %v1763_v59 }
 0x39a   :  { %10275 = vmatpush1.msk.msra.mxu1 %vm1012_vm14, %v1762_v60  ;;  %v11714_v60 = vld [vmem:[%s12581_s6] sm:$0xff]  ;;  %s10782_s6 = smov 80  }
 0x39b   :  { %v2249_v12 = vpop.permute.xlu1 %2248  ;;  %10276 = vmatmul.mubr.msk.f32.vlgmr.msra.gmra.mrb[6].mxu1 %vm1009_vm15, %v11507_v6  ;;  %10277 = vmatprep.subr.msk.mxu1 %vm1012_vm14, %v11410_v2  ;;  %v2261_v34 = vpop.permute.xlu0 %2260 }
 0x39c   :  { %10278 = vmatpush1.msk.msra.mxu1 %vm1012_vm14, %v11408_v3  ;;  %2077 = vmatprep.mubr.f32.mxu1 %v11524_v5 }
 0x39d   :  { %10280 = vmatprep.subr.msk.mxu1 %vm1012_vm14, %v11426_v42  ;;  %3306 = vrot.lane.b32.xlu1 %v11714_v60, %s10774_s18 }
 0x39f   :  { %v2255_v31 = vpop.permute.xlu1 %2254  ;;  %10279 = vmatmul.mubr.msk.f32.vlgmr.msra.gmra.mrb[2].mxu1 %vm1009_vm15, %v11503_v41  ;;  %v2502_v9 = vpop.permute.xlu0 %2501 }
 0x3a0   :  { %10281 = vmatpush1.msk.msra.mxu1 %vm1012_vm14, %v11420_v29  ;;  %2148 = vmatprep.mubr.f32.mxu1 %v11524_v5 }
 0x3a1   :  { %10283 = vmatprep.subr.msk.mxu1 %vm1012_vm14, %v11432_v14  ;;  %v2262_v14 = vsel %vm386_vm2, %v2249_v12, %v2251_v55 }
 0x3a3   :  { %v2259_v2 = vpop.permute.xlu1 %2258  ;;  %10282 = vmatmul.mubr.msk.f32.vlgmr.msra.gmra.mrb[4].mxu1 %vm1009_vm15, %v11503_v41  ;;  %v2516_v3 = vpop.permute.xlu0 %2515 }
 0x3a4   :  { %10284 = vmatpush1.msk.msra.mxu1 %vm1012_vm14, %v11424_v39  ;;  %2219 = vmatprep.mubr.f32.mxu1 %v11524_v5  ;;  %v2267_v22 = vsel %vm386_vm2, %v2259_v2, %v2261_v34 }
 0x3a7   :  { %v2506_v42 = vpop.permute.xlu1 %2505  ;;  %10285 = vmatmul.mubr.msk.f32.vlgmr.msra.gmra.mrb[6].mxu1 %vm1009_vm15, %v11503_v41  ;;  %v2253_v29 = vpop.permute.xlu0 %2252 }
 0x3a8   :  { %v2263_v6 = vsel %vm386_vm2, %v2251_v55, %v2253_v29  ;;  %2346 = vmatprep.mubr.f32.mxu1 %v11524_v5  ;;  %v2264_v41 = vsel %vm386_vm2, %v2253_v29, %v2255_v31 }
 0x3a9   :  { %10286 = vmatprep.subr.msk.mxu1 %vm1012_vm14, %v2263_v6 }
 0x3aa   :  { %10287 = vmatpush1.msk.msra.mxu1 %vm1012_vm14, %v2262_v14 }
 0x3ab   :  { %v2504_v47 = vpop.permute.xlu1 %2503  ;;  %10288 = vmatmul.mubr.msk.f32.vlgmr.msra.gmra.mrb[2].mxu1 %vm1009_vm15, %v11509_v32  ;;  %v2257_v39 = vpop.permute.xlu0 %2256 }
 0x3ac   :  { %v2265_v49 = vsel %vm386_vm2, %v2255_v31, %v2257_v39  ;;  %2417 = vmatprep.mubr.f32.mxu1 %v11524_v5  ;;  %v2266_v0 = vsel %vm386_vm2, %v2257_v39, %v2259_v2  ;;  %v2518_v52 = vsel %vm2517_vm4, %v2504_v47, %v2506_v42 }
 0x3ad   :  { %10289 = vmatprep.subr.msk.mxu1 %vm1012_vm14, %v2265_v49 }
 0x3ae   :  { %10290 = vmatpush1.msk.msra.mxu1 %vm1012_vm14, %v2264_v41 }
 0x3af   :  { %v2510_v19 = vpop.permute.xlu1 %2509  ;;  %10291 = vmatmul.mubr.msk.f32.vlgmr.msra.gmra.mrb[4].mxu1 %vm1009_vm15, %v11509_v32  ;;  %10292 = vmatprep.subr.msk.mxu1 %vm1012_vm14, %v2267_v22  ;;  %v2758_v24 = vpop.permute.xlu0 %2757 }
 0x3b0   :  { %10293 = vmatpush1.msk.msra.mxu1 %vm1012_vm14, %v2266_v0  ;;  %2488 = vmatprep.mubr.f32.mxu1 %v11524_v5 }
 0x3b3   :  { %v2514_v57 = vpop.permute.xlu1 %2513  ;;  %10294 = vmatmul.mubr.msk.f32.vlgmr.msra.gmra.mrb[6].mxu1 %vm1009_vm15, %v11509_v32  ;;  %v2508_v63 = vpop.permute.xlu0 %2507 }
 0x3b4   :  { %v2519_v26 = vsel %vm2517_vm4, %v2506_v42, %v2508_v63  ;;  %2602 = vmatprep.mubr.f32.mxu1 %v11524_v5  ;;  %v2520_v32 = vsel %vm2517_vm4, %v2508_v63, %v2510_v19  ;;  %v2523_v46 = vsel %vm2517_vm4, %v2514_v57, %v2516_v3 }
 0x3b5   :  { %10295 = vmatprep.subr.msk.mxu1 %vm1012_vm14, %v2519_v26 }
 0x3b6   :  { %10296 = vmatpush1.msk.msra.mxu1 %vm1012_vm14, %v2518_v52 }
 0x3b7   :  { %v2762_v28 = vpop.permute.xlu1 %2761  ;;  %10297 = vmatmul.mubr.msk.f32.vlgmr.msra.gmra.mrb[2].mxu1 %vm1009_vm15, %v2502_v9  ;;  %v2512_v54 = vpop.permute.xlu0 %2511 }
 0x3b8   :  { %v2521_v10 = vsel %vm2517_vm4, %v2510_v19, %v2512_v54  ;;  %2673 = vmatprep.mubr.f32.mxu1 %v11524_v5  ;;  %v2522_v27 = vsel %vm2517_vm4, %v2512_v54, %v2514_v57 }
 0x3b9   :  { %10298 = vmatprep.subr.msk.mxu1 %vm1012_vm14, %v2521_v10 }
 0x3ba   :  { %10299 = vmatpush1.msk.msra.mxu1 %vm1012_vm14, %v2520_v32 }
 0x3bb   :  { %v2760_v58 = vpop.permute.xlu1 %2759  ;;  %10300 = vmatmul.mubr.msk.f32.vlgmr.msra.gmra.mrb[4].mxu1 %vm1009_vm15, %v2502_v9  ;;  %10301 = vmatprep.subr.msk.mxu1 %vm1012_vm14, %v2523_v46  ;;  %v2772_v4 = vpop.permute.xlu0 %2771 }
 0x3bc   :  { %10302 = vmatpush1.msk.msra.mxu1 %vm1012_vm14, %v2522_v27  ;;  %2744 = vmatprep.mubr.f32.mxu1 %v11524_v5  ;;  %v2773_v13 = vsel %vm492_vm6, %v2760_v58, %v2762_v28 }
 0x3bf   :  { %v2766_v8 = vpop.permute.xlu1 %2765  ;;  %10303 = vmatmul.mubr.msk.f32.vlgmr.msra.gmra.mrb[6].mxu1 %vm1009_vm15, %v2502_v9  ;;  %v2764_v20 = vpop.permute.xlu0 %2763 }
 0x3c0   :  { %v2774_v30 = vsel %vm492_vm6, %v2762_v28, %v2764_v20  ;;  %2857 = vmatprep.mubr.f32.mxu1 %v11524_v5  ;;  %v2775_v44 = vsel %vm492_vm6, %v2764_v20, %v2766_v8 }
 0x3c1   :  { %10304 = vmatprep.subr.msk.mxu1 %vm1012_vm14, %v2774_v30 }
 0x3c2   :  { %10305 = vmatpush1.msk.msra.mxu1 %vm1012_vm14, %v2773_v13  ;;  %v5528_v13 = vld [vmem:[%s12582_s7] sm:$0xff] }
 0x3c3   :  { %v2770_v61 = vpop.permute.xlu1 %2769  ;;  %10306 = vmatmul.mubr.msk.f32.vlgmr.msra.gmra.mrb[2].mxu1 %vm1009_vm15, %v2758_v24  ;;  %v2768_v35 = vpop.permute.xlu0 %2767 }
 0x3c4   :  { %v2776_v16 = vsel %vm492_vm6, %v2766_v8, %v2768_v35  ;;  %2928 = vmatprep.mubr.f32.mxu1 %v11524_v5  ;;  %v2778_v17 = vsel %vm492_vm6, %v2770_v61, %v2772_v4  ;;  %v2777_v51 = vsel %vm492_vm6, %v2768_v35, %v2770_v61 }
 0x3c5   :  { %10307 = vmatprep.subr.msk.mxu1 %vm1012_vm14, %v2776_v16 }
 0x3c6   :  { %10308 = vmatpush1.msk.msra.mxu1 %vm1012_vm14, %v2775_v44 }
 0x3c7   :  { %v3017_v43 = vpop.permute.xlu1 %3016  ;;  %10309 = vmatmul.mubr.msk.f32.vlgmr.msra.gmra.mrb[4].mxu1 %vm1009_vm15, %v2758_v24  ;;  %10310 = vmatprep.subr.msk.mxu1 %vm1012_vm14, %v2778_v17  ;;  %v3019_v33 = vpop.permute.xlu0 %3018 }
 0x3c8   :  { %10311 = vmatpush1.msk.msra.mxu1 %vm1012_vm14, %v2777_v51  ;;  %v3029_v38 = vsel %vm576_vm7, %v3017_v43, %v3019_v33  ;;  %2999 = vmatprep.mubr.f32.mxu1 %v11524_v5 }
 0x3c9   :  { %10313 = vmatprep.subr.msk.mxu1 %vm1012_vm14, %v3029_v38 }
 0x3cb   :  { %v3015_v50 = vpop.permute.xlu1 %3014  ;;  %10312 = vmatmul.mubr.msk.f32.vlgmr.msra.gmra.mrb[6].mxu1 %vm1009_vm15, %v2758_v24  ;;  %v3021_v53 = vpop.permute.xlu0 %3020 }
 0x3cc   :  { %v3028_v1 = vsel %vm576_vm7, %v3015_v50, %v3017_v43  ;;  %3112 = vmatprep.mubr.f32.mxu1 %v11524_v5  ;;  %v3030_v36 = vsel %vm576_vm7, %v3019_v33, %v3021_v53 }
 0x3cd   :  { %10314 = vmatpush1.msk.msra.mxu1 %vm1012_vm14, %v3028_v1 }
 0x3cf   :  { %v3023_v56 = vpop.permute.xlu1 %3022  ;;  %v3013_v37 = vpop.permute.xlu0 %3012 }
 0x3d0   :  { %10315 = vmatmul.mubr.msk.f32.vlgmr.msra.gmra.mrb[2].mxu1 %vm1009_vm15, %v3013_v37  ;;  %v3031_v62 = vsel %vm576_vm7, %v3021_v53, %v3023_v56 }
 0x3d1   :  { %10316 = vmatprep.subr.msk.mxu0 %vm1012_vm14, %v3031_v62  ;;  %3254 = vmatprep.mubr.f32.mxu1 %v11524_v5 }
 0x3d2   :  { %10317 = vmatpush1.msk.msra.mxu0 %vm1012_vm14, %v3030_v36 }
 0x3d3   :  { %v3025_v21 = vpop.permute.xlu1 %3024  ;;  %10318 = vmatmul.mubr.msk.f32.vlgmr.msra.gmra.mrb[0].mxu0 %vm1009_vm15, %v3013_v37  ;;  %v3027_v25 = vpop.permute.xlu0 %3026 }
 0x3d4   :  { %v3032_v55 = vsel %vm576_vm7, %v3023_v56, %v3025_v21  ;;  %v3033_v7 = vsel %vm576_vm7, %v3025_v21, %v3027_v25  ;;  %3407 = vmatprep.mubr.f32.mxu0 %v11524_v5 }
 0x3d5   :  { %10319 = vmatprep.subr.msk.mxu1 %vm1012_vm14, %v3033_v7 }
 0x3d6   :  { %10320 = vmatpush1.msk.msra.mxu1 %vm1012_vm14, %v3032_v55 }
 0x3d7   :  { %10321 = vmatmul.mubr.msk.f32.vlgmr.msra.gmra.mrb[6].mxu1 %vm1009_vm15, %v3013_v37  ;;  %v3316_v58 = vpop.permute.xlu0 %3315 }
 0x3d8   :  { %5668 = vmatprep.mubr.f32.mxu1 %v11524_v5 }
 0x3db   :  { %v3557_v8 = vpop.permute.xlu0 %3556 }
 0x3e4   :  { %v3271_v42 = vpop.permute.xlu1 %3270 }
 0x40f   :  { %v3307_v4 = vpop.permute.xlu1 %3306 }
 0x49a   :  { %v2930_v59 = vpop.f32.mrb[4].mxu1 }
 0x49b   :  { %v2932_v12 = vpop.f32.mrb[5].mxu1 }
 0x4a3   :  { %v3114_v34 = vpop.f32.mrb[2].mxu1 }
 0x4a4   :  { %v3116_v31 = vpop.f32.mrb[3].mxu1  ;;  %v3273_v41 = vadd.f32 %v3271_v42, %v3114_v34 }
 0x4a5   :  { %v3274_v24 = vadd.f32 %v3271_v42, %v3116_v31 }
 0x4a6   :  { %v3185_v9 = vpop.f32.mrb[0].mxu0  ;;  %v3279_v19 = vmax.f32 %v3273_v41, 0.0 }
 0x4a7   :  { %v10465_v2 = vadd.f32 %v3185_v9, %v2930_v59  ;;  %v3187_v3 = vpop.f32.mrb[1].mxu0  ;;  %v3280_v26 = vmax.f32 %v3274_v24, 0.0 }
 0x4a8   :  { %v10466_v29 = vadd.f32 %v3187_v3, %v2932_v12  ;;  %v11733_v63 = vmul.f32 %v3279_v19, %v10886_v15 }
 0x4a9   :  { %v3275_v6 = vadd.f32 %v10465_v2, %v3271_v42  ;;  %v11740_v52 = vmul.f32 %v3280_v26, %v10907_v23 }
 0x4aa   :  { %v3276_v14 = vadd.f32 %v10466_v29, %v3271_v42  ;;  %v3256_v47 = vpop.f32.mrb[6].mxu1 }
 0x4ab   :  { %v3281_v39 = vmax.f32 %v3275_v6, 0.0  ;;  %v3258_v49 = vpop.f32.mrb[7].mxu1  ;;  %v3277_v28 = vadd.f32 %v3271_v42, %v3256_v47 }
 0x4ac   :  { %v3282_v0 = vmax.f32 %v3276_v14, 0.0  ;;  %v3278_v10 = vadd.f32 %v3271_v42, %v3258_v49 }
 0x4ad   :  { %v11719_v22 = vmul.f32 %v3281_v39, %v10895_v18  ;;  %v3283_v54 = vmax.f32 %v3277_v28, 0.0 }
 0x4ae   :  { %v11726_v57 = vmul.f32 %v3282_v0, %v11180_v45  ;;  %v3284_v46 = vmax.f32 %v3278_v10, 0.0 }
 0x4af   :  { %3562 = vrot.lane.b32.xlu1 %v11719_v22, %s10772_s1  ;;  %3321 = vrot.lane.b32.xlu0 %v11719_v22, %s10763_s27  ;;  %v11751_v32 = vmul.f32 %v3283_v54, %v11192_v48 }
 0x4b0   :  { %v11758_v27 = vmul.f32 %v3284_v46, %v11188_v40 }
 0x4b3   :  { %3564 = vrot.lane.b32.xlu0 %v11726_v57, %s10772_s1  ;;  %3323 = vrot.lane.b32.xlu1 %v11726_v57, %s10763_s27 }
 0x4b7   :  { %3801 = vrot.lane.b32.xlu1 %v11733_v63, %s10773_s3  ;;  %3317 = vrot.lane.b32.xlu0 %v11733_v63, %s10763_s27 }
 0x4bb   :  { %3558 = vrot.lane.b32.xlu0 %v11733_v63, %s10772_s1  ;;  %3319 = vrot.lane.b32.xlu1 %v11740_v52, %s10763_s27 }
 0x4bf   :  { %3803 = vrot.lane.b32.xlu0 %v11740_v52, %s10773_s3  ;;  %3560 = vrot.lane.b32.xlu1 %v11740_v52, %s10772_s1 }
 0x4c3   :  { %3566 = vrot.lane.b32.xlu1 %v11751_v32, %s10772_s1  ;;  %3325 = vrot.lane.b32.xlu0 %v11751_v32, %s10763_s27 }
 0x4c7   :  { %3797 = vrot.lane.b32.xlu0 %v11714_v60, %s10777_s4  ;;  %3327 = vrot.lane.b32.xlu1 %v11758_v27, %s10763_s27 }
 0x4cb   :  { %3807 = vrot.lane.b32.xlu0 %v11726_v57, %s10773_s3  ;;  %3799 = vrot.lane.b32.xlu1 %v11524_v5, %s10773_s3 }
 0x4cf   :  { %3568 = vrot.lane.b32.xlu0 %v11758_v27, %s10772_s1  ;;  %3805 = vrot.lane.b32.xlu1 %v11719_v22, %s10773_s3 }
 0x4d3   :  { %4052 = vrot.lane.b32.xlu0 %v11740_v52, %s10775_s19  ;;  %3809 = vrot.lane.b32.xlu1 %v11751_v32, %s10773_s3 }
 0x4d7   :  { %4046 = vrot.lane.b32.xlu0 %v11714_v60, %s10778_s24  ;;  %4050 = vrot.lane.b32.xlu1 %v11733_v63, %s10775_s19 }
 0x4db   :  { %3811 = vrot.lane.b32.xlu0 %v11758_v27, %s10773_s3  ;;  %4048 = vrot.lane.b32.xlu1 %v11524_v5, %s10775_s19 }
 0x4df   :  { %4056 = vrot.lane.b32.xlu0 %v11726_v57, %s10775_s19  ;;  %4054 = vrot.lane.b32.xlu1 %v11719_v22, %s10775_s19 }
 0x4e3   :  { %4536 = vrot.lane.b32.xlu0 %v11740_v52, %s10769_s16  ;;  %4058 = vrot.lane.b32.xlu1 %v11751_v32, %s10775_s19 }
 0x4e7   :  { %4060 = vrot.lane.b32.xlu0 %v11758_v27, %s10775_s19  ;;  %4295 = vrot.lane.b32.xlu1 %v11714_v60, %s10781_s28 }
 0x4eb   :  { %4534 = vrot.lane.b32.xlu0 %v11733_v63, %s10769_s16  ;;  %4538 = vrot.lane.b32.xlu1 %v11719_v22, %s10769_s16 }
 0x4ef   :  { %4540 = vrot.lane.b32.xlu0 %v11726_v57, %s10769_s16  ;;  %4525 = vrot.lane.b32.xlu1 %v11714_v60, %s10759_s23 }
 0x4f3   :  { %4785 = vrot.lane.b32.xlu0 %v11740_v52, %s10779_s25  ;;  %4542 = vrot.lane.b32.xlu1 %v11751_v32, %s10769_s16 }
 0x4f7   :  { %4783 = vrot.lane.b32.xlu0 %v11733_v63, %s10779_s25  ;;  %4546 = vrot.lane.b32.xlu1 %v11524_v5, %s10769_s16 }
 0x4fb   :  { %4789 = vrot.lane.b32.xlu0 %v11726_v57, %s10779_s25  ;;  %4787 = vrot.lane.b32.xlu1 %v11719_v22, %s10779_s25 }
 0x4ff   :  { %4544 = vrot.lane.b32.xlu0 %v11758_v27, %s10769_s16  ;;  %4781 = vrot.lane.b32.xlu1 %v11714_v60, %s10782_s6 }
 0x503   :  { %5034 = vrot.lane.b32.xlu0 %v11740_v52, %s10756_s20  ;;  %4791 = vrot.lane.b32.xlu1 %v11751_v32, %s10779_s25 }
 0x507   :  { %5032 = vrot.lane.b32.xlu0 %v11733_v63, %s10756_s20  ;;  %4795 = vrot.lane.b32.xlu1 %v11524_v5, %s10779_s25 }
 0x50b   :  { %4793 = vrot.lane.b32.xlu0 %v11758_v27, %s10779_s25  ;;  %5036 = vrot.lane.b32.xlu1 %v11719_v22, %s10756_s20 }
 0x50f   :  { %5038 = vrot.lane.b32.xlu0 %v11726_v57, %s10756_s20  ;;  %5030 = vrot.lane.b32.xlu1 %v11714_v60, %s10766_s30 }
 0x513   :  { %5283 = vrot.lane.b32.xlu0 %v11740_v52, %s10749_s2  ;;  %5040 = vrot.lane.b32.xlu1 %v11751_v32, %s10756_s20 }
 0x517   :  { %5042 = vrot.lane.b32.xlu0 %v11758_v27, %s10756_s20  ;;  %5044 = vrot.lane.b32.xlu1 %v11524_v5, %s10756_s20 }
 0x51b   :  { %5281 = vrot.lane.b32.xlu0 %v11733_v63, %s10749_s2  ;;  %5285 = vrot.lane.b32.xlu1 %v11719_v22, %s10749_s2 }
 0x51f   :  { %5287 = vrot.lane.b32.xlu0 %v11726_v57, %s10749_s2  ;;  %5279 = vrot.lane.b32.xlu1 %v11714_v60, %s10783_s0 }
 0x521   :  { %v3563_v20 = vpop.permute.xlu1 %3562  ;;  %v3322_v30 = vpop.permute.xlu0 %3321 }
 0x523   :  { %5291 = vrot.lane.b32.xlu0 %v11758_v27, %s10749_s2  ;;  %5289 = vrot.lane.b32.xlu1 %v11751_v32, %s10749_s2 }
 0x525   :  { %v3324_v61 = vpop.permute.xlu1 %3323  ;;  %v3565_v35 = vpop.permute.xlu0 %3564 }
 0x526   :  { %v3332_v38 = vsel %vm1002_vm13, %v3322_v30, %v3324_v61  ;;  %v3573_v34 = vsel %vm951_vm12, %v3563_v20, %v3565_v35 }
 0x527   :  { %5293 = vrot.lane.b32.xlu1 %v11524_v5, %s10749_s2  ;;  %5531 = vperm.xlu0 %10710, %v5528_v13  }
 0x529   :  { %v3802_v16 = vpop.permute.xlu1 %3801  ;;  %v3318_v44 = vpop.permute.xlu0 %3317 }
 0x52a   :  { %v3329_v33 = vsel %vm1002_vm13, %v3316_v58, %v3318_v44 }
 0x52b   :  { %5576 = vrot.lane.b32.xlu0 %v11524_v5, %s10763_s27 }
 0x52d   :  { %v3320_v17 = vpop.permute.xlu1 %3319  ;;  %v3559_v51 = vpop.permute.xlu0 %3558 }
 0x52e   :  { %v3330_v43 = vsel %vm1002_vm13, %v3318_v44, %v3320_v17  ;;  %v3331_v1 = vsel %vm1002_vm13, %v3320_v17, %v3322_v30  ;;  %v3570_v12 = vsel %vm951_vm12, %v3557_v8, %v3559_v51 }
 0x52f   :  { %3343 = vmatprep.subr.mxu0 %v3330_v43  ;;  %5817 = vrot.lane.b32.xlu0 %v11524_v5, %s10772_s1 }
 0x530   :  { %3344 = vmatpush1.msra.mxu0 %v3329_v33 }
 0x531   :  { %v3561_v50 = vpop.permute.xlu1 %3560  ;;  %10322 = vmatmul.mubr.msk.f32.vlgmr.msra.gmra.mrb[2].mxu0 %vm58_vm0, %v3307_v4  ;;  %3414 = vmatprep.subr.mxu0 %v3332_v38  ;;  %v3804_v53 = vpop.permute.xlu0 %3803 }
 0x532   :  { %3415 = vmatpush1.msra.mxu0 %v3331_v1  ;;  %3478 = vmatprep.mubr.f32.mxu0 %v11524_v5  ;;  %v3571_v55 = vsel %vm951_vm12, %v3559_v51, %v3561_v50  ;;  %v3572_v9 = vsel %vm951_vm12, %v3561_v50, %v3563_v20  ;;  %v3814_v14 = vsel %vm1501_vm1, %v3802_v16, %v3804_v53 }
 0x535   :  { %v3567_v56 = vpop.permute.xlu1 %3566  ;;  %10323 = vmatmul.mubr.msk.f32.vlgmr.msra.gmra.mrb[4].mxu0 %vm58_vm0, %v3307_v4  ;;  %v3326_v37 = vpop.permute.xlu0 %3325 }
 0x536   :  { %3549 = vmatprep.mubr.f32.mxu0 %v11524_v5  ;;  %v3333_v25 = vsel %vm1002_vm13, %v3324_v61, %v3326_v37  ;;  %v3574_v29 = vsel %vm951_vm12, %v3565_v35, %v3567_v56 }
 0x539   :  { %v3328_v62 = vpop.permute.xlu1 %3327  ;;  %v3798_v36 = vpop.permute.xlu0 %3797 }
 0x53a   :  { %v3334_v21 = vsel %vm1002_vm13, %v3326_v37, %v3328_v62 }
 0x53b   :  { %3485 = vmatprep.subr.mxu0 %v3334_v21 }
 0x53c   :  { %3486 = vmatpush1.msra.mxu0 %v3333_v25 }
 0x53d   :  { %v3800_v7 = vpop.permute.xlu1 %3799  ;;  %10324 = vmatmul.mubr.msk.f32.vlgmr.msra.gmra.mrb[6].mxu0 %vm58_vm0, %v3307_v4  ;;  %3584 = vmatprep.subr.mxu0 %v3571_v55  ;;  %v3808_v59 = vpop.permute.xlu0 %3807 }
 0x53e   :  { %3585 = vmatpush1.msra.mxu0 %v3570_v12  ;;  %3648 = vmatprep.mubr.f32.mxu0 %v11524_v5  ;;  %v3813_v47 = vsel %vm1501_vm1, %v3800_v7, %v3802_v16 }
 0x53f   :  { %3655 = vmatprep.subr.mxu0 %v3573_v34 }
 0x541   :  { %v3806_v31 = vpop.permute.xlu1 %3805  ;;  %10325 = vmatmul.mubr.msk.f32.vlgmr.msra.gmra.mrb[2].mxu0 %vm58_vm0, %v11714_v60  ;;  %v3569_v2 = vpop.permute.xlu0 %3568 }
 0x542   :  { %3656 = vmatpush1.msra.mxu0 %v3572_v9  ;;  %v3575_v3 = vsel %vm951_vm12, %v3567_v56, %v3569_v2  ;;  %3719 = vmatprep.mubr.f32.mxu0 %v11524_v5  ;;  %v3816_v41 = vsel %vm1501_vm1, %v3806_v31, %v3808_v59  ;;  %v3815_v19 = vsel %vm1501_vm1, %v3804_v53, %v3806_v31 }
 0x543   :  { %3726 = vmatprep.subr.mxu0 %v3575_v3 }
 0x545   :  { %v3810_v42 = vpop.permute.xlu1 %3809  ;;  %10326 = vmatmul.mubr.msk.f32.vlgmr.msra.gmra.mrb[4].mxu0 %vm58_vm0, %v11714_v60  ;;  %v4053_v6 = vpop.permute.xlu0 %4052 }
 0x546   :  { %3727 = vmatpush1.msra.mxu0 %v3574_v29  ;;  %3790 = vmatprep.mubr.f32.mxu0 %v11524_v5  ;;  %v3817_v28 = vsel %vm1501_vm1, %v3808_v59, %v3810_v42 }
 0x547   :  { %3827 = vmatprep.subr.mxu0 %v3814_v14 }
 0x549   :  { %v4051_v39 = vpop.permute.xlu1 %4050  ;;  %10327 = vmatmul.mubr.msk.f32.vlgmr.msra.gmra.mrb[6].mxu0 %vm58_vm0, %v11714_v60  ;;  %v4047_v49 = vpop.permute.xlu0 %4046 }
 0x54a   :  { %3828 = vmatpush1.msra.mxu0 %v3813_v47  ;;  %3891 = vmatprep.mubr.f32.mxu0 %v11524_v5  ;;  %v4063_v10 = vsel %vm1757_vm3, %v4051_v39, %v4053_v6 }
 0x54b   :  { %3898 = vmatprep.subr.mxu0 %v3816_v41 }
 0x54d   :  { %v4049_v0 = vpop.permute.xlu1 %4048  ;;  %10328 = vmatmul.mubr.msk.f32.vlgmr.msra.gmra.mrb[2].mxu0 %vm58_vm0, %v3798_v36  ;;  %v3812_v24 = vpop.permute.xlu0 %3811 }
 0x54e   :  { %3899 = vmatpush1.msra.mxu0 %v3815_v19  ;;  %v3818_v26 = vsel %vm1501_vm1, %v3810_v42, %v3812_v24  ;;  %3962 = vmatprep.mubr.f32.mxu0 %v11524_v5  ;;  %v4062_v46 = vsel %vm1757_vm3, %v4049_v0, %v4051_v39 }
 0x54f   :  { %3969 = vmatprep.subr.mxu0 %v3818_v26 }
 0x551   :  { %v4055_v60 = vpop.permute.xlu1 %4054  ;;  %10329 = vmatmul.mubr.msk.f32.vlgmr.msra.gmra.mrb[4].mxu0 %vm58_vm0, %v3798_v36  ;;  %v4057_v54 = vpop.permute.xlu0 %4056 }
 0x552   :  { %3970 = vmatpush1.msra.mxu0 %v3817_v28  ;;  %4033 = vmatprep.mubr.f32.mxu0 %v11524_v5  ;;  %v4065_v8 = vsel %vm1757_vm3, %v4055_v60, %v4057_v54  ;;  %v4064_v30 = vsel %vm1757_vm3, %v4053_v6, %v4055_v60 }
 0x553   :  { %4076 = vmatprep.subr.mxu0 %v4063_v10 }
 0x555   :  { %v4059_v58 = vpop.permute.xlu1 %4058  ;;  %10330 = vmatmul.mubr.msk.f32.vlgmr.msra.gmra.mrb[6].mxu0 %vm58_vm0, %v3798_v36  ;;  %v4537_v4 = vpop.permute.xlu0 %4536 }
 0x556   :  { %4077 = vmatpush1.msra.mxu0 %v4062_v46  ;;  %4140 = vmatprep.mubr.f32.mxu0 %v11524_v5  ;;  %v4066_v16 = vsel %vm1757_vm3, %v4057_v54, %v4059_v58 }
 0x557   :  { %4147 = vmatprep.subr.mxu0 %v4065_v8 }
 0x559   :  { %v4296_v20 = vpop.permute.xlu1 %4295  ;;  %10331 = vmatmul.mubr.msk.f32.vlgmr.msra.gmra.mrb[2].mxu0 %vm58_vm0, %v4047_v49  ;;  %v4061_v13 = vpop.permute.xlu0 %4060 }
 0x55a   :  { %4148 = vmatpush1.msra.mxu0 %v4064_v30  ;;  %v4067_v61 = vsel %vm1757_vm3, %v4059_v58, %v4061_v13  ;;  %4211 = vmatprep.mubr.f32.mxu0 %v11524_v5  ;;  %v11965_v58 = vld [vmem:[#allocation2] sm:$0xff] }
 0x55b   :  { %4218 = vmatprep.subr.mxu0 %v4067_v61 }
 0x55d   :  { %v4539_v35 = vpop.permute.xlu1 %4538  ;;  %10332 = vmatmul.mubr.msk.f32.vlgmr.msra.gmra.mrb[4].mxu0 %vm58_vm0, %v4047_v49  ;;  %v4535_v44 = vpop.permute.xlu0 %4534 }
 0x55e   :  { %4219 = vmatpush1.msra.mxu0 %v4066_v16  ;;  %4282 = vmatprep.mubr.f32.mxu0 %v11524_v5 }
 0x55f   :  { %4299 = vmatprep.subr.mxu0 %v11740_v52 }
 0x561   :  { %v4526_v17 = vpop.permute.xlu1 %4525  ;;  %10333 = vmatmul.mubr.msk.f32.vlgmr.msra.gmra.mrb[6].mxu0 %vm58_vm0, %v4047_v49  ;;  %v4541_v51 = vpop.permute.xlu0 %4540 }
 0x562   :  { %4300 = vmatpush1.msra.mxu0 %v11733_v63  ;;  %4363 = vmatprep.mubr.f32.mxu0 %v11524_v5  ;;  %v4549_v63 = vsel %vm386_vm2, %v4537_v4, %v4539_v35 }
 0x563   :  { %4370 = vmatprep.subr.mxu0 %v11726_v57  ;;  %v4548_v57 = vsel %vm386_vm2, %v4535_v44, %v4537_v4 }
 0x565   :  { %v4543_v43 = vpop.permute.xlu1 %4542  ;;  %10334 = vmatmul.mubr.msk.f32.vlgmr.msra.gmra.mrb[2].mxu0 %vm58_vm0, %v4296_v20  ;;  %v4786_v33 = vpop.permute.xlu0 %4785 }
 0x566   :  { %4371 = vmatpush1.msra.mxu0 %v11719_v22  ;;  %4434 = vmatprep.mubr.f32.mxu0 %v11524_v5 }
 0x567   :  { %4441 = vmatprep.subr.mxu0 %v11758_v27  ;;  %v4551_v27 = vsel %vm386_vm2, %v4541_v51, %v4543_v43 }
 0x569   :  { %v4547_v52 = vpop.permute.xlu1 %4546  ;;  %10335 = vmatmul.mubr.msk.f32.vlgmr.msra.gmra.mrb[4].mxu0 %vm58_vm0, %v4296_v20  ;;  %v4784_v38 = vpop.permute.xlu0 %4783 }
 0x56a   :  { %4442 = vmatpush1.msra.mxu0 %v11751_v32  ;;  %4505 = vmatprep.mubr.f32.mxu0 %v11524_v5  ;;  %v4550_v32 = vsel %vm386_vm2, %v4539_v35, %v4541_v51  ;;  %v4797_v25 = vsel %vm2517_vm4, %v4784_v38, %v4786_v33  ;;  %v11981_v35 = vld [vmem:[%s12583_s8] sm:$0xf] }
 0x56b   :  { %4562 = vmatprep.subr.mxu0 %v4549_v63  ;;  %5567 = vrot.lane.b32.xlu1 %v11981_v35, %s10774_s18 }
 0x56d   :  { %v4788_v50 = vpop.permute.xlu1 %4787  ;;  %10336 = vmatmul.mubr.msk.f32.vlgmr.msra.gmra.mrb[6].mxu0 %vm58_vm0, %v4296_v20  ;;  %v4790_v22 = vpop.permute.xlu0 %4789 }
 0x56e   :  { %4563 = vmatpush1.msra.mxu0 %v4548_v57  ;;  %4626 = vmatprep.mubr.f32.mxu0 %v11524_v5  ;;  %v4798_v21 = vsel %vm2517_vm4, %v4786_v33, %v4788_v50  ;;  %v4799_v34 = vsel %vm2517_vm4, %v4788_v50, %v4790_v22 }
 0x56f   :  { %4633 = vmatprep.subr.mxu0 %v4551_v27 }
 0x571   :  { %v4782_v53 = vpop.permute.xlu1 %4781  ;;  %10337 = vmatmul.mubr.msk.f32.vlgmr.msra.gmra.mrb[2].mxu0 %vm58_vm0, %v4526_v17  ;;  %v4545_v1 = vpop.permute.xlu0 %4544 }
 0x572   :  { %4634 = vmatpush1.msra.mxu0 %v4550_v32  ;;  %v4553_v56 = vsel %vm386_vm2, %v4545_v1, %v4547_v52  ;;  %4697 = vmatprep.mubr.f32.mxu0 %v11524_v5  ;;  %v4552_v62 = vsel %vm386_vm2, %v4543_v43, %v4545_v1 }
 0x573   :  { %4704 = vmatprep.subr.mxu0 %v4553_v56 }
 0x575   :  { %v4792_v37 = vpop.permute.xlu1 %4791  ;;  %10338 = vmatmul.mubr.msk.f32.vlgmr.msra.gmra.mrb[4].mxu0 %vm58_vm0, %v4526_v17  ;;  %v5035_v36 = vpop.permute.xlu0 %5034 }
 0x576   :  { %4705 = vmatpush1.msra.mxu0 %v4552_v62  ;;  %4768 = vmatprep.mubr.f32.mxu0 %v11524_v5  ;;  %v4800_v59 = vsel %vm2517_vm4, %v4790_v22, %v4792_v37 }
 0x577   :  { %4811 = vmatprep.subr.mxu0 %v4798_v21 }
 0x579   :  { %v4796_v55 = vpop.permute.xlu1 %4795  ;;  %10339 = vmatmul.mubr.msk.f32.vlgmr.msra.gmra.mrb[6].mxu0 %vm58_vm0, %v4526_v17  ;;  %v5033_v7 = vpop.permute.xlu0 %5032 }
 0x57a   :  { %4812 = vmatpush1.msra.mxu0 %v4797_v25  ;;  %4875 = vmatprep.mubr.f32.mxu0 %v11524_v5  ;;  %v5046_v6 = vsel %vm492_vm6, %v5033_v7, %v5035_v36 }
 0x57b   :  { %4882 = vmatprep.subr.mxu0 %v4800_v59 }
 0x57d   :  { %v5037_v12 = vpop.permute.xlu1 %5036  ;;  %10340 = vmatmul.mubr.msk.f32.vlgmr.msra.gmra.mrb[2].mxu0 %vm58_vm0, %v4782_v53  ;;  %v4794_v31 = vpop.permute.xlu0 %4793 }
 0x57e   :  { %4883 = vmatpush1.msra.mxu0 %v4799_v34  ;;  %v4802_v9 = vsel %vm2517_vm4, %v4794_v31, %v4796_v55  ;;  %4946 = vmatprep.mubr.f32.mxu0 %v11524_v5  ;;  %v4801_v3 = vsel %vm2517_vm4, %v4792_v37, %v4794_v31  ;;  %v5047_v29 = vsel %vm492_vm6, %v5035_v36, %v5037_v12 }
 0x57f   :  { %4953 = vmatprep.subr.mxu0 %v4802_v9  ;;  %v7789_v9 = vld [vmem:[%s12584_s9] sm:$0xf] }
 0x581   :  { %v5031_v2 = vpop.permute.xlu1 %5030  ;;  %10341 = vmatmul.mubr.msk.f32.vlgmr.msra.gmra.mrb[4].mxu0 %vm58_vm0, %v4782_v53  ;;  %v5039_v42 = vpop.permute.xlu0 %5038 }
 0x582   :  { %4954 = vmatpush1.msra.mxu0 %v4801_v3  ;;  %5017 = vmatprep.mubr.f32.mxu0 %v11524_v5  ;;  %v5048_v41 = vsel %vm492_vm6, %v5037_v12, %v5039_v42 }
 0x583   :  { %5060 = vmatprep.subr.mxu0 %v5047_v29 }
 0x585   :  { %v5041_v14 = vpop.permute.xlu1 %5040  ;;  %10342 = vmatmul.mubr.msk.f32.vlgmr.msra.gmra.mrb[6].mxu0 %vm58_vm0, %v4782_v53  ;;  %v5284_v47 = vpop.permute.xlu0 %5283 }
 0x586   :  { %5061 = vmatpush1.msra.mxu0 %v5046_v6  ;;  %v5049_v39 = vsel %vm492_vm6, %v5039_v42, %v5041_v14  ;;  %5124 = vmatprep.mubr.f32.mxu0 %v11524_v5 }
 0x587   :  { %5131 = vmatprep.subr.mxu0 %v5049_v39 }
 0x589   :  { %v5045_v49 = vpop.permute.xlu1 %5044  ;;  %10343 = vmatmul.mubr.msk.f32.vlgmr.msra.gmra.mrb[2].mxu0 %vm58_vm0, %v5031_v2  ;;  %v5043_v0 = vpop.permute.xlu0 %5042 }
 0x58a   :  { %5132 = vmatpush1.msra.mxu0 %v5048_v41  ;;  %v5051_v19 = vsel %vm492_vm6, %v5043_v0, %v5045_v49  ;;  %5195 = vmatprep.mubr.f32.mxu0 %v11524_v5  ;;  %v5050_v26 = vsel %vm492_vm6, %v5041_v14, %v5043_v0 }
 0x58b   :  { %5202 = vmatprep.subr.mxu0 %v5051_v19 }
 0x58d   :  { %v5286_v24 = vpop.permute.xlu1 %5285  ;;  %10344 = vmatmul.mubr.msk.f32.vlgmr.msra.gmra.mrb[4].mxu0 %vm58_vm0, %v5031_v2  ;;  %v5282_v60 = vpop.permute.xlu0 %5281 }
 0x58e   :  { %5203 = vmatpush1.msra.mxu0 %v5050_v26  ;;  %v5296_v28 = vsel %vm576_vm7, %v5284_v47, %v5286_v24  ;;  %5266 = vmatprep.mubr.f32.mxu0 %v11524_v5  ;;  %v5295_v54 = vsel %vm576_vm7, %v5282_v60, %v5284_v47 }
 0x58f   :  { %5309 = vmatprep.subr.mxu0 %v5296_v28 }
 0x591   :  { %v5280_v10 = vpop.permute.xlu1 %5279  ;;  %10345 = vmatmul.mubr.msk.f32.vlgmr.msra.gmra.mrb[6].mxu0 %vm58_vm0, %v5031_v2  ;;  %v5288_v46 = vpop.permute.xlu0 %5287 }
 0x592   :  { %5310 = vmatpush1.msra.mxu0 %v5295_v54  ;;  %5373 = vmatprep.mubr.f32.mxu0 %v11965_v58  ;;  %v5297_v5 = vsel %vm576_vm7, %v5286_v24, %v5288_v46 }
 0x595   :  { %v5290_v4 = vpop.permute.xlu1 %5289  ;;  %10346 = vmatmul.mubr.msk.f32.vlgmr.msra.gmra.mrb[2].mxu0 %vm58_vm0, %v5280_v10  ;;  %v5292_v20 = vpop.permute.xlu0 %5291 }
 0x596   :  { %v5298_v8 = vsel %vm576_vm7, %v5288_v46, %v5290_v4  ;;  %5444 = vmatprep.mubr.f32.mxu0 %v11965_v58  ;;  %v5299_v61 = vsel %vm576_vm7, %v5290_v4, %v5292_v20 }
 0x597   :  { %5380 = vmatprep.subr.mxu0 %v5298_v8 }
 0x598   :  { %5381 = vmatpush1.msra.mxu0 %v5297_v5 }
 0x599   :  { %v5294_v30 = vpop.permute.xlu1 %5293  ;;  %10347 = vmatmul.mubr.msk.f32.vlgmr.msra.gmra.mrb[4].mxu0 %vm58_vm0, %v5280_v10 }
 0x59a   :  { %v5300_v13 = vsel %vm576_vm7, %v5292_v20, %v5294_v30  ;;  %5515 = vmatprep.mubr.f32.mxu0 %v11965_v58 }
 0x59b   :  { %5451 = vmatprep.subr.mxu0 %v5300_v13 }
 0x59c   :  { %5452 = vmatpush1.msra.mxu0 %v5299_v61 }
 0x59d   :  { %10348 = vmatmul.mubr.msk.f32.vlgmr.msra.gmra.mrb[6].mxu0 %vm58_vm0, %v5280_v10 }
 0x59e   :  { %7939 = vmatprep.mubr.f32.mxu0 %v11965_v58 }
 0x5a6   :  { %v5532_v16 = vpop.permute.xlu0 %5531 }
 0x5aa   :  { %v5577_v12 = vpop.permute.xlu0 %5576 }
 0x5ae   :  { %v5818_v31 = vpop.permute.xlu0 %5817 }
 0x5dd   :  { %v5568_v34 = vpop.permute.xlu1 %5567 }
 0x668   :  { %v5375_v44 = vpop.f32.mrb[2].mxu0 }
 0x669   :  { %v5534_v17 = vadd.f32 %v5532_v16, %v5375_v44  ;;  %v5377_v51 = vpop.f32.mrb[3].mxu0 }
 0x66a   :  { %v5535_v43 = vadd.f32 %v5532_v16, %v5377_v51 }
 0x66b   :  { %v5540_v33 = vmax.f32 %v5534_v17, 0.0 }
 0x66c   :  { %v5541_v52 = vmax.f32 %v5535_v43, 0.0  ;;  %v5446_v38 = vpop.f32.mrb[4].mxu0 }
 0x66d   :  { %v11986_v63 = vmul.f32 %v5540_v33, %v10886_v15  ;;  %v5536_v57 = vadd.f32 %v5532_v16, %v5446_v38  ;;  %v5448_v50 = vpop.f32.mrb[5].mxu0 }
 0x66e   :  { %v11989_v22 = vmul.f32 %v5541_v52, %v10907_v23  ;;  %v5537_v27 = vadd.f32 %v5532_v16, %v5448_v50 }
 0x66f   :  { %5552 = vst [vmem:[#allocation2 + $0x8] sm:$0xff] %v11986_v63  ;;  %v5542_v53 = vmax.f32 %v5536_v57, 0.0  ;;  %5819 = vrot.lane.b32.xlu0 %v11986_v63, %s10772_s1  ;;  %5578 = vrot.lane.b32.xlu1 %v11986_v63, %s10763_s27 }
 0x670   :  { %5553 = vst [vmem:[#allocation2 + $0x10] sm:$0xff] %v11989_v22  ;;  %v5543_v32 = vmax.f32 %v5537_v27, 0.0  ;;  %v5517_v1 = vpop.f32.mrb[6].mxu0 }
 0x671   :  { %v11998_v56 = vmul.f32 %v5542_v53, %v10895_v18  ;;  %v5538_v37 = vadd.f32 %v5532_v16, %v5517_v1  ;;  %v5519_v62 = vpop.f32.mrb[7].mxu0 }
 0x672   :  { %v12001_v36 = vmul.f32 %v5543_v32, %v11180_v45  ;;  %v5539_v21 = vadd.f32 %v5532_v16, %v5519_v62 }
 0x673   :  { %5554 = vst [vmem:[#allocation2 + $0x18] sm:$0xff] %v11998_v56  ;;  %v5544_v25 = vmax.f32 %v5538_v37, 0.0  ;;  %6064 = vrot.lane.b32.xlu0 %v11989_v22, %s10773_s3  ;;  %6062 = vrot.lane.b32.xlu1 %v11986_v63, %s10773_s3 }
 0x674   :  { %5555 = vst [vmem:[#allocation2 + $0x20] sm:$0xff] %v12001_v36  ;;  %v5545_v55 = vmax.f32 %v5539_v21, 0.0 }
 0x675   :  { %v12010_v7 = vmul.f32 %v5544_v25, %v11192_v48 }
 0x676   :  { %v12013_v59 = vmul.f32 %v5545_v55, %v11188_v40 }
 0x677   :  { %5556 = vst [vmem:[#allocation2 + $0x28] sm:$0xff] %v12010_v7  ;;  %5582 = vrot.lane.b32.xlu0 %v11998_v56, %s10763_s27  ;;  %5580 = vrot.lane.b32.xlu1 %v11989_v22, %s10763_s27 }
 0x678   :  { %5557 = vst [vmem:[#allocation2 + $0x30] sm:$0xff] %v12013_v59 }
 0x67b   :  { %5825 = vrot.lane.b32.xlu0 %v12001_v36, %s10772_s1  ;;  %5821 = vrot.lane.b32.xlu1 %v11989_v22, %s10772_s1 }
 0x67f   :  { %5586 = vrot.lane.b32.xlu0 %v12010_v7, %s10763_s27  ;;  %5823 = vrot.lane.b32.xlu1 %v11998_v56, %s10772_s1 }
 0x683   :  { %6058 = vrot.lane.b32.xlu0 %v11981_v35, %s10777_s4  ;;  %5584 = vrot.lane.b32.xlu1 %v12001_v36, %s10763_s27 }
 0x687   :  { %6068 = vrot.lane.b32.xlu0 %v12001_v36, %s10773_s3  ;;  %5827 = vrot.lane.b32.xlu1 %v12010_v7, %s10772_s1 }
 0x68b   :  { %5829 = vrot.lane.b32.xlu0 %v12013_v59, %s10772_s1  ;;  %5588 = vrot.lane.b32.xlu1 %v12013_v59, %s10763_s27 }
 0x68f   :  { %6313 = vrot.lane.b32.xlu0 %v11989_v22, %s10775_s19  ;;  %6060 = vrot.lane.b32.xlu1 %v11965_v58, %s10773_s3 }
 0x693   :  { %6307 = vrot.lane.b32.xlu0 %v11981_v35, %s10778_s24  ;;  %6066 = vrot.lane.b32.xlu1 %v11998_v56, %s10773_s3 }
 0x697   :  { %6072 = vrot.lane.b32.xlu0 %v12013_v59, %s10773_s3  ;;  %6070 = vrot.lane.b32.xlu1 %v12010_v7, %s10773_s3 }
 0x69b   :  { %6317 = vrot.lane.b32.xlu0 %v12001_v36, %s10775_s19  ;;  %6311 = vrot.lane.b32.xlu1 %v11986_v63, %s10775_s19 }
 0x69f   :  { %6797 = vrot.lane.b32.xlu0 %v11989_v22, %s10769_s16  ;;  %6309 = vrot.lane.b32.xlu1 %v11965_v58, %s10775_s19 }
 0x6a3   :  { %6321 = vrot.lane.b32.xlu0 %v12013_v59, %s10775_s19  ;;  %6315 = vrot.lane.b32.xlu1 %v11998_v56, %s10775_s19 }
 0x6a7   :  { %6795 = vrot.lane.b32.xlu0 %v11986_v63, %s10769_s16  ;;  %6319 = vrot.lane.b32.xlu1 %v12010_v7, %s10775_s19 }
 0x6ab   :  { %6801 = vrot.lane.b32.xlu0 %v12001_v36, %s10769_s16  ;;  %6556 = vrot.lane.b32.xlu1 %v11981_v35, %s10781_s28 }
 0x6af   :  { %7046 = vrot.lane.b32.xlu0 %v11989_v22, %s10779_s25  ;;  %6799 = vrot.lane.b32.xlu1 %v11998_v56, %s10769_s16 }
 0x6b3   :  { %7044 = vrot.lane.b32.xlu0 %v11986_v63, %s10779_s25  ;;  %6786 = vrot.lane.b32.xlu1 %v11981_v35, %s10759_s23 }
 0x6b7   :  { %7050 = vrot.lane.b32.xlu0 %v12001_v36, %s10779_s25  ;;  %6803 = vrot.lane.b32.xlu1 %v12010_v7, %s10769_s16 }
 0x6bb   :  { %6805 = vrot.lane.b32.xlu0 %v12013_v59, %s10769_s16  ;;  %6807 = vrot.lane.b32.xlu1 %v11965_v58, %s10769_s16 }
 0x6bf   :  { %7295 = vrot.lane.b32.xlu0 %v11989_v22, %s10756_s20  ;;  %7048 = vrot.lane.b32.xlu1 %v11998_v56, %s10779_s25 }
 0x6c3   :  { %7293 = vrot.lane.b32.xlu0 %v11986_v63, %s10756_s20  ;;  %7042 = vrot.lane.b32.xlu1 %v11981_v35, %s10782_s6 }
 0x6c7   :  { %7054 = vrot.lane.b32.xlu0 %v12013_v59, %s10779_s25  ;;  %7052 = vrot.lane.b32.xlu1 %v12010_v7, %s10779_s25 }
 0x6cb   :  { %7299 = vrot.lane.b32.xlu0 %v12001_v36, %s10756_s20  ;;  %7056 = vrot.lane.b32.xlu1 %v11965_v58, %s10779_s25 }
 0x6cf   :  { %7544 = vrot.lane.b32.xlu0 %v11989_v22, %s10749_s2  ;;  %7297 = vrot.lane.b32.xlu1 %v11998_v56, %s10756_s20 }
 0x6d3   :  { %7303 = vrot.lane.b32.xlu0 %v12013_v59, %s10756_s20  ;;  %7291 = vrot.lane.b32.xlu1 %v11981_v35, %s10766_s30 }
 0x6d7   :  { %7542 = vrot.lane.b32.xlu0 %v11986_v63, %s10749_s2  ;;  %7301 = vrot.lane.b32.xlu1 %v12010_v7, %s10756_s20 }
 0x6db   :  { %7548 = vrot.lane.b32.xlu0 %v12001_v36, %s10749_s2  ;;  %7305 = vrot.lane.b32.xlu1 %v11965_v58, %s10756_s20 }
 0x6df   :  { %7552 = vrot.lane.b32.xlu0 %v12013_v59, %s10749_s2  ;;  %7546 = vrot.lane.b32.xlu1 %v11998_v56, %s10749_s2 }
 0x6e1   :  { %v5579_v2 = vpop.permute.xlu1 %5578  ;;  %v5820_v3 = vpop.permute.xlu0 %5819 }
 0x6e2   :  { %v5590_v39 = vsel %vm1002_vm13, %v5577_v12, %v5579_v2  ;;  %v5831_v61 = vsel %vm951_vm12, %v5818_v31, %v5820_v3 }
 0x6e3   :  { %7792 = vperm.xlu0 %10710, %v7789_v9   ;;  %7540 = vrot.lane.b32.xlu1 %v11981_v35, %s10783_s0 }
 0x6e5   :  { %v6063_v42 = vpop.permute.xlu1 %6062  ;;  %v12130_v29 = vpop.permute.xlu0 %6064 }
 0x6e6   :  { %v6075_v57 = vsel %vm1501_vm1, %v6063_v42, %v12130_v29 }
 0x6e7   :  { %7550 = vrot.lane.b32.xlu1 %v12010_v7, %s10749_s2 }
 0x6e9   :  { %v5581_v6 = vpop.permute.xlu1 %5580  ;;  %v5583_v14 = vpop.permute.xlu0 %5582 }
 0x6ea   :  { %v5591_v47 = vsel %vm1002_vm13, %v5579_v2, %v5581_v6  ;;  %v5592_v28 = vsel %vm1002_vm13, %v5581_v6, %v5583_v14 }
 0x6eb   :  { %7554 = vrot.lane.b32.xlu1 %v11965_v58, %s10749_s2  ;;  %5604 = vmatprep.subr.mxu1 %v5591_v47 }
 0x6ec   :  { %5605 = vmatpush1.msra.mxu1 %v5590_v39 }
 0x6ed   :  { %v5822_v49 = vpop.permute.xlu1 %5821  ;;  %10349 = vmatmul.mubr.msk.f32.vlgmr.msra.gmra.mrb[8].mxu1 %vm58_vm0, %v5568_v34  ;;  %v5826_v41 = vpop.permute.xlu0 %5825 }
 0x6ee   :  { %5739 = vmatprep.mubr.f32.mxu1 %v11965_v58  ;;  %v5832_v20 = vsel %vm951_vm12, %v5820_v3, %v5822_v49 }
 0x6f1   :  { %v5824_v0 = vpop.permute.xlu1 %5823  ;;  %v5587_v19 = vpop.permute.xlu0 %5586 }
 0x6f2   :  { %v5834_v16 = vsel %vm951_vm12, %v5824_v0, %v5826_v41  ;;  %v5833_v17 = vsel %vm951_vm12, %v5822_v49, %v5824_v0 }
 0x6f5   :  { %v5585_v24 = vpop.permute.xlu1 %5584  ;;  %v12140_v26 = vpop.permute.xlu0 %6058 }
 0x6f6   :  { %v5593_v60 = vsel %vm1002_vm13, %v5583_v14, %v5585_v24  ;;  %v5594_v5 = vsel %vm1002_vm13, %v5585_v24, %v5587_v19 }
 0x6f7   :  { %5675 = vmatprep.subr.mxu1 %v5593_v60 }
 0x6f8   :  { %5676 = vmatpush1.msra.mxu1 %v5592_v28 }
 0x6f9   :  { %v5828_v54 = vpop.permute.xlu1 %5827  ;;  %10350 = vmatmul.mubr.msk.f32.vlgmr.msra.gmra.mrb[10].mxu1 %vm58_vm0, %v5568_v34  ;;  %v6069_v10 = vpop.permute.xlu0 %6068 }
 0x6fa   :  { %5810 = vmatprep.mubr.f32.mxu1 %v11965_v58  ;;  %v5835_v52 = vsel %vm951_vm12, %v5826_v41, %v5828_v54 }
 0x6fd   :  { %v5589_v46 = vpop.permute.xlu1 %5588  ;;  %v5830_v4 = vpop.permute.xlu0 %5829 }
 0x6fe   :  { %v5595_v8 = vsel %vm1002_vm13, %v5587_v19, %v5589_v46  ;;  %v5836_v43 = vsel %vm951_vm12, %v5828_v54, %v5830_v4 }
 0x6ff   :  { %5746 = vmatprep.subr.mxu1 %v5595_v8 }
 0x700   :  { %5747 = vmatpush1.msra.mxu1 %v5594_v5 }
 0x701   :  { %v6061_v30 = vpop.permute.xlu1 %6060  ;;  %10351 = vmatmul.mubr.msk.f32.vlgmr.msra.gmra.mrb[12].mxu1 %vm58_vm0, %v5568_v34  ;;  %5845 = vmatprep.subr.mxu1 %v5832_v20  ;;  %v6314_v13 = vpop.permute.xlu0 %6313 }
 0x702   :  { %5846 = vmatpush1.msra.mxu1 %v5831_v61  ;;  %5909 = vmatprep.mubr.f32.mxu1 %v11965_v58  ;;  %v6074_v50 = vsel %vm1501_vm1, %v6061_v30, %v6063_v42 }
 0x703   :  { %5916 = vmatprep.subr.mxu1 %v5834_v16 }
 0x705   :  { %v6067_v44 = vpop.permute.xlu1 %6066  ;;  %10352 = vmatmul.mubr.msk.f32.vlgmr.msra.gmra.mrb[8].mxu1 %vm58_vm0, %v11981_v35  ;;  %v6308_v51 = vpop.permute.xlu0 %6307 }
 0x706   :  { %5917 = vmatpush1.msra.mxu1 %v5833_v17  ;;  %5980 = vmatprep.mubr.f32.mxu1 %v11965_v58  ;;  %v6077_v32 = vsel %vm1501_vm1, %v6067_v44, %v6069_v10  ;;  %v6076_v37 = vsel %vm1501_vm1, %v12130_v29, %v6067_v44 }
 0x707   :  { %5987 = vmatprep.subr.mxu1 %v5836_v43 }
 0x709   :  { %v6071_v33 = vpop.permute.xlu1 %6070  ;;  %10353 = vmatmul.mubr.msk.f32.vlgmr.msra.gmra.mrb[10].mxu1 %vm58_vm0, %v11981_v35  ;;  %v6073_v38 = vpop.permute.xlu0 %6072 }
 0x70a   :  { %5988 = vmatpush1.msra.mxu1 %v5835_v52  ;;  %6051 = vmatprep.mubr.f32.mxu1 %v11965_v58  ;;  %v6079_v21 = vsel %vm1501_vm1, %v6071_v33, %v6073_v38  ;;  %v6078_v25 = vsel %vm1501_vm1, %v6069_v10, %v6071_v33 }
 0x70b   :  { %6088 = vmatprep.subr.mxu1 %v6075_v57 }
 0x70d   :  { %v6312_v27 = vpop.permute.xlu1 %6311  ;;  %10354 = vmatmul.mubr.msk.f32.vlgmr.msra.gmra.mrb[12].mxu1 %vm58_vm0, %v11981_v35  ;;  %v6318_v53 = vpop.permute.xlu0 %6317 }
 0x70e   :  { %6089 = vmatpush1.msra.mxu1 %v6074_v50  ;;  %6152 = vmatprep.mubr.f32.mxu1 %v11965_v58  ;;  %v6324_v12 = vsel %vm1757_vm3, %v6312_v27, %v6314_v13 }
 0x70f   :  { %6159 = vmatprep.subr.mxu1 %v6077_v32 }
 0x711   :  { %v6310_v1 = vpop.permute.xlu1 %6309  ;;  %10355 = vmatmul.mubr.msk.f32.vlgmr.msra.gmra.mrb[8].mxu1 %vm58_vm0, %v12140_v26  ;;  %v6798_v62 = vpop.permute.xlu0 %6797 }
 0x712   :  { %6160 = vmatpush1.msra.mxu1 %v6076_v37  ;;  %6223 = vmatprep.mubr.f32.mxu1 %v11965_v58  ;;  %v6323_v34 = vsel %vm1757_vm3, %v6310_v1, %v6312_v27 }
 0x713   :  { %6230 = vmatprep.subr.mxu1 %v6079_v21 }
 0x715   :  { %v6316_v35 = vpop.permute.xlu1 %6315  ;;  %10356 = vmatmul.mubr.msk.f32.vlgmr.msra.gmra.mrb[10].mxu1 %vm58_vm0, %v12140_v26  ;;  %v6322_v55 = vpop.permute.xlu0 %6321 }
 0x716   :  { %6231 = vmatpush1.msra.mxu1 %v6078_v25  ;;  %6294 = vmatprep.mubr.f32.mxu1 %v11965_v58  ;;  %v6326_v2 = vsel %vm1757_vm3, %v6316_v35, %v6318_v53  ;;  %v6325_v42 = vsel %vm1757_vm3, %v6314_v13, %v6316_v35 }
 0x717   :  { %6337 = vmatprep.subr.mxu1 %v6324_v12 }
 0x719   :  { %v6320_v31 = vpop.permute.xlu1 %6319  ;;  %10357 = vmatmul.mubr.msk.f32.vlgmr.msra.gmra.mrb[12].mxu1 %vm58_vm0, %v12140_v26  ;;  %v6796_v9 = vpop.permute.xlu0 %6795 }
 0x71a   :  { %6338 = vmatpush1.msra.mxu1 %v6323_v34  ;;  %6401 = vmatprep.mubr.f32.mxu1 %v11965_v58  ;;  %v6328_v6 = vsel %vm1757_vm3, %v6320_v31, %v6322_v55  ;;  %v6327_v47 = vsel %vm1757_vm3, %v6318_v53, %v6320_v31 }
 0x71b   :  { %6408 = vmatprep.subr.mxu1 %v6326_v2 }
 0x71d   :  { %v6557_v3 = vpop.permute.xlu1 %6556  ;;  %10358 = vmatmul.mubr.msk.f32.vlgmr.msra.gmra.mrb[8].mxu1 %vm58_vm0, %v6308_v51  ;;  %v6802_v29 = vpop.permute.xlu0 %6801 }
 0x71e   :  { %6409 = vmatpush1.msra.mxu1 %v6325_v42  ;;  %6472 = vmatprep.mubr.f32.mxu1 %v11965_v58 }
 0x71f   :  { %6479 = vmatprep.subr.mxu1 %v6328_v6  ;;  %v12260_v6 = vld [vmem:[%s12585_s10] sm:$0x1]  ;;  %s10785_s10 = smov [#allocation4]  }
 0x721   :  { %v6800_v14 = vpop.permute.xlu1 %6799  ;;  %10359 = vmatmul.mubr.msk.f32.vlgmr.msra.gmra.mrb[10].mxu1 %vm58_vm0, %v6308_v51  ;;  %v7047_v39 = vpop.permute.xlu0 %7046 }
 0x722   :  { %6480 = vmatpush1.msra.mxu1 %v6327_v47  ;;  %6543 = vmatprep.mubr.f32.mxu1 %v11965_v58 }
 0x723   :  { %6560 = vmatprep.subr.mxu1 %v11989_v22 }
 0x725   :  { %v6787_v49 = vpop.permute.xlu1 %6786  ;;  %10360 = vmatmul.mubr.msk.f32.vlgmr.msra.gmra.mrb[12].mxu1 %vm58_vm0, %v6308_v51  ;;  %v7045_v41 = vpop.permute.xlu0 %7044 }
 0x726   :  { %6561 = vmatpush1.msra.mxu1 %v11986_v63  ;;  %6624 = vmatprep.mubr.f32.mxu1 %v11965_v58  ;;  %v6810_v63 = vsel %vm386_vm2, %v6798_v62, %v6800_v14  ;;  %v7058_v5 = vsel %vm2517_vm4, %v7045_v41, %v7047_v39 }
 0x727   :  { %6631 = vmatprep.subr.mxu1 %v12001_v36  ;;  %v6809_v36 = vsel %vm386_vm2, %v6796_v9, %v6798_v62 }
 0x729   :  { %v6804_v0 = vpop.permute.xlu1 %6803  ;;  %10361 = vmatmul.mubr.msk.f32.vlgmr.msra.gmra.mrb[8].mxu1 %vm58_vm0, %v6557_v3  ;;  %v7051_v19 = vpop.permute.xlu0 %7050 }
 0x72a   :  { %6632 = vmatpush1.msra.mxu1 %v11998_v56  ;;  %6695 = vmatprep.mubr.f32.mxu1 %v11965_v58 }
 0x72b   :  { %6702 = vmatprep.subr.mxu1 %v12013_v59  ;;  %v6812_v59 = vsel %vm386_vm2, %v6802_v29, %v6804_v0 }
 0x72d   :  { %v6808_v22 = vpop.permute.xlu1 %6807  ;;  %10362 = vmatmul.mubr.msk.f32.vlgmr.msra.gmra.mrb[10].mxu1 %vm58_vm0, %v6557_v3  ;;  %v6806_v24 = vpop.permute.xlu0 %6805 }
 0x72e   :  { %6703 = vmatpush1.msra.mxu1 %v12010_v7  ;;  %6766 = vmatprep.mubr.f32.mxu1 %v11965_v58  ;;  %v6811_v7 = vsel %vm386_vm2, %v6800_v14, %v6802_v29  ;;  %v6814_v54 = vsel %vm386_vm2, %v6806_v24, %v6808_v22  ;;  %v6813_v10 = vsel %vm386_vm2, %v6804_v0, %v6806_v24  ;;  %v12253_v29 = vld [vmem:[#allocation2] sm:$0xf] }
 0x72f   :  { %6823 = vmatprep.subr.mxu1 %v6810_v63  ;;  %7841 = vrot.lane.b32.xlu1 %v12253_v29, %s10763_s27  ;;  %v12264_v14 = vrot.slane %v12260_v6, %v10877_v11 }
 0x731   :  { %v7049_v26 = vpop.permute.xlu1 %7048  ;;  %10363 = vmatmul.mubr.msk.f32.vlgmr.msra.gmra.mrb[12].mxu1 %vm58_vm0, %v6557_v3  ;;  %v7296_v56 = vpop.permute.xlu0 %7295  ;;  %7832 = vrot.lane.b32.xlu0 %v12264_v14, %s10757_s21 }
 0x732   :  { %6824 = vmatpush1.msra.mxu1 %v6809_v36  ;;  %6887 = vmatprep.mubr.f32.mxu1 %v11965_v58  ;;  %v7059_v8 = vsel %vm2517_vm4, %v7047_v39, %v7049_v26  ;;  %v7060_v61 = vsel %vm2517_vm4, %v7049_v26, %v7051_v19 }
 0x733   :  { %6894 = vmatprep.subr.mxu1 %v6812_v59  ;;  %8088 = vrot.lane.b32.xlu1 %v12253_v29, %s10772_s1 }
 0x735   :  { %v7043_v60 = vpop.permute.xlu1 %7042  ;;  %10364 = vmatmul.mubr.msk.f32.vlgmr.msra.gmra.mrb[8].mxu1 %vm58_vm0, %v6787_v49  ;;  %v7294_v28 = vpop.permute.xlu0 %7293 }
 0x736   :  { %6895 = vmatpush1.msra.mxu1 %v6811_v7  ;;  %6958 = vmatprep.mubr.f32.mxu1 %v11965_v58  ;;  %v7307_v52 = vsel %vm492_vm6, %v7294_v28, %v7296_v56 }
 0x737   :  { %6965 = vmatprep.subr.mxu1 %v6814_v54 }
 0x739   :  { %v7053_v46 = vpop.permute.xlu1 %7052  ;;  %10365 = vmatmul.mubr.msk.f32.vlgmr.msra.gmra.mrb[10].mxu1 %vm58_vm0, %v6787_v49  ;;  %v7055_v4 = vpop.permute.xlu0 %7054 }
 0x73a   :  { %6966 = vmatpush1.msra.mxu1 %v6813_v10  ;;  %7029 = vmatprep.mubr.f32.mxu1 %v11965_v58  ;;  %v7061_v30 = vsel %vm2517_vm4, %v7051_v19, %v7053_v46  ;;  %v7062_v17 = vsel %vm2517_vm4, %v7053_v46, %v7055_v4 }
 0x73b   :  { %7072 = vmatprep.subr.mxu1 %v7059_v8 }
 0x73d   :  { %v7057_v20 = vpop.permute.xlu1 %7056  ;;  %10366 = vmatmul.mubr.msk.f32.vlgmr.msra.gmra.mrb[12].mxu1 %vm58_vm0, %v6787_v49  ;;  %v7300_v13 = vpop.permute.xlu0 %7299 }
 0x73e   :  { %7073 = vmatpush1.msra.mxu1 %v7058_v5  ;;  %7136 = vmatprep.mubr.f32.mxu1 %v11965_v58  ;;  %v7063_v44 = vsel %vm2517_vm4, %v7055_v4, %v7057_v20 }
 0x73f   :  { %7143 = vmatprep.subr.mxu1 %v7061_v30 }
 0x741   :  { %v7298_v16 = vpop.permute.xlu1 %7297  ;;  %10367 = vmatmul.mubr.msk.f32.vlgmr.msra.gmra.mrb[8].mxu1 %vm58_vm0, %v7043_v60  ;;  %v7545_v51 = vpop.permute.xlu0 %7544 }
 0x742   :  { %7144 = vmatpush1.msra.mxu1 %v7060_v61  ;;  %7207 = vmatprep.mubr.f32.mxu1 %v11965_v58  ;;  %v7308_v33 = vsel %vm492_vm6, %v7296_v56, %v7298_v16  ;;  %v7309_v27 = vsel %vm492_vm6, %v7298_v16, %v7300_v13 }
 0x743   :  { %7214 = vmatprep.subr.mxu1 %v7063_v44 }
 0x745   :  { %v7292_v43 = vpop.permute.xlu1 %7291  ;;  %10368 = vmatmul.mubr.msk.f32.vlgmr.msra.gmra.mrb[10].mxu1 %vm58_vm0, %v7043_v60  ;;  %v7304_v50 = vpop.permute.xlu0 %7303 }
 0x746   :  { %7215 = vmatpush1.msra.mxu1 %v7062_v17  ;;  %7278 = vmatprep.mubr.f32.mxu1 %v11965_v58 }
 0x747   :  { %7321 = vmatprep.subr.mxu1 %v7308_v33 }
 0x749   :  { %v7302_v38 = vpop.permute.xlu1 %7301  ;;  %10369 = vmatmul.mubr.msk.f32.vlgmr.msra.gmra.mrb[12].mxu1 %vm58_vm0, %v7043_v60  ;;  %v7543_v37 = vpop.permute.xlu0 %7542 }
 0x74a   :  { %7322 = vmatpush1.msra.mxu1 %v7307_v52  ;;  %v7310_v57 = vsel %vm492_vm6, %v7300_v13, %v7302_v38  ;;  %7385 = vmatprep.mubr.f32.mxu1 %v11965_v58  ;;  %v7311_v1 = vsel %vm492_vm6, %v7302_v38, %v7304_v50  ;;  %v7556_v35 = vsel %vm576_vm7, %v7543_v37, %v7545_v51 }
 0x74b   :  { %7392 = vmatprep.subr.mxu1 %v7310_v57 }
 0x74d   :  { %v7306_v53 = vpop.permute.xlu1 %7305  ;;  %10370 = vmatmul.mubr.msk.f32.vlgmr.msra.gmra.mrb[8].mxu1 %vm58_vm0, %v7292_v43  ;;  %v7549_v55 = vpop.permute.xlu0 %7548 }
 0x74e   :  { %7393 = vmatpush1.msra.mxu1 %v7309_v27  ;;  %v7312_v32 = vsel %vm492_vm6, %v7304_v50, %v7306_v53  ;;  %7456 = vmatprep.mubr.f32.mxu1 %v11965_v58  ;;  %v9086_v27 = vld [vmem:[#allocation2 + $0x38] sm:$0xf] }
 0x74f   :  { %7463 = vmatprep.subr.mxu1 %v7312_v32 }
 0x751   :  { %v7547_v62 = vpop.permute.xlu1 %7546  ;;  %10371 = vmatmul.mubr.msk.f32.vlgmr.msra.gmra.mrb[10].mxu1 %vm58_vm0, %v7292_v43  ;;  %v7553_v9 = vpop.permute.xlu0 %7552 }
 0x752   :  { %7464 = vmatpush1.msra.mxu1 %v7311_v1  ;;  %v7557_v21 = vsel %vm576_vm7, %v7545_v51, %v7547_v62  ;;  %7527 = vmatprep.mubr.f32.mxu1 %v11965_v58  ;;  %v7558_v31 = vsel %vm576_vm7, %v7547_v62, %v7549_v55 }
 0x753   :  { %7570 = vmatprep.subr.mxu1 %v7557_v21 }
 0x755   :  { %v7541_v25 = vpop.permute.xlu1 %7540  ;;  %10372 = vmatmul.mubr.msk.f32.vlgmr.msra.gmra.mrb[12].mxu1 %vm58_vm0, %v7292_v43 }
 0x756   :  { %7571 = vmatpush1.msra.mxu1 %v7556_v35  ;;  %7634 = vmatprep.mubr.f32.mxu1 %v11965_v58  ;;  %v10114_v35 = vld [vmem:[#allocation3] sm:$0x1] }
 0x759   :  { %v7551_v12 = vpop.permute.xlu1 %7550  ;;  %10373 = vmatmul.mubr.msk.f32.vlgmr.msra.gmra.mrb[8].mxu1 %vm58_vm0, %v7541_v25 }
 0x75a   :  { %v7559_v34 = vsel %vm576_vm7, %v7549_v55, %v7551_v12  ;;  %7705 = vmatprep.mubr.f32.mxu1 %v11965_v58  ;;  %v7560_v42 = vsel %vm576_vm7, %v7551_v12, %v7553_v9 }
 0x75b   :  { %7641 = vmatprep.subr.mxu1 %v7559_v34 }
 0x75c   :  { %7642 = vmatpush1.msra.mxu1 %v7558_v31 }
 0x75d   :  { %v7555_v2 = vpop.permute.xlu1 %7554  ;;  %10374 = vmatmul.mubr.msk.f32.vlgmr.msra.gmra.mrb[10].mxu1 %vm58_vm0, %v7541_v25 }
 0x75e   :  { %v7561_v3 = vsel %vm576_vm7, %v7553_v9, %v7555_v2  ;;  %7776 = vmatprep.mubr.f32.mxu1 %v11965_v58 }
 0x75f   :  { %7712 = vmatprep.subr.mxu1 %v7561_v3 }
 0x760   :  { %7713 = vmatpush1.msra.mxu1 %v7560_v42 }
 0x761   :  { %10375 = vmatmul.mubr.msk.f32.vlgmr.msra.gmra.mrb[12].mxu1 %vm58_vm0, %v7541_v25  ;;  %vm10142_vm0 = vcmask 1040384  }
 0x762   :  { %v7793_v47 = vpop.permute.xlu0 %7792 }
 0x7a1   :  { %v7842_v32 = vpop.permute.xlu1 %7841 }
 0x7a3   :  { %v7833_v37 = vpop.permute.xlu0 %7832 }
 0x7a5   :  { %v8089_v1 = vpop.permute.xlu1 %8088 }
 0x82c   :  { %v7636_v39 = vpop.f32.mrb[8].mxu1 }
 0x82d   :  { %v7795_v49 = vadd.f32 %v7793_v47, %v7636_v39  ;;  %v7638_v41 = vpop.f32.mrb[9].mxu1 }
 0x82e   :  { %v7796_v0 = vadd.f32 %v7793_v47, %v7638_v41 }
 0x82f   :  { %v7801_v19 = vmax.f32 %v7795_v49, 0.0 }
 0x830   :  { %v7802_v22 = vmax.f32 %v7796_v0, 0.0  ;;  %v7707_v24 = vpop.f32.mrb[10].mxu1 }
 0x831   :  { %v7807_v63 = vmul.f32 %v7801_v19, %v10886_v15  ;;  %v7797_v36 = vadd.f32 %v7793_v47, %v7707_v24  ;;  %v7709_v26 = vpop.f32.mrb[11].mxu1 }
 0x832   :  { %v7808_v56 = vmul.f32 %v7802_v22, %v10907_v23  ;;  %v7798_v59 = vadd.f32 %v7793_v47, %v7709_v26 }
 0x833   :  { %7813 = vst [vmem:[#allocation2 + $0x8] sm:$0xf] %v7807_v63  ;;  %v7803_v60 = vmax.f32 %v7797_v36, 0.0 }
 0x834   :  { %7814 = vst [vmem:[#allocation2 + $0x10] sm:$0xf] %v7808_v56  ;;  %v7804_v7 = vmax.f32 %v7798_v59, 0.0  ;;  %v7778_v28 = vpop.f32.mrb[12].mxu1 }
 0x835   :  { %v7809_v54 = vmul.f32 %v7803_v60, %v10895_v18  ;;  %v7799_v10 = vadd.f32 %v7793_v47, %v7778_v28  ;;  %v7780_v46 = vpop.f32.mrb[13].mxu1 }
 0x836   :  { %v7810_v4 = vmul.f32 %v7804_v7, %v11180_v45  ;;  %v7800_v8 = vadd.f32 %v7793_v47, %v7780_v46 }
 0x837   :  { %7815 = vst [vmem:[#allocation2 + $0x18] sm:$0xf] %v7809_v54  ;;  %v7805_v5 = vmax.f32 %v7799_v10, 0.0 }
 0x838   :  { %7816 = vst [vmem:[#allocation2 + $0x20] sm:$0xf] %v7810_v4  ;;  %v7806_v20 = vmax.f32 %v7800_v8, 0.0 }
 0x839   :  { %v7811_v30 = vmul.f32 %v7805_v5, %v11192_v48 }
 0x83a   :  { %v7812_v13 = vmul.f32 %v7806_v20, %v11188_v40  ;;  %v12276_v61 = vld [vmem:[#allocation2 + $0x8] sm:$0xf] }
 0x83b   :  { %7817 = vst [vmem:[#allocation2 + $0x28] sm:$0xf] %v7811_v30  ;;  %8339 = vrot.lane.b32.xlu0 %v12276_v61, %s10773_s3  ;;  %7843 = vrot.lane.b32.xlu1 %v12276_v61, %s10763_s27  ;;  %v12282_v16 = vld [vmem:[#allocation2 + $0x10] sm:$0xf]  ;;  %v9080_v38 = vld [vmem:[#allocation2 + $0x8] sm:$0xf] }
 0x83c   :  { %7818 = vst [vmem:[#allocation2 + $0x30] sm:$0xf] %v7812_v13  ;;  %v9081_v33 = vld [vmem:[#allocation2 + $0x10] sm:$0xf] }
 0x83e   :  { %v12292_v44 = vld [vmem:[#allocation2 + $0x18] sm:$0xf] }
 0x83f   :  { %7845 = vrot.lane.b32.xlu0 %v12282_v16, %s10763_s27  ;;  %8090 = vrot.lane.b32.xlu1 %v12276_v61, %s10772_s1  ;;  %v12298_v17 = vld [vmem:[#allocation2 + $0x20] sm:$0xf]  ;;  %v9082_v52 = vld [vmem:[#allocation2 + $0x18] sm:$0xf] }
 0x840   :  { %v9083_v57 = vld [vmem:[#allocation2 + $0x20] sm:$0xf] }
 0x842   :  { %v12304_v51 = vld [vmem:[#allocation2 + $0x28] sm:$0xf] }
 0x843   :  { %8092 = vrot.lane.b32.xlu0 %v12282_v16, %s10772_s1  ;;  %8341 = vrot.lane.b32.xlu1 %v12282_v16, %s10773_s3  ;;  %v12310_v43 = vld [vmem:[#allocation2 + $0x30] sm:$0xf]  ;;  %v9084_v50 = vld [vmem:[#allocation2 + $0x28] sm:$0xf] }
 0x844   :  { %v9085_v53 = vld [vmem:[#allocation2 + $0x30] sm:$0xf] }
 0x847   :  { %8094 = vrot.lane.b32.xlu0 %v12292_v44, %s10772_s1  ;;  %7847 = vrot.lane.b32.xlu1 %v12292_v44, %s10763_s27 }
 0x84b   :  { %7849 = vrot.lane.b32.xlu0 %v12298_v17, %s10763_s27  ;;  %8096 = vrot.lane.b32.xlu1 %v12298_v17, %s10772_s1 }
 0x84f   :  { %8098 = vrot.lane.b32.xlu0 %v12304_v51, %s10772_s1  ;;  %7851 = vrot.lane.b32.xlu1 %v12304_v51, %s10763_s27 }
 0x853   :  { %7853 = vrot.lane.b32.xlu0 %v12310_v43, %s10763_s27  ;;  %8335 = vrot.lane.b32.xlu1 %v12264_v14, %s10774_s18 }
 0x857   :  { %8337 = vrot.lane.b32.xlu0 %v12253_v29, %s10773_s3  ;;  %8345 = vrot.lane.b32.xlu1 %v12298_v17, %s10773_s3 }
 0x85b   :  { %8343 = vrot.lane.b32.xlu0 %v12292_v44, %s10773_s3  ;;  %8100 = vrot.lane.b32.xlu1 %v12310_v43, %s10772_s1 }
 0x85f   :  { %8347 = vrot.lane.b32.xlu0 %v12304_v51, %s10773_s3  ;;  %8596 = vrot.lane.b32.xlu1 %v12282_v16, %s10775_s19 }
 0x863   :  { %8594 = vrot.lane.b32.xlu0 %v12276_v61, %s10775_s19  ;;  %8590 = vrot.lane.b32.xlu1 %v12264_v14, %s10776_s22 }
 0x867   :  { %8592 = vrot.lane.b32.xlu0 %v12253_v29, %s10775_s19  ;;  %8349 = vrot.lane.b32.xlu1 %v12310_v43, %s10773_s3 }
 0x86b   :  { %8598 = vrot.lane.b32.xlu0 %v12292_v44, %s10775_s19  ;;  %8600 = vrot.lane.b32.xlu1 %v12298_v17, %s10775_s19 }
 0x86f   :  { %8602 = vrot.lane.b32.xlu0 %v12304_v51, %s10775_s19  ;;  %9098 = vrot.lane.b32.xlu1 %v9081_v33, %s10769_s16 }
 0x873   :  { %8845 = vrot.lane.b32.xlu0 %v12264_v14, %s10777_s4  ;;  %8604 = vrot.lane.b32.xlu1 %v12310_v43, %s10775_s19 }
 0x877   :  { %9100 = vrot.lane.b32.xlu0 %v9082_v52, %s10769_s16  ;;  %9096 = vrot.lane.b32.xlu1 %v9080_v38, %s10769_s16 }
 0x87b   :  { %9087 = vrot.lane.b32.xlu0 %v12264_v14, %s10767_s14  ;;  %9102 = vrot.lane.b32.xlu1 %v9083_v57, %s10769_s16 }
 0x87f   :  { %9104 = vrot.lane.b32.xlu0 %v9084_v50, %s10769_s16  ;;  %9353 = vrot.lane.b32.xlu1 %v9081_v33, %s10779_s25 }
 0x883   :  { %9108 = vrot.lane.b32.xlu0 %v9086_v27, %s10769_s16  ;;  %9351 = vrot.lane.b32.xlu1 %v9080_v38, %s10779_s25 }
 0x887   :  { %9355 = vrot.lane.b32.xlu0 %v9082_v52, %s10779_s25  ;;  %9357 = vrot.lane.b32.xlu1 %v9083_v57, %s10779_s25 }
 0x88b   :  { %9349 = vrot.lane.b32.xlu0 %v12264_v14, %s10778_s24  ;;  %9106 = vrot.lane.b32.xlu1 %v9085_v53, %s10769_s16 }
 0x88f   :  { %9359 = vrot.lane.b32.xlu0 %v9084_v50, %s10779_s25  ;;  %9608 = vrot.lane.b32.xlu1 %v9081_v33, %s10756_s20 }
 0x893   :  { %9363 = vrot.lane.b32.xlu0 %v9086_v27, %s10779_s25  ;;  %9606 = vrot.lane.b32.xlu1 %v9080_v38, %s10756_s20 }
 0x897   :  { %9610 = vrot.lane.b32.xlu0 %v9082_v52, %s10756_s20  ;;  %9361 = vrot.lane.b32.xlu1 %v9085_v53, %s10779_s25 }
 0x89b   :  { %9604 = vrot.lane.b32.xlu0 %v12264_v14, %s10780_s26  ;;  %9612 = vrot.lane.b32.xlu1 %v9083_v57, %s10756_s20 }
 0x89f   :  { %9614 = vrot.lane.b32.xlu0 %v9084_v50, %s10756_s20  ;;  %9863 = vrot.lane.b32.xlu1 %v9081_v33, %s10749_s2 }
 0x8a3   :  { %9618 = vrot.lane.b32.xlu0 %v9086_v27, %s10756_s20  ;;  %9616 = vrot.lane.b32.xlu1 %v9085_v53, %s10756_s20 }
 0x8a7   :  { %9865 = vrot.lane.b32.xlu0 %v9082_v52, %s10749_s2  ;;  %9861 = vrot.lane.b32.xlu1 %v9080_v38, %s10749_s2 }
 0x8ab   :  { %9859 = vrot.lane.b32.xlu0 %v12264_v14, %s10781_s28  ;;  %9867 = vrot.lane.b32.xlu1 %v9083_v57, %s10749_s2 }
 0x8ad   :  { %v7844_v62 = vpop.permute.xlu1 %7843  ;;  %v8340_v21 = vpop.permute.xlu0 %8339 }
 0x8ae   :  { %v7855_v34 = vsel %vm1002_vm13, %v7842_v32, %v7844_v62 }
 0x8af   :  { %9869 = vrot.lane.b32.xlu0 %v9084_v50, %s10749_s2  ;;  %9871 = vrot.lane.b32.xlu1 %v9085_v53, %s10749_s2 }
 0x8b1   :  { %v8091_v25 = vpop.permute.xlu1 %8090  ;;  %v7846_v55 = vpop.permute.xlu0 %7845 }
 0x8b2   :  { %v7856_v12 = vsel %vm1002_vm13, %v7844_v62, %v7846_v55  ;;  %v8102_v63 = vsel %vm951_vm12, %v8089_v1, %v8091_v25 }
 0x8b3   :  { %9873 = vrot.lane.b32.xlu0 %v9086_v27, %s10749_s2  ;;  %10117 = vperm.xlu1 %10709, %v10114_v35   ;;  %s10231_s2 = sshll.u32 %s10785_s10, 4  ;;  %s10232_s2 = int_to_ptr.vmem [resolvable:$true] %s10231_s2 }
 0x8b4   :  { %10376 = vmatprep.subr.msk.mxu0 %vm1012_vm14, %v7856_v12  ;;  %s10718_s20 = scalar_lea.vmem %s10232_s2, 96  ;;  %p10723_p1 = scmp.lt.s32.totalorder %s10232_s2, %s10232_s2 }
 0x8b5   :  { %10377 = vmatpush1.msk.msra.mxu0 %vm1012_vm14, %v7855_v34  ;;  %v8342_v31 = vpop.permute.xlu1 %8341  ;;  %v8093_v9 = vpop.permute.xlu0 %8092  ;;  %p10719_p0 = scmp.ne.s32.totalorder %s10232_s2, %s10718_s20  ;;  %p10724_p2 = scmp.lt.s32.totalorder %s10718_s20, %s10718_s20 }
 0x8b6   :  { %10378 = vmatmul.mubr.msk.f32.vlgmr.msra.gmra.mrb[8].mxu0 %vm1009_vm15, %v7833_v37  ;;  %v8103_v24 = vsel %vm951_vm12, %v8091_v25, %v8093_v9  ;;  %v8352_v4 = vsel %vm1501_vm1, %v8340_v21, %v8342_v31 }
 0x8b7   :  { %8010 = vmatprep.mubr.f32.mxu0 %v11965_v58  ;;  %p10725_p3 = por %p10724_p2, %p10723_p1 }
 0x8b9   :  { %v7848_v2 = vpop.permute.xlu1 %7847  ;;  %v8095_v3 = vpop.permute.xlu0 %8094  ;;  %p10726_p4 = pnand %p10725_p3, %p10719_p0 }
 0x8ba   :  { %v7857_v47 = vsel %vm1002_vm13, %v7846_v55, %v7848_v2  ;;  %v8104_v59 = vsel %vm951_vm12, %v8093_v9, %v8095_v3 }
 0x8bd   :  { %v8097_v42 = vpop.permute.xlu1 %8096  ;;  %v7850_v29 = vpop.permute.xlu0 %7849 }
 0x8be   :  { %v7858_v14 = vsel %vm1002_vm13, %v7848_v2, %v7850_v29  ;;  %v8105_v56 = vsel %vm951_vm12, %v8095_v3, %v8097_v42 }
 0x8bf   :  { %10379 = vmatprep.subr.msk.mxu0 %vm1012_vm14, %v7858_v14 }
 0x8c0   :  { %10380 = vmatpush1.msk.msra.mxu0 %vm1012_vm14, %v7857_v47 }
 0x8c1   :  { %v7852_v39 = vpop.permute.xlu1 %7851  ;;  %10381 = vmatmul.mubr.msk.f32.vlgmr.msra.gmra.mrb[10].mxu0 %vm1009_vm15, %v7833_v37  ;;  %v8099_v49 = vpop.permute.xlu0 %8098 }
 0x8c2   :  { %8081 = vmatprep.mubr.f32.mxu0 %v11965_v58  ;;  %v7859_v22 = vsel %vm1002_vm13, %v7850_v29, %v7852_v39  ;;  %v8106_v54 = vsel %vm951_vm12, %v8097_v42, %v8099_v49 }
 0x8c5   :  { %v8336_v41 = vpop.permute.xlu1 %8335  ;;  %v7854_v0 = vpop.permute.xlu0 %7853 }
 0x8c6   :  { %v7860_v19 = vsel %vm1002_vm13, %v7852_v39, %v7854_v0 }
 0x8c7   :  { %10382 = vmatprep.subr.msk.mxu0 %vm1012_vm14, %v7860_v19 }
 0x8c8   :  { %10383 = vmatpush1.msk.msra.mxu0 %vm1012_vm14, %v7859_v22 }
 0x8c9   :  { %v8346_v36 = vpop.permute.xlu1 %8345  ;;  %10384 = vmatmul.mubr.msk.f32.vlgmr.msra.gmra.mrb[12].mxu0 %vm1009_vm15, %v7833_v37  ;;  %10385 = vmatprep.subr.msk.mxu0 %vm1012_vm14, %v8103_v24  ;;  %v8338_v26 = vpop.permute.xlu0 %8337 }
 0x8ca   :  { %10386 = vmatpush1.msk.msra.mxu0 %vm1012_vm14, %v8102_v63  ;;  %8186 = vmatprep.mubr.f32.mxu0 %v11965_v58  ;;  %v8351_v8 = vsel %vm1501_vm1, %v8338_v26, %v8340_v21 }
 0x8cb   :  { %10388 = vmatprep.subr.msk.mxu0 %vm1012_vm14, %v8105_v56 }
 0x8cd   :  { %v8101_v60 = vpop.permute.xlu1 %8100  ;;  %10387 = vmatmul.mubr.msk.f32.vlgmr.msra.gmra.mrb[8].mxu0 %vm1009_vm15, %v12260_v6  ;;  %v8344_v7 = vpop.permute.xlu0 %8343 }
 0x8ce   :  { %v8107_v28 = vsel %vm951_vm12, %v8099_v49, %v8101_v60  ;;  %10389 = vmatpush1.msk.msra.mxu0 %vm1012_vm14, %v8104_v59  ;;  %8257 = vmatprep.mubr.f32.mxu0 %v11965_v58  ;;  %v8354_v30 = vsel %vm1501_vm1, %v8344_v7, %v8346_v36  ;;  %v8353_v13 = vsel %vm1501_vm1, %v8342_v31, %v8344_v7 }
 0x8cf   :  { %10391 = vmatprep.subr.msk.mxu0 %vm1012_vm14, %v8107_v28 }
 0x8d1   :  { %v8597_v10 = vpop.permute.xlu1 %8596  ;;  %10390 = vmatmul.mubr.msk.f32.vlgmr.msra.gmra.mrb[10].mxu0 %vm1009_vm15, %v12260_v6  ;;  %v8348_v46 = vpop.permute.xlu0 %8347 }
 0x8d2   :  { %10392 = vmatpush1.msk.msra.mxu0 %vm1012_vm14, %v8106_v54  ;;  %8328 = vmatprep.mubr.f32.mxu0 %v11965_v58 }
 0x8d3   :  { %10394 = vmatprep.subr.msk.mxu0 %vm1012_vm14, %v8352_v4 }
 0x8d5   :  { %v8591_v5 = vpop.permute.xlu1 %8590  ;;  %10393 = vmatmul.mubr.msk.f32.vlgmr.msra.gmra.mrb[12].mxu0 %vm1009_vm15, %v12260_v6  ;;  %v8595_v20 = vpop.permute.xlu0 %8594  ;;  %v12431_v6 = vld [vmem:[#allocation2] sm:$0xff] }
 0x8d6   :  { %10395 = vmatpush1.msk.msra.mxu0 %vm1012_vm14, %v8351_v8  ;;  %8435 = vmatprep.mubr.f32.mxu0 %v11965_v58  ;;  %v8355_v58 = vsel %vm1501_vm1, %v8346_v36, %v8348_v46  ;;  %v8607_v27 = vsel %vm1757_vm3, %v8595_v20, %v8597_v10 }
 0x8d7   :  { %10397 = vmatprep.subr.msk.mxu0 %vm1012_vm14, %v8354_v30 }
 0x8d9   :  { %v8350_v33 = vpop.permute.xlu1 %8349  ;;  %10396 = vmatmul.mubr.msk.f32.vlgmr.msra.gmra.mrb[8].mxu0 %vm1009_vm15, %v8336_v41  ;;  %v8593_v52 = vpop.permute.xlu0 %8592 }
 0x8da   :  { %v8356_v38 = vsel %vm1501_vm1, %v8348_v46, %v8350_v33  ;;  %10398 = vmatpush1.msk.msra.mxu0 %vm1012_vm14, %v8353_v13  ;;  %8506 = vmatprep.mubr.f32.mxu0 %v12431_v6  ;;  %v8606_v53 = vsel %vm1757_vm3, %v8593_v52, %v8595_v20 }
 0x8db   :  { %10400 = vmatprep.subr.msk.mxu0 %vm1012_vm14, %v8356_v38 }
 0x8dd   :  { %v8601_v57 = vpop.permute.xlu1 %8600  ;;  %10399 = vmatmul.mubr.msk.f32.vlgmr.msra.gmra.mrb[10].mxu0 %vm1009_vm15, %v8336_v41  ;;  %v8599_v50 = vpop.permute.xlu0 %8598 }
 0x8de   :  { %10401 = vmatpush1.msk.msra.mxu0 %vm1012_vm14, %v8355_v58  ;;  %8577 = vmatprep.mubr.f32.mxu0 %v12431_v6  ;;  %v8609_v37 = vsel %vm1757_vm3, %v8599_v50, %v8601_v57  ;;  %v8608_v62 = vsel %vm1757_vm3, %v8597_v10, %v8599_v50 }
 0x8df   :  { %10403 = vmatprep.subr.msk.mxu0 %vm1012_vm14, %v8607_v27 }
 0x8e1   :  { %v9099_v32 = vpop.permute.xlu1 %9098  ;;  %10402 = vmatmul.mubr.msk.f32.vlgmr.msra.gmra.mrb[12].mxu0 %vm1009_vm15, %v8336_v41  ;;  %v8603_v1 = vpop.permute.xlu0 %8602 }
 0x8e2   :  { %10404 = vmatpush1.msk.msra.mxu0 %vm1012_vm14, %v8606_v53  ;;  %8690 = vmatprep.mubr.f32.mxu0 %v12431_v6  ;;  %v8610_v55 = vsel %vm1757_vm3, %v8601_v57, %v8603_v1 }
 0x8e3   :  { %10406 = vmatprep.subr.msk.mxu0 %vm1012_vm14, %v8609_v37 }
 0x8e5   :  { %v8605_v21 = vpop.permute.xlu1 %8604  ;;  %10405 = vmatmul.mubr.msk.f32.vlgmr.msra.gmra.mrb[8].mxu0 %vm1009_vm15, %v8591_v5  ;;  %v8846_v35 = vpop.permute.xlu0 %8845 }
 0x8e6   :  { %v8611_v25 = vsel %vm1757_vm3, %v8603_v1, %v8605_v21  ;;  %10407 = vmatpush1.msk.msra.mxu0 %vm1012_vm14, %v8608_v62  ;;  %8761 = vmatprep.mubr.f32.mxu0 %v12431_v6 }
 0x8e7   :  { %10409 = vmatprep.subr.msk.mxu0 %vm1012_vm14, %v8611_v25 }
 0x8e9   :  { %v9097_v12 = vpop.permute.xlu1 %9096  ;;  %10408 = vmatmul.mubr.msk.f32.vlgmr.msra.gmra.mrb[10].mxu0 %vm1009_vm15, %v8591_v5  ;;  %v9101_v34 = vpop.permute.xlu0 %9100 }
 0x8ea   :  { %10410 = vmatpush1.msk.msra.mxu0 %vm1012_vm14, %v8610_v55  ;;  %8832 = vmatprep.mubr.f32.mxu0 %v12431_v6  ;;  %v9111_v42 = vsel %vm386_vm2, %v9099_v32, %v9101_v34 }
 0x8eb   :  { %10412 = vmatprep.subr.msk.mxu0 %vm1012_vm14, %v12282_v16 }
 0x8ed   :  { %v9103_v31 = vpop.permute.xlu1 %9102  ;;  %10411 = vmatmul.mubr.msk.f32.vlgmr.msra.gmra.mrb[12].mxu0 %vm1009_vm15, %v8591_v5  ;;  %v9088_v9 = vpop.permute.xlu0 %9087 }
 0x8ee   :  { %10413 = vmatpush1.msk.msra.mxu0 %vm1012_vm14, %v12276_v61  ;;  %8925 = vmatprep.mubr.f32.mxu0 %v12431_v6 }
 0x8ef   :  { %10415 = vmatprep.subr.msk.mxu0 %vm1012_vm14, %v12298_v17 }
 0x8f1   :  { %v9354_v2 = vpop.permute.xlu1 %9353  ;;  %10414 = vmatmul.mubr.msk.f32.vlgmr.msra.gmra.mrb[8].mxu0 %vm1009_vm15, %v8846_v35  ;;  %v9105_v3 = vpop.permute.xlu0 %9104 }
 0x8f2   :  { %10416 = vmatpush1.msk.msra.mxu0 %vm1012_vm14, %v12292_v44  ;;  %8996 = vmatprep.mubr.f32.mxu0 %v12431_v6  ;;  %v9110_v44 = vsel %vm386_vm2, %v9097_v12, %v9099_v32 }
 0x8f3   :  { %10418 = vmatprep.subr.msk.mxu0 %vm1012_vm14, %v12310_v43  ;;  %v9113_v43 = vsel %vm386_vm2, %v9103_v31, %v9105_v3 }
 0x8f5   :  { %v9352_v16 = vpop.permute.xlu1 %9351  ;;  %10417 = vmatmul.mubr.msk.f32.vlgmr.msra.gmra.mrb[10].mxu0 %vm1009_vm15, %v8846_v35  ;;  %v9109_v61 = vpop.permute.xlu0 %9108 }
 0x8f6   :  { %10419 = vmatpush1.msk.msra.mxu0 %vm1012_vm14, %v12304_v51  ;;  %9067 = vmatprep.mubr.f32.mxu0 %v12431_v6  ;;  %v9112_v51 = vsel %vm386_vm2, %v9101_v34, %v9103_v31  ;;  %v9365_v22 = vsel %vm2517_vm4, %v9352_v16, %v9354_v2 }
 0x8f7   :  { %10421 = vmatprep.subr.msk.mxu0 %vm1012_vm14, %v9111_v42 }
 0x8f9   :  { %v9358_v17 = vpop.permute.xlu1 %9357  ;;  %10420 = vmatmul.mubr.msk.f32.vlgmr.msra.gmra.mrb[12].mxu0 %vm1009_vm15, %v8846_v35  ;;  %v9356_v29 = vpop.permute.xlu0 %9355 }
 0x8fa   :  { %10422 = vmatpush1.msk.msra.mxu0 %vm1012_vm14, %v9110_v44  ;;  %9194 = vmatprep.mubr.f32.mxu0 %v12431_v6  ;;  %v9366_v19 = vsel %vm2517_vm4, %v9354_v2, %v9356_v29  ;;  %v9367_v26 = vsel %vm2517_vm4, %v9356_v29, %v9358_v17 }
 0x8fb   :  { %10424 = vmatprep.subr.msk.mxu0 %vm1012_vm14, %v9113_v43 }
 0x8fd   :  { %v9107_v14 = vpop.permute.xlu1 %9106  ;;  %10423 = vmatmul.mubr.msk.f32.vlgmr.msra.gmra.mrb[8].mxu0 %vm1009_vm15, %v9088_v9  ;;  %v9350_v47 = vpop.permute.xlu0 %9349 }
 0x8fe   :  { %v9115_v39 = vsel %vm386_vm2, %v9107_v14, %v9109_v61  ;;  %10425 = vmatpush1.msk.msra.mxu0 %vm1012_vm14, %v9112_v51  ;;  %9265 = vmatprep.mubr.f32.mxu0 %v12431_v6  ;;  %v9114_v49 = vsel %vm386_vm2, %v9105_v3, %v9107_v14 }
 0x8ff   :  { %10427 = vmatprep.subr.msk.mxu0 %vm1012_vm14, %v9115_v39 }
 0x901   :  { %v9609_v41 = vpop.permute.xlu1 %9608  ;;  %10426 = vmatmul.mubr.msk.f32.vlgmr.msra.gmra.mrb[10].mxu0 %vm1009_vm15, %v9088_v9  ;;  %v9360_v0 = vpop.permute.xlu0 %9359 }
 0x902   :  { %10428 = vmatpush1.msk.msra.mxu0 %vm1012_vm14, %v9114_v49  ;;  %9336 = vmatprep.mubr.f32.mxu0 %v12431_v6  ;;  %v9368_v36 = vsel %vm2517_vm4, %v9358_v17, %v9360_v0 }
 0x903   :  { %10430 = vmatprep.subr.msk.mxu0 %vm1012_vm14, %v9366_v19 }
 0x905   :  { %v9607_v24 = vpop.permute.xlu1 %9606  ;;  %10429 = vmatmul.mubr.msk.f32.vlgmr.msra.gmra.mrb[12].mxu0 %vm1009_vm15, %v9088_v9  ;;  %v9364_v63 = vpop.permute.xlu0 %9363 }
 0x906   :  { %10431 = vmatpush1.msk.msra.mxu0 %vm1012_vm14, %v9365_v22  ;;  %9449 = vmatprep.mubr.f32.mxu0 %v12431_v6  ;;  %v9620_v46 = vsel %vm492_vm6, %v9607_v24, %v9609_v41 }
 0x907   :  { %10433 = vmatprep.subr.msk.mxu0 %vm1012_vm14, %v9368_v36 }
 0x909   :  { %v9362_v56 = vpop.permute.xlu1 %9361  ;;  %10432 = vmatmul.mubr.msk.f32.vlgmr.msra.gmra.mrb[8].mxu0 %vm1009_vm15, %v9350_v47  ;;  %v9611_v59 = vpop.permute.xlu0 %9610 }
 0x90a   :  { %v9370_v60 = vsel %vm2517_vm4, %v9362_v56, %v9364_v63  ;;  %10434 = vmatpush1.msk.msra.mxu0 %vm1012_vm14, %v9367_v26  ;;  %9520 = vmatprep.mubr.f32.mxu0 %v12431_v6  ;;  %v9369_v7 = vsel %vm2517_vm4, %v9360_v0, %v9362_v56  ;;  %v9621_v10 = vsel %vm492_vm6, %v9609_v41, %v9611_v59 }
 0x90b   :  { %10436 = vmatprep.subr.msk.mxu0 %vm1012_vm14, %v9370_v60 }
 0x90d   :  { %v9613_v28 = vpop.permute.xlu1 %9612  ;;  %10435 = vmatmul.mubr.msk.f32.vlgmr.msra.gmra.mrb[10].mxu0 %vm1009_vm15, %v9350_v47  ;;  %v9605_v54 = vpop.permute.xlu0 %9604 }
 0x90e   :  { %10437 = vmatpush1.msk.msra.mxu0 %vm1012_vm14, %v9369_v7  ;;  %9591 = vmatprep.mubr.f32.mxu0 %v12431_v6  ;;  %v9622_v20 = vsel %vm492_vm6, %v9611_v59, %v9613_v28 }
 0x90f   :  { %10439 = vmatprep.subr.msk.mxu0 %vm1012_vm14, %v9621_v10 }
 0x911   :  { %v9864_v4 = vpop.permute.xlu1 %9863  ;;  %10438 = vmatmul.mubr.msk.f32.vlgmr.msra.gmra.mrb[12].mxu0 %vm1009_vm15, %v9350_v47  ;;  %v9615_v8 = vpop.permute.xlu0 %9614 }
 0x912   :  { %10440 = vmatpush1.msk.msra.mxu0 %vm1012_vm14, %v9620_v46  ;;  %v9623_v5 = vsel %vm492_vm6, %v9613_v28, %v9615_v8  ;;  %9704 = vmatprep.mubr.f32.mxu0 %v12431_v6  ;;  %v10784_v28 = vmov 1966171168  }
 0x913   :  { %10442 = vmatprep.subr.msk.mxu0 %vm1012_vm14, %v9623_v5  ;;  %v12592_v5 = vld [vmem:[#allocation7_spill] sm:$0xff] }
 0x915   :  { %v9617_v30 = vpop.permute.xlu1 %9616  ;;  %10441 = vmatmul.mubr.msk.f32.vlgmr.msra.gmra.mrb[8].mxu0 %vm1009_vm15, %v9605_v54  ;;  %v9619_v13 = vpop.permute.xlu0 %9618 }
 0x916   :  { %10443 = vmatpush1.msk.msra.mxu0 %vm1012_vm14, %v9622_v20  ;;  %v9625_v33 = vsel %vm492_vm6, %v9617_v30, %v9619_v13  ;;  %9775 = vmatprep.mubr.f32.mxu0 %v12431_v6  ;;  %v9624_v52 = vsel %vm492_vm6, %v9615_v8, %v9617_v30 }
 0x917   :  { %10445 = vmatprep.subr.msk.mxu0 %vm1012_vm14, %v9625_v33 }
 0x919   :  { %v9862_v38 = vpop.permute.xlu1 %9861  ;;  %10444 = vmatmul.mubr.msk.f32.vlgmr.msra.gmra.mrb[10].mxu0 %vm1009_vm15, %v9605_v54  ;;  %v9866_v58 = vpop.permute.xlu0 %9865 }
 0x91a   :  { %10446 = vmatpush1.msk.msra.mxu0 %vm1012_vm14, %v9624_v52  ;;  %v9876_v57 = vsel %vm576_vm7, %v9864_v4, %v9866_v58  ;;  %9846 = vmatprep.mubr.f32.mxu0 %v12431_v6  ;;  %v9875_v50 = vsel %vm576_vm7, %v9862_v38, %v9864_v4 }
 0x91b   :  { %10448 = vmatprep.subr.msk.mxu0 %vm1012_vm14, %v9876_v57 }
 0x91d   :  { %10447 = vmatmul.mubr.msk.f32.vlgmr.msra.gmra.mrb[12].mxu0 %vm1009_vm15, %v9605_v54  ;;  %v9860_v27 = vpop.permute.xlu0 %9859  ;;  %v9868_v53 = vpop.permute.xlu1 %9867  ;;  %v10159_v54 = vunpack.c.l.s4 %v10784_v28 }
 0x91e   :  { %10449 = vmatpush1.msk.msra.mxu0 %vm1012_vm14, %v9875_v50  ;;  %9959 = vmatprep.mubr.f32.mxu0 %v12431_v6  ;;  %v9877_v37 = vsel %vm576_vm7, %v9866_v58, %v9868_v53 }
 0x91f   :  { %v10160_v46 = vunpack.c.0.s8 %v10159_v54 }
 0x921   :  { %10450 = vmatmul.mubr.msk.f32.vlgmr.msra.gmra.mrb[8].mxu0 %vm1009_vm15, %v9860_v27  ;;  %v9870_v32 = vpop.permute.xlu0 %9869  ;;  %v9872_v62 = vpop.permute.xlu1 %9871  ;;  %v10163_v20 = vsub.s32 %v10160_v46, %v12592_v5 }
 0x922   :  { %v9878_v1 = vsel %vm576_vm7, %v9868_v53, %v9870_v32  ;;  %10030 = vmatprep.mubr.f32.mxu0 %v12431_v6  ;;  %v9879_v25 = vsel %vm576_vm7, %v9870_v32, %v9872_v62 }
 0x923   :  { %10451 = vmatprep.subr.msk.mxu0 %vm1012_vm14, %v9878_v1 }
 0x924   :  { %10452 = vmatpush1.msk.msra.mxu0 %vm1012_vm14, %v9877_v37 }
 0x925   :  { %10453 = vmatmul.mubr.msk.f32.vlgmr.msra.gmra.mrb[10].mxu0 %vm1009_vm15, %v9860_v27  ;;  %v9874_v21 = vpop.permute.xlu0 %9873 }
 0x926   :  { %v9880_v35 = vsel %vm576_vm7, %v9872_v62, %v9874_v21  ;;  %10101 = vmatprep.mubr.f32.mxu0 %v12431_v6 }
 0x927   :  { %10454 = vmatprep.subr.msk.mxu0 %vm1012_vm14, %v9880_v35 }
 0x928   :  { %10455 = vmatpush1.msk.msra.mxu0 %vm1012_vm14, %v9879_v25 }
 0x929   :  { %10456 = vmatmul.mubr.msk.f32.vlgmr.msra.gmra.mrb[12].mxu0 %vm1009_vm15, %v9860_v27  ;;  %v12593_v27 = vlaneseq }
 0x92b   :  { %vm10183_vm2 = vcmp.lt.s32.totalorder %v12593_v27, 384 }
 0x932   :  { %v10118_v55 = vpop.permute.xlu1 %10117 }
 0x933   :  { %v10123_v12 = vrot.slane %v10118_v55, %v10877_v11 }
 0x9f4   :  { %v9961_v34 = vpop.f32.mrb[8].mxu0 }
 0x9f5   :  { %v10124_v31 = vadd.f32 %v10123_v12, %v9961_v34  ;;  %v9963_v9 = vpop.f32.mrb[9].mxu0 }
 0x9f6   :  { %v10125_v2 = vadd.f32 %v10123_v12, %v9963_v9 }
 0x9f7   :  { %v10130_v3 = vmax.f32 %v10124_v31, 0.0 }
 0x9f8   :  { %v10131_v16 = vmax.f32 %v10125_v2, 0.0  ;;  %v10032_v61 = vpop.f32.mrb[10].mxu0 }
 0x9f9   :  { %v10136_v6 = vmul.f32 %v10130_v3, %v10886_v15  ;;  %v10126_v42 = vadd.f32 %v10123_v12, %v10032_v61  ;;  %v10034_v44 = vpop.f32.mrb[11].mxu0 }
 0x9fa   :  { %v10137_v17 = vmul.f32 %v10131_v16, %v10907_v23  ;;  %v10127_v29 = vadd.f32 %v10123_v12, %v10034_v44 }
 0x9fb   :  { %v10143_v43 = vsel %vm10142_vm0, %v10136_v6, -inf  ;;  %v10132_v51 = vmax.f32 %v10126_v42, 0.0 }
 0x9fc   :  { %v10144_v11 = vsel %vm10142_vm0, %v10137_v17, -inf  ;;  %v10133_v14 = vmax.f32 %v10127_v29, 0.0  ;;  %v10103_v47 = vpop.f32.mrb[12].mxu0 }
 0x9fd   :  { %v10138_v39 = vmul.f32 %v10132_v51, %v10895_v18  ;;  %v10128_v49 = vadd.f32 %v10123_v12, %v10103_v47  ;;  %v10105_v41 = vpop.f32.mrb[13].mxu0  ;;  %v10146_v0 = vmax.f32 %v10143_v43, %v10144_v11 }
 0x9fe   :  { %v10129_v19 = vadd.f32 %v10123_v12, %v10105_v41  ;;  %v10139_v15 = vmul.f32 %v10133_v14, %v11180_v45 }
 0x9ff   :  { %v10134_v22 = vmax.f32 %v10128_v49, 0.0  ;;  %v10145_v24 = vsel %vm10142_vm0, %v10138_v39, -inf }
 0xa00   :  { %v10135_v23 = vmax.f32 %v10129_v19, 0.0  ;;  %v10147_v63 = vmax.f32 %v10146_v0, %v10145_v24  ;;  %v10186_v56 = vsel %vm10142_vm0, %v10139_v15, -inf }
 0xa01   :  { %v10140_v36 = vmul.f32 %v10134_v22, %v11192_v48 }
 0xa02   :  { %v10141_v26 = vmul.f32 %v10135_v23, %v11188_v40  ;;  %10148 = vmax.xlane.f32.xlu0 %v10147_v63 }
 0xa03   :  { %v10187_v18 = vsel %vm10142_vm0, %v10140_v36, -inf }
 0xa04   :  { %v10188_v59 = vsel %vm10142_vm0, %v10141_v26, -inf  ;;  %v10189_v60 = vmax.f32 %v10186_v56, %v10187_v18 }
 0xa06   :  { %v10190_v7 = vmax.f32 %v10189_v60, %v10188_v59 }
 0xa08   :  { %10191 = vmax.xlane.f32.xlu1 %v10190_v7 }
 0xa8f   :  { %v10149_v45 = vpop.xlane.xlu0 %10148 }
 0xa90   :  { %10711 = vrcp.f32 %v10149_v45 }
 0xa95   :  { %v10192_v10 = vpop.xlane.xlu1 %10191 }
 0xa96   :  { %10713 = vrcp.f32 %v10192_v10 }
 0xa9a   :  { %v10712_v48 = vpop.eup %10711 }
 0xa9b   :  { %v10151_v4 = vmul.f32 %v10712_v48, %v10136_v6  ;;  %v10152_v40 = vmul.f32 %v10712_v48, %v10137_v17  ;;  %v10153_v8 = vmul.f32 %v10712_v48, %v10138_v39 }
 0xa9d   :  { %v10157_v30 = vcombine.low %v10151_v4, %v10152_v40  ;;  %v10171_v33 = vrot.slane %v10153_v8, %v10163_v20 }
 0xa9f   :  { %v10164_v13 = vrot.slane %v10157_v30, %v10163_v20 }
 0xaa0   :  { %v10714_v52 = vpop.eup %10713 }
 0xaa1   :  { %v10172_v38 = vcombine.low %v10164_v13, %v10171_v33  ;;  %v10194_v58 = vmul.f32 %v10714_v52, %v10139_v15  ;;  %v10195_v57 = vmul.f32 %v10714_v52, %v10140_v36  ;;  %v10196_v50 = vmul.f32 %v10714_v52, %v10141_v26 }
 0xaa3   :  { %v10179_v53 = vrot.slane %v10172_v38, %v10163_v20  ;;  %v10200_v32 = vcombine.low %v10194_v58, %v10195_v57  ;;  %v10214_v37 = vrot.slane %v10196_v50, %v10163_v20 }
 0xaa5   :  { %10185 = vst.msk [vmem:[#allocation4] sm:$0x7] %vm10183_vm2, %v10179_v53  ;;  %v10207_v1 = vrot.slane %v10200_v32, %v10163_v20 }
 0xaa7   :  { %v10215_v62 = vcombine.low %v10207_v1, %v10214_v37 }
 0xaa9   :  { %v10222_v21 = vrot.slane %v10215_v62, %v10163_v20 }
 0xaab   :  { %10224 = vst.msk [vmem:[#allocation4 + $0x3] sm:$0x7] %vm10183_vm2, %v10222_v21 }
 0xaac   :  { %10729 = shalt.err (!%p10726_p4)
}
 0xaad   :  { %s10730_s14 = scalar_lea.hbm %s12588_s13, 96 }
 0xaae   :  { %p10731_p5 = scmp.ne.s32.totalorder %s12588_s13, %s10730_s14  ;;  %p10734_p6 = scmp.lt.u32.totalorder %s10730_s14, %s12588_s13 }
 0xab0   :  { %p10736_p7 = pnand %p10734_p6, %p10731_p5 }
 0xab2   :  { %10739 = shalt.err (!%p10736_p7)
}
 0xab3   :  { %10234 = dma.vmem_to_hbm [thread:$0]  %s10232_s2, 96, %s12588_s13, [#allocation5]  }
 0xab4   :  { %10740 = dma.done.wait [#allocation5], 96  }
 0xab5   :  { %10741 = vsyncadd [#allocation5], 4294967200 }
 0xab6   :  { %10238 = vsyncpa [#allocation5], 1 }

</bundles_post_ra>
